<compile_context>
chip_gen: v7x
topology: tpu7x:2x2x1
jax: 0.10.0
libtpu: 0.0.40
codegen_flags: <defaults>
</compile_context>

<pallas_src>
import functools

import jax
import jax.numpy as jnp
from jax.experimental import pallas as pl
from jax.experimental.pallas import tpu as pltpu


def _outconv_kernel(x_ref, top_ref, bot_ref, w_ref, o_ref, slab_ref, *,
                    cin, cout, w_img, tile_h, top_off, chunk_h, use_mxu):
    """One (batch, H-tile) step of 3x3-same conv + tanh; lane axis = flat tile_h*W."""
    tw = tile_h * w_img
    main_off = top_off + w_img          # lane-aligned start of the tile rows
    bot_off = main_off + tw

    t = pl.program_id(1)
    n_t = pl.num_programs(1)

    # ------------------------------------------------------------------
    # Assemble the row slab in VMEM:
    #   [ ... | top halo row | tile rows (flat) | bottom halo row | ... ]
    # Only the regions that are ever read *unmasked* are initialised each step
    # (main + the two halo rows); everything outside them is only read under a
    # jnp.where select, so stale VMEM cannot leak through.  No full-slab zero.
    # ------------------------------------------------------------------
    slab_ref[:, main_off:main_off + tw] = x_ref[0].astype(jnp.float32)

    @pl.when(t > 0)
    def _():
        # last row of the chunk that precedes this tile
        slab_ref[:, top_off:top_off + w_img] = (
            top_ref[0, :, chunk_h - 1, :].astype(jnp.float32))

    @pl.when(t == 0)
    def _():
        slab_ref[:, top_off:top_off + w_img] = jnp.zeros((cin, w_img), jnp.float32)

    @pl.when(t < n_t - 1)
    def _():
        # first row of the chunk that follows this tile
        slab_ref[:, bot_off:bot_off + w_img] = (
            bot_ref[0, :, 0, :].astype(jnp.float32))

    @pl.when(t == n_t - 1)
    def _():
        slab_ref[:, bot_off:bot_off + w_img] = jnp.zeros((cin, w_img), jnp.float32)

    # Column-edge masks built in-kernel (kill the flat-shift wrap-around of the
    # kw=0 / kw=2 taps).  Replaces the old (2, tw) HBM operand.
    col = jax.lax.broadcasted_iota(jnp.int32, (1, tw), 1) % w_img
    not_first = col != 0                 # valid lanes for the kw == 0 taps
    not_last = col != (w_img - 1)        # valid lanes for the kw == 2 taps

    if use_mxu:
        acc = jnp.zeros((cout, tw), jnp.float32)
    else:
        acc_rows = [jnp.zeros((1, tw), jnp.float32) for _ in range(cout)]

    # 9 taps as lane-shifted views of the slab; accumulate directly (no im2col).
    for kh in range(3):
        for kw in range(3):
            start = top_off + kh * w_img + (kw - 1)
            patch = slab_ref[:, start:start + tw]                # (Cin, tw)
            if kw == 0:
                patch = jnp.where(not_first, patch, 0.0)
            elif kw == 2:
                patch = jnp.where(not_last, patch, 0.0)
            tap = kh * 3 + kw
            if use_mxu:
                # TODO(synk): for very large Cin/Cout, cast patch + weights to
                #             bfloat16 (keep f32 accumulation) for the bf16 MXU path.
                acc = acc + jnp.dot(w_ref[:, tap * cin:(tap + 1) * cin], patch,
                                    preferred_element_type=jnp.float32)
            else:
                # Tiny channel counts: VPU scalar-broadcast FMAs with weights in
                # SMEM -- no MXU push/pop, no aligned weight operand needed.
                for o in range(cout):
                    contrib = w_ref[o, tap * cin] * patch[0:1, :]
                    for i in range(1, cin):
                        contrib = contrib + w_ref[o, tap * cin + i] * patch[i:i + 1, :]
                    acc_rows[o] = acc_rows[o] + contrib

    if not use_mxu:
        acc = jnp.concatenate(acc_rows, axis=0)                  # (Cout, tw)

    # Fused tanh on the f32 accumulator (EUP slot is otherwise idle); lane-dense store.
    o_ref[0] = jnp.tanh(acc).astype(o_ref.dtype)


def _vmem_capacity_bytes():
    """Best-effort per-core VMEM size; conservative (v7x-sized) fallback."""
    try:
        info = pltpu.get_tpu_info()
        for attr in ("vmem_capacity_bytes", "vmem_size_bytes", "vmem_bytes"):
            v = getattr(info, attr, None)
            if v:
                return int(v)
    except Exception:
        pass
    return 64 * 1024 * 1024   # safe lower bound across v5e/v6e/v7x


def _pick_tile_h(h, w, cin, cout, budget_bytes, prefer_split=False):
    """Largest H tile whose per-step VMEM footprint fits the budget.

    prefer_split: when possible pick a tile that yields >= 2 grid steps so both
    v7x TensorCores get work even for batch-1 inference.
    """
    cands = [h]
    if h % 8 == 0:
        for th in range(8, h, 8):
            if h % th == 0 and (th * w) % 128 == 0:
                cands.append(th)

    def vmem_est(th):
        tw = th * w
        return 4 * (2 * cin * tw                   # double-buffered input blocks
                    + 2 * cout * tw                # double-buffered output blocks
                    + cin * (tw + 2 * w + 256)     # row-slab scratch
                    + 4 * cin * 8 * w              # double-buffered halo chunks
                    + (3 * cin + 2 * cout) * tw)   # live temporaries / accumulator

    fitting = [th for th in cands if vmem_est(th) <= budget_bytes]
    if not fitting:
        return min(cands, key=vmem_est)
    if prefer_split:
        split = [th for th in fitting if th < h]
        if split:
            return max(split)
    return max(fitting)


def outconv_pallas(x_nchw, w_convT, tile_h=None):
    """
    x_nchw : (N, Cin, H, W) float32
    w_convT: (Cin, Cout, 3, 3)  -- PyTorch ConvTranspose2d weight layout
    returns: (N, Cout, H, W) = tanh(conv_transpose2d(x, w, k=3, stride=1, pad=1))
    """
    n, cin, h, w = x_nchw.shape
    cout = w_convT.shape[1]

    vmem_cap = _vmem_capacity_bytes()
    if tile_h is None:
        tile_h = _pick_tile_h(h, w, cin, cout,
                              budget_bytes=int(vmem_cap * 0.35),
                              prefer_split=(n == 1))
    assert h % tile_h == 0, "tile_h must divide H"
    if tile_h != h:
        assert tile_h % 8 == 0 and (tile_h * w) % 128 == 0, (
            "tiled path needs tile_h % 8 == 0 and (tile_h*W) % 128 == 0")
    n_t = h // tile_h
    tw = tile_h * w

    # Halo rows arrive as 8-row chunks (clean (8, W) block shape).  When H is not
    # a multiple of 8 we fall back to a full-H chunk; that only happens together
    # with n_t == 1, where the halo contents are never used.
    chunk_h = 8 if (h % 8 == 0 and h >= 8) else h
    chunks_per_h = h // chunk_h
    th_chunks = max(tile_h // chunk_h, 1)

    # Free contiguous reshape: spatial dims flattened onto the lane axis.
    x_flat = x_nchw.reshape(n, cin, h * w)

    # Effective dense-conv weight: w_mat[o, (kh*3+kw)*Cin + i] = W[i, o, 2-kh, 2-kw]
    w_mat = jnp.transpose(w_convT[:, :, ::-1, ::-1], (1, 2, 3, 0))
    w_mat = w_mat.reshape(cout, 9 * cin).astype(jnp.float32)

    # Tiny channel counts -> VPU scalar-FMA path with weights in SMEM;
    # larger channel counts -> 9 small accumulated MXU dots (VMEM weights).
    use_mxu = (cin * cout) > 64
    if use_mxu:
        w_spec = pl.BlockSpec((cout, 9 * cin), lambda b, t: (0, 0))
    else:
        w_spec = pl.BlockSpec(memory_space=pltpu.MemorySpace.SMEM)

    # Lane-aligned offset of the tile rows inside the slab scratch (the bulk x
    # copy and the centre tap stay 128-lane aligned).
    top_off = (-w) % 128
    if top_off == 0:
        top_off = 128
    slab_len = top_off + tw + 2 * w + 8
    slab_len = ((slab_len + 127) // 128) * 128

    kernel = functools.partial(
        _outconv_kernel, cin=cin, cout=cout, w_img=w, tile_h=tile_h,
        top_off=top_off, chunk_h=chunk_h, use_mxu=use_mxu)

    out_flat = pl.pallas_call(
        kernel,
        out_shape=jax.ShapeDtypeStruct((n, cout, h * w), x_nchw.dtype),
        grid_spec=pltpu.PrefetchScalarGridSpec(
            num_scalar_prefetch=0,
            grid=(n, n_t),
            in_specs=[
                # tile rows, flat on the lane axis
                pl.BlockSpec((1, cin, tw), lambda b, t: (b, 0, t)),
                # chunk holding the top halo row (its last row)
                pl.BlockSpec(
                    (1, cin, chunk_h, w),
                    lambda b, t: (b, 0, jnp.maximum(t * th_chunks - 1, 0), 0)),
                # chunk holding the bottom halo row (its first row)
                pl.BlockSpec(
                    (1, cin, chunk_h, w),
                    lambda b, t: (b, 0,
                                  jnp.minimum((t + 1) * th_chunks,
                                              chunks_per_h - 1), 0)),
                # weight (SMEM scalars for the VPU path, VMEM matrix for MXU path)
                w_spec,
            ],
            out_specs=pl.BlockSpec((1, cout, tw), lambda b, t: (b, 0, t)),
            scratch_shapes=[
                pltpu.VMEM((cin, slab_len), jnp.float32),     # padded row slab
            ],
        ),
        compiler_params=pltpu.CompilerParams(
            dimension_semantics=("parallel", "parallel"),
            vmem_limit_bytes=int(min(vmem_cap * 0.7, 100 * 1024 * 1024)),
        ),
    )(x_flat, x_nchw, x_nchw, w_mat)

    # Free contiguous reshape back to NCHW.
    return out_flat.reshape(n, cout, h, w)


def _reference(x_nchw, w_convT):
    """Direct ConvTranspose2d(k=3, stride=1, pad=1, bias=False) + tanh.

    Built straight from the transposed-conv definition (scatter each input
    pixel's weighted 3x3 stamp, then crop `padding` from each border), so it is
    independent of the flip/transpose identity used inside the kernel.
    """
    n, cin, h, w = x_nchw.shape
    cout = w_convT.shape[1]
    full = jnp.zeros((n, cout, h + 2, w + 2), dtype=jnp.float32)
    for kh in range(3):
        for kw in range(3):
            contrib = jnp.einsum('nihw,io->nohw', x_nchw, w_convT[:, :, kh, kw],
                                 precision=jax.lax.Precision.HIGHEST)
            full = full.at[:, :, kh:kh + h, kw:kw + w].add(contrib)
    return jnp.tanh(full[:, :, 1:h + 1, 1:w + 1])


if __name__ == "__main__":
    key = jax.random.PRNGKey(0)
    kx1, kw1, kx2, kw2 = jax.random.split(key, 4)

    # --- Small-channel config (VPU scalar-FMA path), batch = 2 ---------------
    N, Cin, Cout, H, W = 2, 4, 3, 16, 16
    x1 = jax.random.normal(kx1, (N, Cin, H, W), dtype=jnp.float32)
    w1 = 0.1 * jax.random.normal(kw1, (Cin, Cout, 3, 3), dtype=jnp.float32)
    ref1 = jax.block_until_ready(_reference(x1, w1))
    for th in (None, 8):   # default single-tile path and the halo'd 2-tile path
        out1 = jax.block_until_ready(outconv_pallas(x1, w1, tile_h=th))
        assert out1.shape == (N, Cout, H, W)
        assert jnp.allclose(out1, ref1, atol=1e-5, rtol=1e-5), (
            f"VPU-path mismatch (tile_h={th})")

    # --- Larger-channel config (accumulated MXU-dot path); N = 1 also
    #     exercises the forced H split that keeps both v7x cores busy ---------
    Cin2 = 32
    x2 = jax.random.normal(kx2, (1, Cin2, H, W), dtype=jnp.float32)
    w2 = 0.05 * jax.random.normal(kw2, (Cin2, Cout, 3, 3), dtype=jnp.float32)
    ref2 = jax.block_until_ready(_reference(x2, w2))
    out2 = jax.block_until_ready(outconv_pallas(x2, w2))
    assert out2.shape == (1, Cout, H, W)
    # Looser tolerance: allows for MXU f32 rounding behaviour at K=9*Cin=288
    # while still catching any indexing / halo / masking bug (those are O(0.1)).
    assert jnp.allclose(out2, ref2, atol=5e-3, rtol=5e-3), "MXU-path mismatch"

    print("KERNEL_OK")
</pallas_src>

<mosaic_0001>
module attributes {stable_mosaic.version = 11 : i64} {
  func.func @_outconv_kernel(%arg0: i32, %arg1: i32, %arg2: memref<1x4x256xf32, #tpu.memory_space<vmem>>, %arg3: memref<1x4x8x16xf32, #tpu.memory_space<vmem>>, %arg4: memref<1x4x8x16xf32, #tpu.memory_space<vmem>>, %arg5: memref<3x36xf32, #tpu.memory_space<smem>>, %arg6: memref<1x3x256xf32, #tpu.memory_space<vmem>>, %arg7: memref<4x512xf32, #tpu.memory_space<vmem>>) attributes {dimension_semantics = [#tpu.dimension_semantics<parallel>, #tpu.dimension_semantics<parallel>], iteration_bounds = array<i64: 2, 1>, scalar_prefetch = 0 : i64, scratch_operands = 1 : i64, tpu.core_type = #tpu.core_type<tc>, window_params = [{transform_indices = @transform_0, window_bounds = array<i64: 1, 4, 256>}, {transform_indices = @transform_1, window_bounds = array<i64: 1, 4, 8, 16>}, {transform_indices = @transform_2, window_bounds = array<i64: 1, 4, 8, 16>}, {transform_indices = @transform_3, window_bounds = array<i64: 3, 36>}, {transform_indices = @transform_4, window_bounds = array<i64: 1, 3, 256>}]} {
    %c0 = arith.constant 0 : index
    %c0_0 = arith.constant 0 : index
    %c0_1 = arith.constant 0 : index
    %0 = vector.load %arg2[%c0, %c0_0, %c0_1] : memref<1x4x256xf32, #tpu.memory_space<vmem>>, vector<1x4x256xf32>
    %1 = vector.shape_cast %0 : vector<1x4x256xf32> to vector<4x256xf32>
    %c0_2 = arith.constant 0 : index
    %c128 = arith.constant 128 : index
    %2 = vector.load %arg7[%c0_2, %c128] : memref<4x512xf32, #tpu.memory_space<vmem>>, vector<4x256xf32>
    tpu.vector_store %arg7[%c0_2, %c128], %1 {strides = array<i32>} : memref<4x512xf32, #tpu.memory_space<vmem>>, vector<4x256xf32>,
    %c0_i32 = arith.constant 0 : i32
    %3 = arith.cmpi sgt, %arg1, %c0_i32 : i32
    %4 = arith.extui %3 : i1 to i32
    %c0_i32_3 = arith.constant 0 : i32
    %5 = arith.cmpi ne, %4, %c0_i32_3 : i32
    scf.if %5 {
      %c0_217 = arith.constant 0 : index
      %c0_218 = arith.constant 0 : index
      %c7_219 = arith.constant 7 : index
      %c0_220 = arith.constant 0 : index
      %617 = vector.load %arg3[%c0_217, %c0_218, %c7_219, %c0_220] : memref<1x4x8x16xf32, #tpu.memory_space<vmem>>, vector<1x4x1x16xf32>
      %618 = vector.shape_cast %617 : vector<1x4x1x16xf32> to vector<4x16xf32>
      %c0_221 = arith.constant 0 : index
      %c112_222 = arith.constant 112 : index
      %619 = vector.load %arg7[%c0_221, %c112_222] : memref<4x512xf32, #tpu.memory_space<vmem>>, vector<4x16xf32>
      tpu.vector_store %arg7[%c0_221, %c112_222], %618 {strides = array<i32>} : memref<4x512xf32, #tpu.memory_space<vmem>>, vector<4x16xf32>,
    } else {
    }
    %c0_i32_4 = arith.constant 0 : i32
    %6 = arith.cmpi eq, %arg1, %c0_i32_4 : i32
    %7 = arith.extui %6 : i1 to i32
    %c0_i32_5 = arith.constant 0 : i32
    %8 = arith.cmpi ne, %7, %c0_i32_5 : i32
    scf.if %8 {
      %cst_217 = arith.constant 0.000000e+00 : f32
      %617 = vector.broadcast %cst_217 : f32 to vector<4x16xf32>
      %c0_218 = arith.constant 0 : index
      %c112_219 = arith.constant 112 : index
      %618 = vector.load %arg7[%c0_218, %c112_219] : memref<4x512xf32, #tpu.memory_space<vmem>>, vector<4x16xf32>
      tpu.vector_store %arg7[%c0_218, %c112_219], %617 {strides = array<i32>} : memref<4x512xf32, #tpu.memory_space<vmem>>, vector<4x16xf32>,
    } else {
    }
    %c0_i32_6 = arith.constant 0 : i32
    %9 = arith.cmpi slt, %arg1, %c0_i32_6 : i32
    %10 = arith.extui %9 : i1 to i32
    %c0_i32_7 = arith.constant 0 : i32
    %11 = arith.cmpi ne, %10, %c0_i32_7 : i32
    scf.if %11 {
      %c0_217 = arith.constant 0 : index
      %c0_218 = arith.constant 0 : index
      %c0_219 = arith.constant 0 : index
      %c0_220 = arith.constant 0 : index
      %617 = vector.load %arg4[%c0_217, %c0_218, %c0_219, %c0_220] : memref<1x4x8x16xf32, #tpu.memory_space<vmem>>, vector<1x4x1x16xf32>
      %618 = vector.shape_cast %617 : vector<1x4x1x16xf32> to vector<4x16xf32>
      %c0_221 = arith.constant 0 : index
      %c384 = arith.constant 384 : index
      %619 = vector.load %arg7[%c0_221, %c384] : memref<4x512xf32, #tpu.memory_space<vmem>>, vector<4x16xf32>
      tpu.vector_store %arg7[%c0_221, %c384], %618 {strides = array<i32>} : memref<4x512xf32, #tpu.memory_space<vmem>>, vector<4x16xf32>,
    } else {
    }
    %c0_i32_8 = arith.constant 0 : i32
    %12 = arith.cmpi eq, %arg1, %c0_i32_8 : i32
    %13 = arith.extui %12 : i1 to i32
    %c0_i32_9 = arith.constant 0 : i32
    %14 = arith.cmpi ne, %13, %c0_i32_9 : i32
    scf.if %14 {
      %cst_217 = arith.constant 0.000000e+00 : f32
      %617 = vector.broadcast %cst_217 : f32 to vector<4x16xf32>
      %c0_218 = arith.constant 0 : index
      %c384 = arith.constant 384 : index
      %618 = vector.load %arg7[%c0_218, %c384] : memref<4x512xf32, #tpu.memory_space<vmem>>, vector<4x16xf32>
      tpu.vector_store %arg7[%c0_218, %c384], %617 {strides = array<i32>} : memref<4x512xf32, #tpu.memory_space<vmem>>, vector<4x16xf32>,
    } else {
    }
    %15 = tpu.iota {dimensions = array<i32: 1>} : vector<1x256xi32>
    %c16_i32 = arith.constant 16 : i32
    %c0_i32_10 = arith.constant 0 : i32
    %16 = arith.cmpi eq, %c16_i32, %c0_i32_10 : i32
    %c1_i32 = arith.constant 1 : i32
    %17 = arith.select %16, %c1_i32, %c16_i32 : i32
    %18 = vector.broadcast %17 : i32 to vector<1x256xi32>
    %19 = arith.remsi %15, %18 : vector<1x256xi32>
    %c0_i32_11 = arith.constant 0 : i32
    %20 = vector.broadcast %c0_i32_11 : i32 to vector<1x256xi32>
    %21 = arith.cmpi ne, %19, %20 : vector<1x256xi32>
    %c0_i32_12 = arith.constant 0 : i32
    %22 = vector.broadcast %c0_i32_12 : i32 to vector<1x256xi32>
    %23 = arith.cmpi slt, %19, %22 : vector<1x256xi32>
    %c0_i32_13 = arith.constant 0 : i32
    %24 = arith.cmpi slt, %17, %c0_i32_13 : i32
    %25 = vector.broadcast %24 : i1 to vector<1x256xi1>
    %26 = vector.broadcast %25 : vector<1x256xi1> to vector<1x256xi1>
    %27 = arith.xori %23, %26 : vector<1x256xi1>
    %28 = arith.andi %27, %21 : vector<1x256xi1>
    %29 = vector.broadcast %17 : i32 to vector<1x256xi32>
    %30 = arith.addi %19, %29 : vector<1x256xi32>
    %31 = arith.select %28, %30, %19 : vector<1x256xi1>, vector<1x256xi32>
    %c0_i32_14 = arith.constant 0 : i32
    %32 = vector.broadcast %c0_i32_14 : i32 to vector<1x256xi32>
    %33 = arith.cmpi ne, %31, %32 : vector<1x256xi32>
    %c15_i32 = arith.constant 15 : i32
    %34 = vector.broadcast %c15_i32 : i32 to vector<1x256xi32>
    %35 = arith.cmpi ne, %31, %34 : vector<1x256xi32>
    %cst = arith.constant 0.000000e+00 : f32
    %36 = vector.broadcast %cst : f32 to vector<1x256xf32>
    %cst_15 = arith.constant 0.000000e+00 : f32
    %37 = vector.broadcast %cst_15 : f32 to vector<1x256xf32>
    %cst_16 = arith.constant 0.000000e+00 : f32
    %38 = vector.broadcast %cst_16 : f32 to vector<1x256xf32>
    %c0_17 = arith.constant 0 : index
    %c111 = arith.constant 111 : index
    %39 = vector.load %arg7[%c0_17, %c111] : memref<4x512xf32, #tpu.memory_space<vmem>>, vector<4x256xf32>
    %cst_18 = arith.constant 0.000000e+00 : f32
    %40 = vector.shape_cast %33 : vector<1x256xi1> to vector<1x256xi1>
    %41 = vector.broadcast %40 : vector<1x256xi1> to vector<4x256xi1>
    %42 = vector.broadcast %cst_18 : f32 to vector<4x256xf32>
    %43 = arith.select %41, %39, %42 : vector<4x256xi1>, vector<4x256xf32>
    %c0_19 = arith.constant 0 : index
    %c0_20 = arith.constant 0 : index
    %44 = memref.load %arg5[%c0_19, %c0_20] : memref<3x36xf32, #tpu.memory_space<smem>>
    %45 = vector.extract_strided_slice %43 {offsets = [0, 0], sizes = [1, 256], strides = [1, 1]} : vector<4x256xf32> to vector<1x256xf32>
    %46 = vector.broadcast %44 : f32 to vector<1x256xf32>
    %47 = arith.mulf %46, %45 : vector<1x256xf32>
    %c0_21 = arith.constant 0 : index
    %c1 = arith.constant 1 : index
    %48 = memref.load %arg5[%c0_21, %c1] : memref<3x36xf32, #tpu.memory_space<smem>>
    %49 = vector.extract_strided_slice %43 {offsets = [1, 0], sizes = [1, 256], strides = [1, 1]} : vector<4x256xf32> to vector<1x256xf32>
    %50 = vector.broadcast %48 : f32 to vector<1x256xf32>
    %51 = arith.mulf %50, %49 : vector<1x256xf32>
    %52 = arith.addf %47, %51 : vector<1x256xf32>
    %c0_22 = arith.constant 0 : index
    %c2 = arith.constant 2 : index
    %53 = memref.load %arg5[%c0_22, %c2] : memref<3x36xf32, #tpu.memory_space<smem>>
    %54 = vector.extract_strided_slice %43 {offsets = [2, 0], sizes = [1, 256], strides = [1, 1]} : vector<4x256xf32> to vector<1x256xf32>
    %55 = vector.broadcast %53 : f32 to vector<1x256xf32>
    %56 = arith.mulf %55, %54 : vector<1x256xf32>
    %57 = arith.addf %52, %56 : vector<1x256xf32>
    %c0_23 = arith.constant 0 : index
    %c3 = arith.constant 3 : index
    %58 = memref.load %arg5[%c0_23, %c3] : memref<3x36xf32, #tpu.memory_space<smem>>
    %59 = vector.extract_strided_slice %43 {offsets = [3, 0], sizes = [1, 256], strides = [1, 1]} : vector<4x256xf32> to vector<1x256xf32>
    %60 = vector.broadcast %58 : f32 to vector<1x256xf32>
    %61 = arith.mulf %60, %59 : vector<1x256xf32>
    %62 = arith.addf %57, %61 : vector<1x256xf32>
    %63 = arith.addf %36, %62 : vector<1x256xf32>
    %c1_24 = arith.constant 1 : index
    %c0_25 = arith.constant 0 : index
    %64 = memref.load %arg5[%c1_24, %c0_25] : memref<3x36xf32, #tpu.memory_space<smem>>
    %65 = vector.extract_strided_slice %43 {offsets = [0, 0], sizes = [1, 256], strides = [1, 1]} : vector<4x256xf32> to vector<1x256xf32>
    %66 = vector.broadcast %64 : f32 to vector<1x256xf32>
    %67 = arith.mulf %66, %65 : vector<1x256xf32>
    %c1_26 = arith.constant 1 : index
    %c1_27 = arith.constant 1 : index
    %68 = memref.load %arg5[%c1_26, %c1_27] : memref<3x36xf32, #tpu.memory_space<smem>>
    %69 = vector.extract_strided_slice %43 {offsets = [1, 0], sizes = [1, 256], strides = [1, 1]} : vector<4x256xf32> to vector<1x256xf32>
    %70 = vector.broadcast %68 : f32 to vector<1x256xf32>
    %71 = arith.mulf %70, %69 : vector<1x256xf32>
    %72 = arith.addf %67, %71 : vector<1x256xf32>
    %c1_28 = arith.constant 1 : index
    %c2_29 = arith.constant 2 : index
    %73 = memref.load %arg5[%c1_28, %c2_29] : memref<3x36xf32, #tpu.memory_space<smem>>
    %74 = vector.extract_strided_slice %43 {offsets = [2, 0], sizes = [1, 256], strides = [1, 1]} : vector<4x256xf32> to vector<1x256xf32>
    %75 = vector.broadcast %73 : f32 to vector<1x256xf32>
    %76 = arith.mulf %75, %74 : vector<1x256xf32>
    %77 = arith.addf %72, %76 : vector<1x256xf32>
    %c1_30 = arith.constant 1 : index
    %c3_31 = arith.constant 3 : index
    %78 = memref.load %arg5[%c1_30, %c3_31] : memref<3x36xf32, #tpu.memory_space<smem>>
    %79 = vector.extract_strided_slice %43 {offsets = [3, 0], sizes = [1, 256], strides = [1, 1]} : vector<4x256xf32> to vector<1x256xf32>
    %80 = vector.broadcast %78 : f32 to vector<1x256xf32>
    %81 = arith.mulf %80, %79 : vector<1x256xf32>
    %82 = arith.addf %77, %81 : vector<1x256xf32>
    %83 = arith.addf %37, %82 : vector<1x256xf32>
    %c2_32 = arith.constant 2 : index
    %c0_33 = arith.constant 0 : index
    %84 = memref.load %arg5[%c2_32, %c0_33] : memref<3x36xf32, #tpu.memory_space<smem>>
    %85 = vector.extract_strided_slice %43 {offsets = [0, 0], sizes = [1, 256], strides = [1, 1]} : vector<4x256xf32> to vector<1x256xf32>
    %86 = vector.broadcast %84 : f32 to vector<1x256xf32>
    %87 = arith.mulf %86, %85 : vector<1x256xf32>
    %c2_34 = arith.constant 2 : index
    %c1_35 = arith.constant 1 : index
    %88 = memref.load %arg5[%c2_34, %c1_35] : memref<3x36xf32, #tpu.memory_space<smem>>
    %89 = vector.extract_strided_slice %43 {offsets = [1, 0], sizes = [1, 256], strides = [1, 1]} : vector<4x256xf32> to vector<1x256xf32>
    %90 = vector.broadcast %88 : f32 to vector<1x256xf32>
    %91 = arith.mulf %90, %89 : vector<1x256xf32>
    %92 = arith.addf %87, %91 : vector<1x256xf32>
    %c2_36 = arith.constant 2 : index
    %c2_37 = arith.constant 2 : index
    %93 = memref.load %arg5[%c2_36, %c2_37] : memref<3x36xf32, #tpu.memory_space<smem>>
    %94 = vector.extract_strided_slice %43 {offsets = [2, 0], sizes = [1, 256], strides = [1, 1]} : vector<4x256xf32> to vector<1x256xf32>
    %95 = vector.broadcast %93 : f32 to vector<1x256xf32>
    %96 = arith.mulf %95, %94 : vector<1x256xf32>
    %97 = arith.addf %92, %96 : vector<1x256xf32>
    %c2_38 = arith.constant 2 : index
    %c3_39 = arith.constant 3 : index
    %98 = memref.load %arg5[%c2_38, %c3_39] : memref<3x36xf32, #tpu.memory_space<smem>>
    %99 = vector.extract_strided_slice %43 {offsets = [3, 0], sizes = [1, 256], strides = [1, 1]} : vector<4x256xf32> to vector<1x256xf32>
    %100 = vector.broadcast %98 : f32 to vector<1x256xf32>
    %101 = arith.mulf %100, %99 : vector<1x256xf32>
    %102 = arith.addf %97, %101 : vector<1x256xf32>
    %103 = arith.addf %38, %102 : vector<1x256xf32>
    %c0_40 = arith.constant 0 : index
    %c112 = arith.constant 112 : index
    %104 = vector.load %arg7[%c0_40, %c112] : memref<4x512xf32, #tpu.memory_space<vmem>>, vector<4x256xf32>
    %c0_41 = arith.constant 0 : index
    %c4 = arith.constant 4 : index
    %105 = memref.load %arg5[%c0_41, %c4] : memref<3x36xf32, #tpu.memory_space<smem>>
    %106 = vector.extract_strided_slice %104 {offsets = [0, 0], sizes = [1, 256], strides = [1, 1]} : vector<4x256xf32> to vector<1x256xf32>
    %107 = vector.broadcast %105 : f32 to vector<1x256xf32>
    %108 = arith.mulf %107, %106 : vector<1x256xf32>
    %c0_42 = arith.constant 0 : index
    %c5 = arith.constant 5 : index
    %109 = memref.load %arg5[%c0_42, %c5] : memref<3x36xf32, #tpu.memory_space<smem>>
    %110 = vector.extract_strided_slice %104 {offsets = [1, 0], sizes = [1, 256], strides = [1, 1]} : vector<4x256xf32> to vector<1x256xf32>
    %111 = vector.broadcast %109 : f32 to vector<1x256xf32>
    %112 = arith.mulf %111, %110 : vector<1x256xf32>
    %113 = arith.addf %108, %112 : vector<1x256xf32>
    %c0_43 = arith.constant 0 : index
    %c6 = arith.constant 6 : index
    %114 = memref.load %arg5[%c0_43, %c6] : memref<3x36xf32, #tpu.memory_space<smem>>
    %115 = vector.extract_strided_slice %104 {offsets = [2, 0], sizes = [1, 256], strides = [1, 1]} : vector<4x256xf32> to vector<1x256xf32>
    %116 = vector.broadcast %114 : f32 to vector<1x256xf32>
    %117 = arith.mulf %116, %115 : vector<1x256xf32>
    %118 = arith.addf %113, %117 : vector<1x256xf32>
    %c0_44 = arith.constant 0 : index
    %c7 = arith.constant 7 : index
    %119 = memref.load %arg5[%c0_44, %c7] : memref<3x36xf32, #tpu.memory_space<smem>>
    %120 = vector.extract_strided_slice %104 {offsets = [3, 0], sizes = [1, 256], strides = [1, 1]} : vector<4x256xf32> to vector<1x256xf32>
    %121 = vector.broadcast %119 : f32 to vector<1x256xf32>
    %122 = arith.mulf %121, %120 : vector<1x256xf32>
    %123 = arith.addf %118, %122 : vector<1x256xf32>
    %124 = arith.addf %63, %123 : vector<1x256xf32>
    %c1_45 = arith.constant 1 : index
    %c4_46 = arith.constant 4 : index
    %125 = memref.load %arg5[%c1_45, %c4_46] : memref<3x36xf32, #tpu.memory_space<smem>>
    %126 = vector.extract_strided_slice %104 {offsets = [0, 0], sizes = [1, 256], strides = [1, 1]} : vector<4x256xf32> to vector<1x256xf32>
    %127 = vector.broadcast %125 : f32 to vector<1x256xf32>
    %128 = arith.mulf %127, %126 : vector<1x256xf32>
    %c1_47 = arith.constant 1 : index
    %c5_48 = arith.constant 5 : index
    %129 = memref.load %arg5[%c1_47, %c5_48] : memref<3x36xf32, #tpu.memory_space<smem>>
    %130 = vector.extract_strided_slice %104 {offsets = [1, 0], sizes = [1, 256], strides = [1, 1]} : vector<4x256xf32> to vector<1x256xf32>
    %131 = vector.broadcast %129 : f32 to vector<1x256xf32>
    %132 = arith.mulf %131, %130 : vector<1x256xf32>
    %133 = arith.addf %128, %132 : vector<1x256xf32>
    %c1_49 = arith.constant 1 : index
    %c6_50 = arith.constant 6 : index
    %134 = memref.load %arg5[%c1_49, %c6_50] : memref<3x36xf32, #tpu.memory_space<smem>>
    %135 = vector.extract_strided_slice %104 {offsets = [2, 0], sizes = [1, 256], strides = [1, 1]} : vector<4x256xf32> to vector<1x256xf32>
    %136 = vector.broadcast %134 : f32 to vector<1x256xf32>
    %137 = arith.mulf %136, %135 : vector<1x256xf32>
    %138 = arith.addf %133, %137 : vector<1x256xf32>
    %c1_51 = arith.constant 1 : index
    %c7_52 = arith.constant 7 : index
    %139 = memref.load %arg5[%c1_51, %c7_52] : memref<3x36xf32, #tpu.memory_space<smem>>
    %140 = vector.extract_strided_slice %104 {offsets = [3, 0], sizes = [1, 256], strides = [1, 1]} : vector<4x256xf32> to vector<1x256xf32>
    %141 = vector.broadcast %139 : f32 to vector<1x256xf32>
    %142 = arith.mulf %141, %140 : vector<1x256xf32>
    %143 = arith.addf %138, %142 : vector<1x256xf32>
    %144 = arith.addf %83, %143 : vector<1x256xf32>
    %c2_53 = arith.constant 2 : index
    %c4_54 = arith.constant 4 : index
    %145 = memref.load %arg5[%c2_53, %c4_54] : memref<3x36xf32, #tpu.memory_space<smem>>
    %146 = vector.extract_strided_slice %104 {offsets = [0, 0], sizes = [1, 256], strides = [1, 1]} : vector<4x256xf32> to vector<1x256xf32>
    %147 = vector.broadcast %145 : f32 to vector<1x256xf32>
    %148 = arith.mulf %147, %146 : vector<1x256xf32>
    %c2_55 = arith.constant 2 : index
    %c5_56 = arith.constant 5 : index
    %149 = memref.load %arg5[%c2_55, %c5_56] : memref<3x36xf32, #tpu.memory_space<smem>>
    %150 = vector.extract_strided_slice %104 {offsets = [1, 0], sizes = [1, 256], strides = [1, 1]} : vector<4x256xf32> to vector<1x256xf32>
    %151 = vector.broadcast %149 : f32 to vector<1x256xf32>
    %152 = arith.mulf %151, %150 : vector<1x256xf32>
    %153 = arith.addf %148, %152 : vector<1x256xf32>
    %c2_57 = arith.constant 2 : index
    %c6_58 = arith.constant 6 : index
    %154 = memref.load %arg5[%c2_57, %c6_58] : memref<3x36xf32, #tpu.memory_space<smem>>
    %155 = vector.extract_strided_slice %104 {offsets = [2, 0], sizes = [1, 256], strides = [1, 1]} : vector<4x256xf32> to vector<1x256xf32>
    %156 = vector.broadcast %154 : f32 to vector<1x256xf32>
    %157 = arith.mulf %156, %155 : vector<1x256xf32>
    %158 = arith.addf %153, %157 : vector<1x256xf32>
    %c2_59 = arith.constant 2 : index
    %c7_60 = arith.constant 7 : index
    %159 = memref.load %arg5[%c2_59, %c7_60] : memref<3x36xf32, #tpu.memory_space<smem>>
    %160 = vector.extract_strided_slice %104 {offsets = [3, 0], sizes = [1, 256], strides = [1, 1]} : vector<4x256xf32> to vector<1x256xf32>
    %161 = vector.broadcast %159 : f32 to vector<1x256xf32>
    %162 = arith.mulf %161, %160 : vector<1x256xf32>
    %163 = arith.addf %158, %162 : vector<1x256xf32>
    %164 = arith.addf %103, %163 : vector<1x256xf32>
    %c0_61 = arith.constant 0 : index
    %c113 = arith.constant 113 : index
    %165 = vector.load %arg7[%c0_61, %c113] : memref<4x512xf32, #tpu.memory_space<vmem>>, vector<4x256xf32>
    %cst_62 = arith.constant 0.000000e+00 : f32
    %166 = vector.shape_cast %35 : vector<1x256xi1> to vector<1x256xi1>
    %167 = vector.broadcast %166 : vector<1x256xi1> to vector<4x256xi1>
    %168 = vector.broadcast %cst_62 : f32 to vector<4x256xf32>
    %169 = arith.select %167, %165, %168 : vector<4x256xi1>, vector<4x256xf32>
    %c0_63 = arith.constant 0 : index
    %c8 = arith.constant 8 : index
    %170 = memref.load %arg5[%c0_63, %c8] : memref<3x36xf32, #tpu.memory_space<smem>>
    %171 = vector.extract_strided_slice %169 {offsets = [0, 0], sizes = [1, 256], strides = [1, 1]} : vector<4x256xf32> to vector<1x256xf32>
    %172 = vector.broadcast %170 : f32 to vector<1x256xf32>
    %173 = arith.mulf %172, %171 : vector<1x256xf32>
    %c0_64 = arith.constant 0 : index
    %c9 = arith.constant 9 : index
    %174 = memref.load %arg5[%c0_64, %c9] : memref<3x36xf32, #tpu.memory_space<smem>>
    %175 = vector.extract_strided_slice %169 {offsets = [1, 0], sizes = [1, 256], strides = [1, 1]} : vector<4x256xf32> to vector<1x256xf32>
    %176 = vector.broadcast %174 : f32 to vector<1x256xf32>
    %177 = arith.mulf %176, %175 : vector<1x256xf32>
    %178 = arith.addf %173, %177 : vector<1x256xf32>
    %c0_65 = arith.constant 0 : index
    %c10 = arith.constant 10 : index
    %179 = memref.load %arg5[%c0_65, %c10] : memref<3x36xf32, #tpu.memory_space<smem>>
    %180 = vector.extract_strided_slice %169 {offsets = [2, 0], sizes = [1, 256], strides = [1, 1]} : vector<4x256xf32> to vector<1x256xf32>
    %181 = vector.broadcast %179 : f32 to vector<1x256xf32>
    %182 = arith.mulf %181, %180 : vector<1x256xf32>
    %183 = arith.addf %178, %182 : vector<1x256xf32>
    %c0_66 = arith.constant 0 : index
    %c11 = arith.constant 11 : index
    %184 = memref.load %arg5[%c0_66, %c11] : memref<3x36xf32, #tpu.memory_space<smem>>
    %185 = vector.extract_strided_slice %169 {offsets = [3, 0], sizes = [1, 256], strides = [1, 1]} : vector<4x256xf32> to vector<1x256xf32>
    %186 = vector.broadcast %184 : f32 to vector<1x256xf32>
    %187 = arith.mulf %186, %185 : vector<1x256xf32>
    %188 = arith.addf %183, %187 : vector<1x256xf32>
    %189 = arith.addf %124, %188 : vector<1x256xf32>
    %c1_67 = arith.constant 1 : index
    %c8_68 = arith.constant 8 : index
    %190 = memref.load %arg5[%c1_67, %c8_68] : memref<3x36xf32, #tpu.memory_space<smem>>
    %191 = vector.extract_strided_slice %169 {offsets = [0, 0], sizes = [1, 256], strides = [1, 1]} : vector<4x256xf32> to vector<1x256xf32>
    %192 = vector.broadcast %190 : f32 to vector<1x256xf32>
    %193 = arith.mulf %192, %191 : vector<1x256xf32>
    %c1_69 = arith.constant 1 : index
    %c9_70 = arith.constant 9 : index
    %194 = memref.load %arg5[%c1_69, %c9_70] : memref<3x36xf32, #tpu.memory_space<smem>>
    %195 = vector.extract_strided_slice %169 {offsets = [1, 0], sizes = [1, 256], strides = [1, 1]} : vector<4x256xf32> to vector<1x256xf32>
    %196 = vector.broadcast %194 : f32 to vector<1x256xf32>
    %197 = arith.mulf %196, %195 : vector<1x256xf32>
    %198 = arith.addf %193, %197 : vector<1x256xf32>
    %c1_71 = arith.constant 1 : index
    %c10_72 = arith.constant 10 : index
    %199 = memref.load %arg5[%c1_71, %c10_72] : memref<3x36xf32, #tpu.memory_space<smem>>
    %200 = vector.extract_strided_slice %169 {offsets = [2, 0], sizes = [1, 256], strides = [1, 1]} : vector<4x256xf32> to vector<1x256xf32>
    %201 = vector.broadcast %199 : f32 to vector<1x256xf32>
    %202 = arith.mulf %201, %200 : vector<1x256xf32>
    %203 = arith.addf %198, %202 : vector<1x256xf32>
    %c1_73 = arith.constant 1 : index
    %c11_74 = arith.constant 11 : index
    %204 = memref.load %arg5[%c1_73, %c11_74] : memref<3x36xf32, #tpu.memory_space<smem>>
    %205 = vector.extract_strided_slice %169 {offsets = [3, 0], sizes = [1, 256], strides = [1, 1]} : vector<4x256xf32> to vector<1x256xf32>
    %206 = vector.broadcast %204 : f32 to vector<1x256xf32>
    %207 = arith.mulf %206, %205 : vector<1x256xf32>
    %208 = arith.addf %203, %207 : vector<1x256xf32>
    %209 = arith.addf %144, %208 : vector<1x256xf32>
    %c2_75 = arith.constant 2 : index
    %c8_76 = arith.constant 8 : index
    %210 = memref.load %arg5[%c2_75, %c8_76] : memref<3x36xf32, #tpu.memory_space<smem>>
    %211 = vector.extract_strided_slice %169 {offsets = [0, 0], sizes = [1, 256], strides = [1, 1]} : vector<4x256xf32> to vector<1x256xf32>
    %212 = vector.broadcast %210 : f32 to vector<1x256xf32>
    %213 = arith.mulf %212, %211 : vector<1x256xf32>
    %c2_77 = arith.constant 2 : index
    %c9_78 = arith.constant 9 : index
    %214 = memref.load %arg5[%c2_77, %c9_78] : memref<3x36xf32, #tpu.memory_space<smem>>
    %215 = vector.extract_strided_slice %169 {offsets = [1, 0], sizes = [1, 256], strides = [1, 1]} : vector<4x256xf32> to vector<1x256xf32>
    %216 = vector.broadcast %214 : f32 to vector<1x256xf32>
    %217 = arith.mulf %216, %215 : vector<1x256xf32>
    %218 = arith.addf %213, %217 : vector<1x256xf32>
    %c2_79 = arith.constant 2 : index
    %c10_80 = arith.constant 10 : index
    %219 = memref.load %arg5[%c2_79, %c10_80] : memref<3x36xf32, #tpu.memory_space<smem>>
    %220 = vector.extract_strided_slice %169 {offsets = [2, 0], sizes = [1, 256], strides = [1, 1]} : vector<4x256xf32> to vector<1x256xf32>
    %221 = vector.broadcast %219 : f32 to vector<1x256xf32>
    %222 = arith.mulf %221, %220 : vector<1x256xf32>
    %223 = arith.addf %218, %222 : vector<1x256xf32>
    %c2_81 = arith.constant 2 : index
    %c11_82 = arith.constant 11 : index
    %224 = memref.load %arg5[%c2_81, %c11_82] : memref<3x36xf32, #tpu.memory_space<smem>>
    %225 = vector.extract_strided_slice %169 {offsets = [3, 0], sizes = [1, 256], strides = [1, 1]} : vector<4x256xf32> to vector<1x256xf32>
    %226 = vector.broadcast %224 : f32 to vector<1x256xf32>
    %227 = arith.mulf %226, %225 : vector<1x256xf32>
    %228 = arith.addf %223, %227 : vector<1x256xf32>
    %229 = arith.addf %164, %228 : vector<1x256xf32>
    %c0_83 = arith.constant 0 : index
    %c127 = arith.constant 127 : index
    %230 = vector.load %arg7[%c0_83, %c127] : memref<4x512xf32, #tpu.memory_space<vmem>>, vector<4x256xf32>
    %cst_84 = arith.constant 0.000000e+00 : f32
    %231 = vector.shape_cast %33 : vector<1x256xi1> to vector<1x256xi1>
    %232 = vector.broadcast %231 : vector<1x256xi1> to vector<4x256xi1>
    %233 = vector.broadcast %cst_84 : f32 to vector<4x256xf32>
    %234 = arith.select %232, %230, %233 : vector<4x256xi1>, vector<4x256xf32>
    %c0_85 = arith.constant 0 : index
    %c12 = arith.constant 12 : index
    %235 = memref.load %arg5[%c0_85, %c12] : memref<3x36xf32, #tpu.memory_space<smem>>
    %236 = vector.extract_strided_slice %234 {offsets = [0, 0], sizes = [1, 256], strides = [1, 1]} : vector<4x256xf32> to vector<1x256xf32>
    %237 = vector.broadcast %235 : f32 to vector<1x256xf32>
    %238 = arith.mulf %237, %236 : vector<1x256xf32>
    %c0_86 = arith.constant 0 : index
    %c13 = arith.constant 13 : index
    %239 = memref.load %arg5[%c0_86, %c13] : memref<3x36xf32, #tpu.memory_space<smem>>
    %240 = vector.extract_strided_slice %234 {offsets = [1, 0], sizes = [1, 256], strides = [1, 1]} : vector<4x256xf32> to vector<1x256xf32>
    %241 = vector.broadcast %239 : f32 to vector<1x256xf32>
    %242 = arith.mulf %241, %240 : vector<1x256xf32>
    %243 = arith.addf %238, %242 : vector<1x256xf32>
    %c0_87 = arith.constant 0 : index
    %c14 = arith.constant 14 : index
    %244 = memref.load %arg5[%c0_87, %c14] : memref<3x36xf32, #tpu.memory_space<smem>>
    %245 = vector.extract_strided_slice %234 {offsets = [2, 0], sizes = [1, 256], strides = [1, 1]} : vector<4x256xf32> to vector<1x256xf32>
    %246 = vector.broadcast %244 : f32 to vector<1x256xf32>
    %247 = arith.mulf %246, %245 : vector<1x256xf32>
    %248 = arith.addf %243, %247 : vector<1x256xf32>
    %c0_88 = arith.constant 0 : index
    %c15 = arith.constant 15 : index
    %249 = memref.load %arg5[%c0_88, %c15] : memref<3x36xf32, #tpu.memory_space<smem>>
    %250 = vector.extract_strided_slice %234 {offsets = [3, 0], sizes = [1, 256], strides = [1, 1]} : vector<4x256xf32> to vector<1x256xf32>
    %251 = vector.broadcast %249 : f32 to vector<1x256xf32>
    %252 = arith.mulf %251, %250 : vector<1x256xf32>
    %253 = arith.addf %248, %252 : vector<1x256xf32>
    %254 = arith.addf %189, %253 : vector<1x256xf32>
    %c1_89 = arith.constant 1 : index
    %c12_90 = arith.constant 12 : index
    %255 = memref.load %arg5[%c1_89, %c12_90] : memref<3x36xf32, #tpu.memory_space<smem>>
    %256 = vector.extract_strided_slice %234 {offsets = [0, 0], sizes = [1, 256], strides = [1, 1]} : vector<4x256xf32> to vector<1x256xf32>
    %257 = vector.broadcast %255 : f32 to vector<1x256xf32>
    %258 = arith.mulf %257, %256 : vector<1x256xf32>
    %c1_91 = arith.constant 1 : index
    %c13_92 = arith.constant 13 : index
    %259 = memref.load %arg5[%c1_91, %c13_92] : memref<3x36xf32, #tpu.memory_space<smem>>
    %260 = vector.extract_strided_slice %234 {offsets = [1, 0], sizes = [1, 256], strides = [1, 1]} : vector<4x256xf32> to vector<1x256xf32>
    %261 = vector.broadcast %259 : f32 to vector<1x256xf32>
    %262 = arith.mulf %261, %260 : vector<1x256xf32>
    %263 = arith.addf %258, %262 : vector<1x256xf32>
    %c1_93 = arith.constant 1 : index
    %c14_94 = arith.constant 14 : index
    %264 = memref.load %arg5[%c1_93, %c14_94] : memref<3x36xf32, #tpu.memory_space<smem>>
    %265 = vector.extract_strided_slice %234 {offsets = [2, 0], sizes = [1, 256], strides = [1, 1]} : vector<4x256xf32> to vector<1x256xf32>
    %266 = vector.broadcast %264 : f32 to vector<1x256xf32>
    %267 = arith.mulf %266, %265 : vector<1x256xf32>
    %268 = arith.addf %263, %267 : vector<1x256xf32>
    %c1_95 = arith.constant 1 : index
    %c15_96 = arith.constant 15 : index
    %269 = memref.load %arg5[%c1_95, %c15_96] : memref<3x36xf32, #tpu.memory_space<smem>>
    %270 = vector.extract_strided_slice %234 {offsets = [3, 0], sizes = [1, 256], strides = [1, 1]} : vector<4x256xf32> to vector<1x256xf32>
    %271 = vector.broadcast %269 : f32 to vector<1x256xf32>
    %272 = arith.mulf %271, %270 : vector<1x256xf32>
    %273 = arith.addf %268, %272 : vector<1x256xf32>
    %274 = arith.addf %209, %273 : vector<1x256xf32>
    %c2_97 = arith.constant 2 : index
    %c12_98 = arith.constant 12 : index
    %275 = memref.load %arg5[%c2_97, %c12_98] : memref<3x36xf32, #tpu.memory_space<smem>>
    %276 = vector.extract_strided_slice %234 {offsets = [0, 0], sizes = [1, 256], strides = [1, 1]} : vector<4x256xf32> to vector<1x256xf32>
    %277 = vector.broadcast %275 : f32 to vector<1x256xf32>
    %278 = arith.mulf %277, %276 : vector<1x256xf32>
    %c2_99 = arith.constant 2 : index
    %c13_100 = arith.constant 13 : index
    %279 = memref.load %arg5[%c2_99, %c13_100] : memref<3x36xf32, #tpu.memory_space<smem>>
    %280 = vector.extract_strided_slice %234 {offsets = [1, 0], sizes = [1, 256], strides = [1, 1]} : vector<4x256xf32> to vector<1x256xf32>
    %281 = vector.broadcast %279 : f32 to vector<1x256xf32>
    %282 = arith.mulf %281, %280 : vector<1x256xf32>
    %283 = arith.addf %278, %282 : vector<1x256xf32>
    %c2_101 = arith.constant 2 : index
    %c14_102 = arith.constant 14 : index
    %284 = memref.load %arg5[%c2_101, %c14_102] : memref<3x36xf32, #tpu.memory_space<smem>>
    %285 = vector.extract_strided_slice %234 {offsets = [2, 0], sizes = [1, 256], strides = [1, 1]} : vector<4x256xf32> to vector<1x256xf32>
    %286 = vector.broadcast %284 : f32 to vector<1x256xf32>
    %287 = arith.mulf %286, %285 : vector<1x256xf32>
    %288 = arith.addf %283, %287 : vector<1x256xf32>
    %c2_103 = arith.constant 2 : index
    %c15_104 = arith.constant 15 : index
    %289 = memref.load %arg5[%c2_103, %c15_104] : memref<3x36xf32, #tpu.memory_space<smem>>
    %290 = vector.extract_strided_slice %234 {offsets = [3, 0], sizes = [1, 256], strides = [1, 1]} : vector<4x256xf32> to vector<1x256xf32>
    %291 = vector.broadcast %289 : f32 to vector<1x256xf32>
    %292 = arith.mulf %291, %290 : vector<1x256xf32>
    %293 = arith.addf %288, %292 : vector<1x256xf32>
    %294 = arith.addf %229, %293 : vector<1x256xf32>
    %c0_105 = arith.constant 0 : index
    %c128_106 = arith.constant 128 : index
    %295 = vector.load %arg7[%c0_105, %c128_106] : memref<4x512xf32, #tpu.memory_space<vmem>>, vector<4x256xf32>
    %c0_107 = arith.constant 0 : index
    %c16 = arith.constant 16 : index
    %296 = memref.load %arg5[%c0_107, %c16] : memref<3x36xf32, #tpu.memory_space<smem>>
    %297 = vector.extract_strided_slice %295 {offsets = [0, 0], sizes = [1, 256], strides = [1, 1]} : vector<4x256xf32> to vector<1x256xf32>
    %298 = vector.broadcast %296 : f32 to vector<1x256xf32>
    %299 = arith.mulf %298, %297 : vector<1x256xf32>
    %c0_108 = arith.constant 0 : index
    %c17 = arith.constant 17 : index
    %300 = memref.load %arg5[%c0_108, %c17] : memref<3x36xf32, #tpu.memory_space<smem>>
    %301 = vector.extract_strided_slice %295 {offsets = [1, 0], sizes = [1, 256], strides = [1, 1]} : vector<4x256xf32> to vector<1x256xf32>
    %302 = vector.broadcast %300 : f32 to vector<1x256xf32>
    %303 = arith.mulf %302, %301 : vector<1x256xf32>
    %304 = arith.addf %299, %303 : vector<1x256xf32>
    %c0_109 = arith.constant 0 : index
    %c18 = arith.constant 18 : index
    %305 = memref.load %arg5[%c0_109, %c18] : memref<3x36xf32, #tpu.memory_space<smem>>
    %306 = vector.extract_strided_slice %295 {offsets = [2, 0], sizes = [1, 256], strides = [1, 1]} : vector<4x256xf32> to vector<1x256xf32>
    %307 = vector.broadcast %305 : f32 to vector<1x256xf32>
    %308 = arith.mulf %307, %306 : vector<1x256xf32>
    %309 = arith.addf %304, %308 : vector<1x256xf32>
    %c0_110 = arith.constant 0 : index
    %c19 = arith.constant 19 : index
    %310 = memref.load %arg5[%c0_110, %c19] : memref<3x36xf32, #tpu.memory_space<smem>>
    %311 = vector.extract_strided_slice %295 {offsets = [3, 0], sizes = [1, 256], strides = [1, 1]} : vector<4x256xf32> to vector<1x256xf32>
    %312 = vector.broadcast %310 : f32 to vector<1x256xf32>
    %313 = arith.mulf %312, %311 : vector<1x256xf32>
    %314 = arith.addf %309, %313 : vector<1x256xf32>
    %315 = arith.addf %254, %314 : vector<1x256xf32>
    %c1_111 = arith.constant 1 : index
    %c16_112 = arith.constant 16 : index
    %316 = memref.load %arg5[%c1_111, %c16_112] : memref<3x36xf32, #tpu.memory_space<smem>>
    %317 = vector.extract_strided_slice %295 {offsets = [0, 0], sizes = [1, 256], strides = [1, 1]} : vector<4x256xf32> to vector<1x256xf32>
    %318 = vector.broadcast %316 : f32 to vector<1x256xf32>
    %319 = arith.mulf %318, %317 : vector<1x256xf32>
    %c1_113 = arith.constant 1 : index
    %c17_114 = arith.constant 17 : index
    %320 = memref.load %arg5[%c1_113, %c17_114] : memref<3x36xf32, #tpu.memory_space<smem>>
    %321 = vector.extract_strided_slice %295 {offsets = [1, 0], sizes = [1, 256], strides = [1, 1]} : vector<4x256xf32> to vector<1x256xf32>
    %322 = vector.broadcast %320 : f32 to vector<1x256xf32>
    %323 = arith.mulf %322, %321 : vector<1x256xf32>
    %324 = arith.addf %319, %323 : vector<1x256xf32>
    %c1_115 = arith.constant 1 : index
    %c18_116 = arith.constant 18 : index
    %325 = memref.load %arg5[%c1_115, %c18_116] : memref<3x36xf32, #tpu.memory_space<smem>>
    %326 = vector.extract_strided_slice %295 {offsets = [2, 0], sizes = [1, 256], strides = [1, 1]} : vector<4x256xf32> to vector<1x256xf32>
    %327 = vector.broadcast %325 : f32 to vector<1x256xf32>
    %328 = arith.mulf %327, %326 : vector<1x256xf32>
    %329 = arith.addf %324, %328 : vector<1x256xf32>
    %c1_117 = arith.constant 1 : index
    %c19_118 = arith.constant 19 : index
    %330 = memref.load %arg5[%c1_117, %c19_118] : memref<3x36xf32, #tpu.memory_space<smem>>
    %331 = vector.extract_strided_slice %295 {offsets = [3, 0], sizes = [1, 256], strides = [1, 1]} : vector<4x256xf32> to vector<1x256xf32>
    %332 = vector.broadcast %330 : f32 to vector<1x256xf32>
    %333 = arith.mulf %332, %331 : vector<1x256xf32>
    %334 = arith.addf %329, %333 : vector<1x256xf32>
    %335 = arith.addf %274, %334 : vector<1x256xf32>
    %c2_119 = arith.constant 2 : index
    %c16_120 = arith.constant 16 : index
    %336 = memref.load %arg5[%c2_119, %c16_120] : memref<3x36xf32, #tpu.memory_space<smem>>
    %337 = vector.extract_strided_slice %295 {offsets = [0, 0], sizes = [1, 256], strides = [1, 1]} : vector<4x256xf32> to vector<1x256xf32>
    %338 = vector.broadcast %336 : f32 to vector<1x256xf32>
    %339 = arith.mulf %338, %337 : vector<1x256xf32>
    %c2_121 = arith.constant 2 : index
    %c17_122 = arith.constant 17 : index
    %340 = memref.load %arg5[%c2_121, %c17_122] : memref<3x36xf32, #tpu.memory_space<smem>>
    %341 = vector.extract_strided_slice %295 {offsets = [1, 0], sizes = [1, 256], strides = [1, 1]} : vector<4x256xf32> to vector<1x256xf32>
    %342 = vector.broadcast %340 : f32 to vector<1x256xf32>
    %343 = arith.mulf %342, %341 : vector<1x256xf32>
    %344 = arith.addf %339, %343 : vector<1x256xf32>
    %c2_123 = arith.constant 2 : index
    %c18_124 = arith.constant 18 : index
    %345 = memref.load %arg5[%c2_123, %c18_124] : memref<3x36xf32, #tpu.memory_space<smem>>
    %346 = vector.extract_strided_slice %295 {offsets = [2, 0], sizes = [1, 256], strides = [1, 1]} : vector<4x256xf32> to vector<1x256xf32>
    %347 = vector.broadcast %345 : f32 to vector<1x256xf32>
    %348 = arith.mulf %347, %346 : vector<1x256xf32>
    %349 = arith.addf %344, %348 : vector<1x256xf32>
    %c2_125 = arith.constant 2 : index
    %c19_126 = arith.constant 19 : index
    %350 = memref.load %arg5[%c2_125, %c19_126] : memref<3x36xf32, #tpu.memory_space<smem>>
    %351 = vector.extract_strided_slice %295 {offsets = [3, 0], sizes = [1, 256], strides = [1, 1]} : vector<4x256xf32> to vector<1x256xf32>
    %352 = vector.broadcast %350 : f32 to vector<1x256xf32>
    %353 = arith.mulf %352, %351 : vector<1x256xf32>
    %354 = arith.addf %349, %353 : vector<1x256xf32>
    %355 = arith.addf %294, %354 : vector<1x256xf32>
    %c0_127 = arith.constant 0 : index
    %c129 = arith.constant 129 : index
    %356 = vector.load %arg7[%c0_127, %c129] : memref<4x512xf32, #tpu.memory_space<vmem>>, vector<4x256xf32>
    %cst_128 = arith.constant 0.000000e+00 : f32
    %357 = vector.shape_cast %35 : vector<1x256xi1> to vector<1x256xi1>
    %358 = vector.broadcast %357 : vector<1x256xi1> to vector<4x256xi1>
    %359 = vector.broadcast %cst_128 : f32 to vector<4x256xf32>
    %360 = arith.select %358, %356, %359 : vector<4x256xi1>, vector<4x256xf32>
    %c0_129 = arith.constant 0 : index
    %c20 = arith.constant 20 : index
    %361 = memref.load %arg5[%c0_129, %c20] : memref<3x36xf32, #tpu.memory_space<smem>>
    %362 = vector.extract_strided_slice %360 {offsets = [0, 0], sizes = [1, 256], strides = [1, 1]} : vector<4x256xf32> to vector<1x256xf32>
    %363 = vector.broadcast %361 : f32 to vector<1x256xf32>
    %364 = arith.mulf %363, %362 : vector<1x256xf32>
    %c0_130 = arith.constant 0 : index
    %c21 = arith.constant 21 : index
    %365 = memref.load %arg5[%c0_130, %c21] : memref<3x36xf32, #tpu.memory_space<smem>>
    %366 = vector.extract_strided_slice %360 {offsets = [1, 0], sizes = [1, 256], strides = [1, 1]} : vector<4x256xf32> to vector<1x256xf32>
    %367 = vector.broadcast %365 : f32 to vector<1x256xf32>
    %368 = arith.mulf %367, %366 : vector<1x256xf32>
    %369 = arith.addf %364, %368 : vector<1x256xf32>
    %c0_131 = arith.constant 0 : index
    %c22 = arith.constant 22 : index
    %370 = memref.load %arg5[%c0_131, %c22] : memref<3x36xf32, #tpu.memory_space<smem>>
    %371 = vector.extract_strided_slice %360 {offsets = [2, 0], sizes = [1, 256], strides = [1, 1]} : vector<4x256xf32> to vector<1x256xf32>
    %372 = vector.broadcast %370 : f32 to vector<1x256xf32>
    %373 = arith.mulf %372, %371 : vector<1x256xf32>
    %374 = arith.addf %369, %373 : vector<1x256xf32>
    %c0_132 = arith.constant 0 : index
    %c23 = arith.constant 23 : index
    %375 = memref.load %arg5[%c0_132, %c23] : memref<3x36xf32, #tpu.memory_space<smem>>
    %376 = vector.extract_strided_slice %360 {offsets = [3, 0], sizes = [1, 256], strides = [1, 1]} : vector<4x256xf32> to vector<1x256xf32>
    %377 = vector.broadcast %375 : f32 to vector<1x256xf32>
    %378 = arith.mulf %377, %376 : vector<1x256xf32>
    %379 = arith.addf %374, %378 : vector<1x256xf32>
    %380 = arith.addf %315, %379 : vector<1x256xf32>
    %c1_133 = arith.constant 1 : index
    %c20_134 = arith.constant 20 : index
    %381 = memref.load %arg5[%c1_133, %c20_134] : memref<3x36xf32, #tpu.memory_space<smem>>
    %382 = vector.extract_strided_slice %360 {offsets = [0, 0], sizes = [1, 256], strides = [1, 1]} : vector<4x256xf32> to vector<1x256xf32>
    %383 = vector.broadcast %381 : f32 to vector<1x256xf32>
    %384 = arith.mulf %383, %382 : vector<1x256xf32>
    %c1_135 = arith.constant 1 : index
    %c21_136 = arith.constant 21 : index
    %385 = memref.load %arg5[%c1_135, %c21_136] : memref<3x36xf32, #tpu.memory_space<smem>>
    %386 = vector.extract_strided_slice %360 {offsets = [1, 0], sizes = [1, 256], strides = [1, 1]} : vector<4x256xf32> to vector<1x256xf32>
    %387 = vector.broadcast %385 : f32 to vector<1x256xf32>
    %388 = arith.mulf %387, %386 : vector<1x256xf32>
    %389 = arith.addf %384, %388 : vector<1x256xf32>
    %c1_137 = arith.constant 1 : index
    %c22_138 = arith.constant 22 : index
    %390 = memref.load %arg5[%c1_137, %c22_138] : memref<3x36xf32, #tpu.memory_space<smem>>
    %391 = vector.extract_strided_slice %360 {offsets = [2, 0], sizes = [1, 256], strides = [1, 1]} : vector<4x256xf32> to vector<1x256xf32>
    %392 = vector.broadcast %390 : f32 to vector<1x256xf32>
    %393 = arith.mulf %392, %391 : vector<1x256xf32>
    %394 = arith.addf %389, %393 : vector<1x256xf32>
    %c1_139 = arith.constant 1 : index
    %c23_140 = arith.constant 23 : index
    %395 = memref.load %arg5[%c1_139, %c23_140] : memref<3x36xf32, #tpu.memory_space<smem>>
    %396 = vector.extract_strided_slice %360 {offsets = [3, 0], sizes = [1, 256], strides = [1, 1]} : vector<4x256xf32> to vector<1x256xf32>
    %397 = vector.broadcast %395 : f32 to vector<1x256xf32>
    %398 = arith.mulf %397, %396 : vector<1x256xf32>
    %399 = arith.addf %394, %398 : vector<1x256xf32>
    %400 = arith.addf %335, %399 : vector<1x256xf32>
    %c2_141 = arith.constant 2 : index
    %c20_142 = arith.constant 20 : index
    %401 = memref.load %arg5[%c2_141, %c20_142] : memref<3x36xf32, #tpu.memory_space<smem>>
    %402 = vector.extract_strided_slice %360 {offsets = [0, 0], sizes = [1, 256], strides = [1, 1]} : vector<4x256xf32> to vector<1x256xf32>
    %403 = vector.broadcast %401 : f32 to vector<1x256xf32>
    %404 = arith.mulf %403, %402 : vector<1x256xf32>
    %c2_143 = arith.constant 2 : index
    %c21_144 = arith.constant 21 : index
    %405 = memref.load %arg5[%c2_143, %c21_144] : memref<3x36xf32, #tpu.memory_space<smem>>
    %406 = vector.extract_strided_slice %360 {offsets = [1, 0], sizes = [1, 256], strides = [1, 1]} : vector<4x256xf32> to vector<1x256xf32>
    %407 = vector.broadcast %405 : f32 to vector<1x256xf32>
    %408 = arith.mulf %407, %406 : vector<1x256xf32>
    %409 = arith.addf %404, %408 : vector<1x256xf32>
    %c2_145 = arith.constant 2 : index
    %c22_146 = arith.constant 22 : index
    %410 = memref.load %arg5[%c2_145, %c22_146] : memref<3x36xf32, #tpu.memory_space<smem>>
    %411 = vector.extract_strided_slice %360 {offsets = [2, 0], sizes = [1, 256], strides = [1, 1]} : vector<4x256xf32> to vector<1x256xf32>
    %412 = vector.broadcast %410 : f32 to vector<1x256xf32>
    %413 = arith.mulf %412, %411 : vector<1x256xf32>
    %414 = arith.addf %409, %413 : vector<1x256xf32>
    %c2_147 = arith.constant 2 : index
    %c23_148 = arith.constant 23 : index
    %415 = memref.load %arg5[%c2_147, %c23_148] : memref<3x36xf32, #tpu.memory_space<smem>>
    %416 = vector.extract_strided_slice %360 {offsets = [3, 0], sizes = [1, 256], strides = [1, 1]} : vector<4x256xf32> to vector<1x256xf32>
    %417 = vector.broadcast %415 : f32 to vector<1x256xf32>
    %418 = arith.mulf %417, %416 : vector<1x256xf32>
    %419 = arith.addf %414, %418 : vector<1x256xf32>
    %420 = arith.addf %355, %419 : vector<1x256xf32>
    %c0_149 = arith.constant 0 : index
    %c143 = arith.constant 143 : index
    %421 = vector.load %arg7[%c0_149, %c143] : memref<4x512xf32, #tpu.memory_space<vmem>>, vector<4x256xf32>
    %cst_150 = arith.constant 0.000000e+00 : f32
    %422 = vector.shape_cast %33 : vector<1x256xi1> to vector<1x256xi1>
    %423 = vector.broadcast %422 : vector<1x256xi1> to vector<4x256xi1>
    %424 = vector.broadcast %cst_150 : f32 to vector<4x256xf32>
    %425 = arith.select %423, %421, %424 : vector<4x256xi1>, vector<4x256xf32>
    %c0_151 = arith.constant 0 : index
    %c24 = arith.constant 24 : index
    %426 = memref.load %arg5[%c0_151, %c24] : memref<3x36xf32, #tpu.memory_space<smem>>
    %427 = vector.extract_strided_slice %425 {offsets = [0, 0], sizes = [1, 256], strides = [1, 1]} : vector<4x256xf32> to vector<1x256xf32>
    %428 = vector.broadcast %426 : f32 to vector<1x256xf32>
    %429 = arith.mulf %428, %427 : vector<1x256xf32>
    %c0_152 = arith.constant 0 : index
    %c25 = arith.constant 25 : index
    %430 = memref.load %arg5[%c0_152, %c25] : memref<3x36xf32, #tpu.memory_space<smem>>
    %431 = vector.extract_strided_slice %425 {offsets = [1, 0], sizes = [1, 256], strides = [1, 1]} : vector<4x256xf32> to vector<1x256xf32>
    %432 = vector.broadcast %430 : f32 to vector<1x256xf32>
    %433 = arith.mulf %432, %431 : vector<1x256xf32>
    %434 = arith.addf %429, %433 : vector<1x256xf32>
    %c0_153 = arith.constant 0 : index
    %c26 = arith.constant 26 : index
    %435 = memref.load %arg5[%c0_153, %c26] : memref<3x36xf32, #tpu.memory_space<smem>>
    %436 = vector.extract_strided_slice %425 {offsets = [2, 0], sizes = [1, 256], strides = [1, 1]} : vector<4x256xf32> to vector<1x256xf32>
    %437 = vector.broadcast %435 : f32 to vector<1x256xf32>
    %438 = arith.mulf %437, %436 : vector<1x256xf32>
    %439 = arith.addf %434, %438 : vector<1x256xf32>
    %c0_154 = arith.constant 0 : index
    %c27 = arith.constant 27 : index
    %440 = memref.load %arg5[%c0_154, %c27] : memref<3x36xf32, #tpu.memory_space<smem>>
    %441 = vector.extract_strided_slice %425 {offsets = [3, 0], sizes = [1, 256], strides = [1, 1]} : vector<4x256xf32> to vector<1x256xf32>
    %442 = vector.broadcast %440 : f32 to vector<1x256xf32>
    %443 = arith.mulf %442, %441 : vector<1x256xf32>
    %444 = arith.addf %439, %443 : vector<1x256xf32>
    %445 = arith.addf %380, %444 : vector<1x256xf32>
    %c1_155 = arith.constant 1 : index
    %c24_156 = arith.constant 24 : index
    %446 = memref.load %arg5[%c1_155, %c24_156] : memref<3x36xf32, #tpu.memory_space<smem>>
    %447 = vector.extract_strided_slice %425 {offsets = [0, 0], sizes = [1, 256], strides = [1, 1]} : vector<4x256xf32> to vector<1x256xf32>
    %448 = vector.broadcast %446 : f32 to vector<1x256xf32>
    %449 = arith.mulf %448, %447 : vector<1x256xf32>
    %c1_157 = arith.constant 1 : index
    %c25_158 = arith.constant 25 : index
    %450 = memref.load %arg5[%c1_157, %c25_158] : memref<3x36xf32, #tpu.memory_space<smem>>
    %451 = vector.extract_strided_slice %425 {offsets = [1, 0], sizes = [1, 256], strides = [1, 1]} : vector<4x256xf32> to vector<1x256xf32>
    %452 = vector.broadcast %450 : f32 to vector<1x256xf32>
    %453 = arith.mulf %452, %451 : vector<1x256xf32>
    %454 = arith.addf %449, %453 : vector<1x256xf32>
    %c1_159 = arith.constant 1 : index
    %c26_160 = arith.constant 26 : index
    %455 = memref.load %arg5[%c1_159, %c26_160] : memref<3x36xf32, #tpu.memory_space<smem>>
    %456 = vector.extract_strided_slice %425 {offsets = [2, 0], sizes = [1, 256], strides = [1, 1]} : vector<4x256xf32> to vector<1x256xf32>
    %457 = vector.broadcast %455 : f32 to vector<1x256xf32>
    %458 = arith.mulf %457, %456 : vector<1x256xf32>
    %459 = arith.addf %454, %458 : vector<1x256xf32>
    %c1_161 = arith.constant 1 : index
    %c27_162 = arith.constant 27 : index
    %460 = memref.load %arg5[%c1_161, %c27_162] : memref<3x36xf32, #tpu.memory_space<smem>>
    %461 = vector.extract_strided_slice %425 {offsets = [3, 0], sizes = [1, 256], strides = [1, 1]} : vector<4x256xf32> to vector<1x256xf32>
    %462 = vector.broadcast %460 : f32 to vector<1x256xf32>
    %463 = arith.mulf %462, %461 : vector<1x256xf32>
    %464 = arith.addf %459, %463 : vector<1x256xf32>
    %465 = arith.addf %400, %464 : vector<1x256xf32>
    %c2_163 = arith.constant 2 : index
    %c24_164 = arith.constant 24 : index
    %466 = memref.load %arg5[%c2_163, %c24_164] : memref<3x36xf32, #tpu.memory_space<smem>>
    %467 = vector.extract_strided_slice %425 {offsets = [0, 0], sizes = [1, 256], strides = [1, 1]} : vector<4x256xf32> to vector<1x256xf32>
    %468 = vector.broadcast %466 : f32 to vector<1x256xf32>
    %469 = arith.mulf %468, %467 : vector<1x256xf32>
    %c2_165 = arith.constant 2 : index
    %c25_166 = arith.constant 25 : index
    %470 = memref.load %arg5[%c2_165, %c25_166] : memref<3x36xf32, #tpu.memory_space<smem>>
    %471 = vector.extract_strided_slice %425 {offsets = [1, 0], sizes = [1, 256], strides = [1, 1]} : vector<4x256xf32> to vector<1x256xf32>
    %472 = vector.broadcast %470 : f32 to vector<1x256xf32>
    %473 = arith.mulf %472, %471 : vector<1x256xf32>
    %474 = arith.addf %469, %473 : vector<1x256xf32>
    %c2_167 = arith.constant 2 : index
    %c26_168 = arith.constant 26 : index
    %475 = memref.load %arg5[%c2_167, %c26_168] : memref<3x36xf32, #tpu.memory_space<smem>>
    %476 = vector.extract_strided_slice %425 {offsets = [2, 0], sizes = [1, 256], strides = [1, 1]} : vector<4x256xf32> to vector<1x256xf32>
    %477 = vector.broadcast %475 : f32 to vector<1x256xf32>
    %478 = arith.mulf %477, %476 : vector<1x256xf32>
    %479 = arith.addf %474, %478 : vector<1x256xf32>
    %c2_169 = arith.constant 2 : index
    %c27_170 = arith.constant 27 : index
    %480 = memref.load %arg5[%c2_169, %c27_170] : memref<3x36xf32, #tpu.memory_space<smem>>
    %481 = vector.extract_strided_slice %425 {offsets = [3, 0], sizes = [1, 256], strides = [1, 1]} : vector<4x256xf32> to vector<1x256xf32>
    %482 = vector.broadcast %480 : f32 to vector<1x256xf32>
    %483 = arith.mulf %482, %481 : vector<1x256xf32>
    %484 = arith.addf %479, %483 : vector<1x256xf32>
    %485 = arith.addf %420, %484 : vector<1x256xf32>
    %c0_171 = arith.constant 0 : index
    %c144 = arith.constant 144 : index
    %486 = vector.load %arg7[%c0_171, %c144] : memref<4x512xf32, #tpu.memory_space<vmem>>, vector<4x256xf32>
    %c0_172 = arith.constant 0 : index
    %c28 = arith.constant 28 : index
    %487 = memref.load %arg5[%c0_172, %c28] : memref<3x36xf32, #tpu.memory_space<smem>>
    %488 = vector.extract_strided_slice %486 {offsets = [0, 0], sizes = [1, 256], strides = [1, 1]} : vector<4x256xf32> to vector<1x256xf32>
    %489 = vector.broadcast %487 : f32 to vector<1x256xf32>
    %490 = arith.mulf %489, %488 : vector<1x256xf32>
    %c0_173 = arith.constant 0 : index
    %c29 = arith.constant 29 : index
    %491 = memref.load %arg5[%c0_173, %c29] : memref<3x36xf32, #tpu.memory_space<smem>>
    %492 = vector.extract_strided_slice %486 {offsets = [1, 0], sizes = [1, 256], strides = [1, 1]} : vector<4x256xf32> to vector<1x256xf32>
    %493 = vector.broadcast %491 : f32 to vector<1x256xf32>
    %494 = arith.mulf %493, %492 : vector<1x256xf32>
    %495 = arith.addf %490, %494 : vector<1x256xf32>
    %c0_174 = arith.constant 0 : index
    %c30 = arith.constant 30 : index
    %496 = memref.load %arg5[%c0_174, %c30] : memref<3x36xf32, #tpu.memory_space<smem>>
    %497 = vector.extract_strided_slice %486 {offsets = [2, 0], sizes = [1, 256], strides = [1, 1]} : vector<4x256xf32> to vector<1x256xf32>
    %498 = vector.broadcast %496 : f32 to vector<1x256xf32>
    %499 = arith.mulf %498, %497 : vector<1x256xf32>
    %500 = arith.addf %495, %499 : vector<1x256xf32>
    %c0_175 = arith.constant 0 : index
    %c31 = arith.constant 31 : index
    %501 = memref.load %arg5[%c0_175, %c31] : memref<3x36xf32, #tpu.memory_space<smem>>
    %502 = vector.extract_strided_slice %486 {offsets = [3, 0], sizes = [1, 256], strides = [1, 1]} : vector<4x256xf32> to vector<1x256xf32>
    %503 = vector.broadcast %501 : f32 to vector<1x256xf32>
    %504 = arith.mulf %503, %502 : vector<1x256xf32>
    %505 = arith.addf %500, %504 : vector<1x256xf32>
    %506 = arith.addf %445, %505 : vector<1x256xf32>
    %c1_176 = arith.constant 1 : index
    %c28_177 = arith.constant 28 : index
    %507 = memref.load %arg5[%c1_176, %c28_177] : memref<3x36xf32, #tpu.memory_space<smem>>
    %508 = vector.extract_strided_slice %486 {offsets = [0, 0], sizes = [1, 256], strides = [1, 1]} : vector<4x256xf32> to vector<1x256xf32>
    %509 = vector.broadcast %507 : f32 to vector<1x256xf32>
    %510 = arith.mulf %509, %508 : vector<1x256xf32>
    %c1_178 = arith.constant 1 : index
    %c29_179 = arith.constant 29 : index
    %511 = memref.load %arg5[%c1_178, %c29_179] : memref<3x36xf32, #tpu.memory_space<smem>>
    %512 = vector.extract_strided_slice %486 {offsets = [1, 0], sizes = [1, 256], strides = [1, 1]} : vector<4x256xf32> to vector<1x256xf32>
    %513 = vector.broadcast %511 : f32 to vector<1x256xf32>
    %514 = arith.mulf %513, %512 : vector<1x256xf32>
    %515 = arith.addf %510, %514 : vector<1x256xf32>
    %c1_180 = arith.constant 1 : index
    %c30_181 = arith.constant 30 : index
    %516 = memref.load %arg5[%c1_180, %c30_181] : memref<3x36xf32, #tpu.memory_space<smem>>
    %517 = vector.extract_strided_slice %486 {offsets = [2, 0], sizes = [1, 256], strides = [1, 1]} : vector<4x256xf32> to vector<1x256xf32>
    %518 = vector.broadcast %516 : f32 to vector<1x256xf32>
    %519 = arith.mulf %518, %517 : vector<1x256xf32>
    %520 = arith.addf %515, %519 : vector<1x256xf32>
    %c1_182 = arith.constant 1 : index
    %c31_183 = arith.constant 31 : index
    %521 = memref.load %arg5[%c1_182, %c31_183] : memref<3x36xf32, #tpu.memory_space<smem>>
    %522 = vector.extract_strided_slice %486 {offsets = [3, 0], sizes = [1, 256], strides = [1, 1]} : vector<4x256xf32> to vector<1x256xf32>
    %523 = vector.broadcast %521 : f32 to vector<1x256xf32>
    %524 = arith.mulf %523, %522 : vector<1x256xf32>
    %525 = arith.addf %520, %524 : vector<1x256xf32>
    %526 = arith.addf %465, %525 : vector<1x256xf32>
    %c2_184 = arith.constant 2 : index
    %c28_185 = arith.constant 28 : index
    %527 = memref.load %arg5[%c2_184, %c28_185] : memref<3x36xf32, #tpu.memory_space<smem>>
    %528 = vector.extract_strided_slice %486 {offsets = [0, 0], sizes = [1, 256], strides = [1, 1]} : vector<4x256xf32> to vector<1x256xf32>
    %529 = vector.broadcast %527 : f32 to vector<1x256xf32>
    %530 = arith.mulf %529, %528 : vector<1x256xf32>
    %c2_186 = arith.constant 2 : index
    %c29_187 = arith.constant 29 : index
    %531 = memref.load %arg5[%c2_186, %c29_187] : memref<3x36xf32, #tpu.memory_space<smem>>
    %532 = vector.extract_strided_slice %486 {offsets = [1, 0], sizes = [1, 256], strides = [1, 1]} : vector<4x256xf32> to vector<1x256xf32>
    %533 = vector.broadcast %531 : f32 to vector<1x256xf32>
    %534 = arith.mulf %533, %532 : vector<1x256xf32>
    %535 = arith.addf %530, %534 : vector<1x256xf32>
    %c2_188 = arith.constant 2 : index
    %c30_189 = arith.constant 30 : index
    %536 = memref.load %arg5[%c2_188, %c30_189] : memref<3x36xf32, #tpu.memory_space<smem>>
    %537 = vector.extract_strided_slice %486 {offsets = [2, 0], sizes = [1, 256], strides = [1, 1]} : vector<4x256xf32> to vector<1x256xf32>
    %538 = vector.broadcast %536 : f32 to vector<1x256xf32>
    %539 = arith.mulf %538, %537 : vector<1x256xf32>
    %540 = arith.addf %535, %539 : vector<1x256xf32>
    %c2_190 = arith.constant 2 : index
    %c31_191 = arith.constant 31 : index
    %541 = memref.load %arg5[%c2_190, %c31_191] : memref<3x36xf32, #tpu.memory_space<smem>>
    %542 = vector.extract_strided_slice %486 {offsets = [3, 0], sizes = [1, 256], strides = [1, 1]} : vector<4x256xf32> to vector<1x256xf32>
    %543 = vector.broadcast %541 : f32 to vector<1x256xf32>
    %544 = arith.mulf %543, %542 : vector<1x256xf32>
    %545 = arith.addf %540, %544 : vector<1x256xf32>
    %546 = arith.addf %485, %545 : vector<1x256xf32>
    %c0_192 = arith.constant 0 : index
    %c145 = arith.constant 145 : index
    %547 = vector.load %arg7[%c0_192, %c145] : memref<4x512xf32, #tpu.memory_space<vmem>>, vector<4x256xf32>
    %cst_193 = arith.constant 0.000000e+00 : f32
    %548 = vector.shape_cast %35 : vector<1x256xi1> to vector<1x256xi1>
    %549 = vector.broadcast %548 : vector<1x256xi1> to vector<4x256xi1>
    %550 = vector.broadcast %cst_193 : f32 to vector<4x256xf32>
    %551 = arith.select %549, %547, %550 : vector<4x256xi1>, vector<4x256xf32>
    %c0_194 = arith.constant 0 : index
    %c32 = arith.constant 32 : index
    %552 = memref.load %arg5[%c0_194, %c32] : memref<3x36xf32, #tpu.memory_space<smem>>
    %553 = vector.extract_strided_slice %551 {offsets = [0, 0], sizes = [1, 256], strides = [1, 1]} : vector<4x256xf32> to vector<1x256xf32>
    %554 = vector.broadcast %552 : f32 to vector<1x256xf32>
    %555 = arith.mulf %554, %553 : vector<1x256xf32>
    %c0_195 = arith.constant 0 : index
    %c33 = arith.constant 33 : index
    %556 = memref.load %arg5[%c0_195, %c33] : memref<3x36xf32, #tpu.memory_space<smem>>
    %557 = vector.extract_strided_slice %551 {offsets = [1, 0], sizes = [1, 256], strides = [1, 1]} : vector<4x256xf32> to vector<1x256xf32>
    %558 = vector.broadcast %556 : f32 to vector<1x256xf32>
    %559 = arith.mulf %558, %557 : vector<1x256xf32>
    %560 = arith.addf %555, %559 : vector<1x256xf32>
    %c0_196 = arith.constant 0 : index
    %c34 = arith.constant 34 : index
    %561 = memref.load %arg5[%c0_196, %c34] : memref<3x36xf32, #tpu.memory_space<smem>>
    %562 = vector.extract_strided_slice %551 {offsets = [2, 0], sizes = [1, 256], strides = [1, 1]} : vector<4x256xf32> to vector<1x256xf32>
    %563 = vector.broadcast %561 : f32 to vector<1x256xf32>
    %564 = arith.mulf %563, %562 : vector<1x256xf32>
    %565 = arith.addf %560, %564 : vector<1x256xf32>
    %c0_197 = arith.constant 0 : index
    %c35 = arith.constant 35 : index
    %566 = memref.load %arg5[%c0_197, %c35] : memref<3x36xf32, #tpu.memory_space<smem>>
    %567 = vector.extract_strided_slice %551 {offsets = [3, 0], sizes = [1, 256], strides = [1, 1]} : vector<4x256xf32> to vector<1x256xf32>
    %568 = vector.broadcast %566 : f32 to vector<1x256xf32>
    %569 = arith.mulf %568, %567 : vector<1x256xf32>
    %570 = arith.addf %565, %569 : vector<1x256xf32>
    %571 = arith.addf %506, %570 : vector<1x256xf32>
    %c1_198 = arith.constant 1 : index
    %c32_199 = arith.constant 32 : index
    %572 = memref.load %arg5[%c1_198, %c32_199] : memref<3x36xf32, #tpu.memory_space<smem>>
    %573 = vector.extract_strided_slice %551 {offsets = [0, 0], sizes = [1, 256], strides = [1, 1]} : vector<4x256xf32> to vector<1x256xf32>
    %574 = vector.broadcast %572 : f32 to vector<1x256xf32>
    %575 = arith.mulf %574, %573 : vector<1x256xf32>
    %c1_200 = arith.constant 1 : index
    %c33_201 = arith.constant 33 : index
    %576 = memref.load %arg5[%c1_200, %c33_201] : memref<3x36xf32, #tpu.memory_space<smem>>
    %577 = vector.extract_strided_slice %551 {offsets = [1, 0], sizes = [1, 256], strides = [1, 1]} : vector<4x256xf32> to vector<1x256xf32>
    %578 = vector.broadcast %576 : f32 to vector<1x256xf32>
    %579 = arith.mulf %578, %577 : vector<1x256xf32>
    %580 = arith.addf %575, %579 : vector<1x256xf32>
    %c1_202 = arith.constant 1 : index
    %c34_203 = arith.constant 34 : index
    %581 = memref.load %arg5[%c1_202, %c34_203] : memref<3x36xf32, #tpu.memory_space<smem>>
    %582 = vector.extract_strided_slice %551 {offsets = [2, 0], sizes = [1, 256], strides = [1, 1]} : vector<4x256xf32> to vector<1x256xf32>
    %583 = vector.broadcast %581 : f32 to vector<1x256xf32>
    %584 = arith.mulf %583, %582 : vector<1x256xf32>
    %585 = arith.addf %580, %584 : vector<1x256xf32>
    %c1_204 = arith.constant 1 : index
    %c35_205 = arith.constant 35 : index
    %586 = memref.load %arg5[%c1_204, %c35_205] : memref<3x36xf32, #tpu.memory_space<smem>>
    %587 = vector.extract_strided_slice %551 {offsets = [3, 0], sizes = [1, 256], strides = [1, 1]} : vector<4x256xf32> to vector<1x256xf32>
    %588 = vector.broadcast %586 : f32 to vector<1x256xf32>
    %589 = arith.mulf %588, %587 : vector<1x256xf32>
    %590 = arith.addf %585, %589 : vector<1x256xf32>
    %591 = arith.addf %526, %590 : vector<1x256xf32>
    %c2_206 = arith.constant 2 : index
    %c32_207 = arith.constant 32 : index
    %592 = memref.load %arg5[%c2_206, %c32_207] : memref<3x36xf32, #tpu.memory_space<smem>>
    %593 = vector.extract_strided_slice %551 {offsets = [0, 0], sizes = [1, 256], strides = [1, 1]} : vector<4x256xf32> to vector<1x256xf32>
    %594 = vector.broadcast %592 : f32 to vector<1x256xf32>
    %595 = arith.mulf %594, %593 : vector<1x256xf32>
    %c2_208 = arith.constant 2 : index
    %c33_209 = arith.constant 33 : index
    %596 = memref.load %arg5[%c2_208, %c33_209] : memref<3x36xf32, #tpu.memory_space<smem>>
    %597 = vector.extract_strided_slice %551 {offsets = [1, 0], sizes = [1, 256], strides = [1, 1]} : vector<4x256xf32> to vector<1x256xf32>
    %598 = vector.broadcast %596 : f32 to vector<1x256xf32>
    %599 = arith.mulf %598, %597 : vector<1x256xf32>
    %600 = arith.addf %595, %599 : vector<1x256xf32>
    %c2_210 = arith.constant 2 : index
    %c34_211 = arith.constant 34 : index
    %601 = memref.load %arg5[%c2_210, %c34_211] : memref<3x36xf32, #tpu.memory_space<smem>>
    %602 = vector.extract_strided_slice %551 {offsets = [2, 0], sizes = [1, 256], strides = [1, 1]} : vector<4x256xf32> to vector<1x256xf32>
    %603 = vector.broadcast %601 : f32 to vector<1x256xf32>
    %604 = arith.mulf %603, %602 : vector<1x256xf32>
    %605 = arith.addf %600, %604 : vector<1x256xf32>
    %c2_212 = arith.constant 2 : index
    %c35_213 = arith.constant 35 : index
    %606 = memref.load %arg5[%c2_212, %c35_213] : memref<3x36xf32, #tpu.memory_space<smem>>
    %607 = vector.extract_strided_slice %551 {offsets = [3, 0], sizes = [1, 256], strides = [1, 1]} : vector<4x256xf32> to vector<1x256xf32>
    %608 = vector.broadcast %606 : f32 to vector<1x256xf32>
    %609 = arith.mulf %608, %607 : vector<1x256xf32>
    %610 = arith.addf %605, %609 : vector<1x256xf32>
    %611 = arith.addf %546, %610 : vector<1x256xf32>
    %612 = tpu.concatenate %571, %591, %611 in 0 : vector<1x256xf32>, vector<1x256xf32>, vector<1x256xf32> -> vector<3x256xf32>
    %613 = math.tanh %612 : vector<3x256xf32>
    %c0_214 = arith.constant 0 : index
    %c0_215 = arith.constant 0 : index
    %c0_216 = arith.constant 0 : index
    %614 = vector.load %arg6[%c0_214, %c0_215, %c0_216] : memref<1x3x256xf32, #tpu.memory_space<vmem>>, vector<1x3x256xf32>
    %615 = vector.shape_cast %614 : vector<1x3x256xf32> to vector<3x256xf32>
    %616 = vector.shape_cast %613 : vector<3x256xf32> to vector<1x3x256xf32>
    tpu.vector_store %arg6[%c0_214, %c0_215, %c0_216], %616 {strides = array<i32>} : memref<1x3x256xf32, #tpu.memory_space<vmem>>, vector<1x3x256xf32>,
    return
  }
  func.func @transform_0(%arg0: i32, %arg1: i32) -> (i32, i32, i32) {
    %c0_i32 = arith.constant 0 : i32
    %c0_i32_0 = arith.constant 0 : i32
    return %arg0, %c0_i32, %arg1 : i32, i32, i32
  }
  func.func @transform_1(%arg0: i32, %arg1: i32) -> (i32, i32, i32, i32) {
    %c2_i32 = arith.constant 2 : i32
    %0 = arith.muli %arg1, %c2_i32 : i32
    %c1_i32 = arith.constant 1 : i32
    %1 = arith.subi %0, %c1_i32 : i32
    %c0_i32 = arith.constant 0 : i32
    %2 = arith.maxsi %1, %c0_i32 : i32
    %c0_i32_0 = arith.constant 0 : i32
    %c0_i32_1 = arith.constant 0 : i32
    %c0_i32_2 = arith.constant 0 : i32
    return %arg0, %c0_i32_0, %2, %c0_i32_1 : i32, i32, i32, i32
  }
  func.func @transform_2(%arg0: i32, %arg1: i32) -> (i32, i32, i32, i32) {
    %c1_i32 = arith.constant 1 : i32
    %0 = arith.addi %arg1, %c1_i32 : i32
    %c2_i32 = arith.constant 2 : i32
    %1 = arith.muli %0, %c2_i32 : i32
    %c1_i32_0 = arith.constant 1 : i32
    %2 = arith.minsi %1, %c1_i32_0 : i32
    %c0_i32 = arith.constant 0 : i32
    %c0_i32_1 = arith.constant 0 : i32
    %c0_i32_2 = arith.constant 0 : i32
    return %arg0, %c0_i32, %2, %c0_i32_1 : i32, i32, i32, i32
  }
  func.func @transform_3(%arg0: i32, %arg1: i32) -> (i32, i32) {
    %c0_i32 = arith.constant 0 : i32
    %c0_i32_0 = arith.constant 0 : i32
    %c0_i32_1 = arith.constant 0 : i32
    return %c0_i32, %c0_i32_0 : i32, i32
  }
  func.func @transform_4(%arg0: i32, %arg1: i32) -> (i32, i32, i32) {
    %c0_i32 = arith.constant 0 : i32
    %c0_i32_0 = arith.constant 0 : i32
    return %arg0, %c0_i32, %arg1 : i32, i32, i32
  }
}

</mosaic_0001>

<bundles_post_ra>
// kernel: tpu_custom_call.1
= control target key start
LH: loop header
LB: loop body
LE: loop exit
PB: predicated region body
PF: predicated region fallthrough
CT: control target
= control target key end

     0   :  { %s3885_s0 = inlined_call_operand.hbm [shape: f32[2,4,256], index: 0, kind: input, shape index: {}]   ;;  %s3886_s1 = inlined_call_operand.hbm [shape: f32[2,4,16,16], index: 1, kind: input, shape index: {}]   ;;  %s3887_s2 = inlined_call_operand.hbm [shape: f32[2,4,16,16], index: 2, kind: input, shape index: {}]   ;;  %s3888_s3 = inlined_call_operand.vmem [shape: f32[3,36], index: 3, kind: input, shape index: {}]   ;;  %s3889_s4 = inlined_call_operand.vmem [shape: f32[2,3,256], index: 4, kind: output, shape index: {}]  }
   0x1   :  { %4002 = sst [smem:[#allocation70_spill]] %s3885_s0 }
   0x2   :  { %4003 = sst [smem:[#allocation71_spill]] %s3886_s1 }
   0x3   :  { %4004 = sst [smem:[#allocation72_spill]] %s3887_s2 }
   0x4   :  { %4005 = sst [smem:[#allocation73_spill]] %s3888_s3 }
   0x5   :  { %4006 = sst [smem:[#allocation74_spill]] %s3889_s4 }
   0x6   :  { %9 = vsyncpa [#allocation4], 0 }
   0x7   :  { %11 = vsyncpa [#allocation4 + $0x1], 0 }
   0x8   :  { %12 = vsyncpa [#allocation7], 0 }
   0x9   :  { %14 = vsyncpa [#allocation7 + $0x1], 0 }
   0xa   :  { %15 = vsyncpa [#allocation5], 0  ;;  %s2565_s15 = smov 0   ;;  %s2567_s16 = smov 0  }
   0xb   :  { %s2569_s17 = smov 0   ;;  %s2571_s18 = smov 0  }
   0xc   :  { %s2573_s19 = smov 0   ;;  %s2575_s20 = smov 0  }
   0xd LB: > { %4007 = sst [smem:[#allocation13_spill]] %s2506_s16  ;;  %s33_s21 = sadd.s32 1, %s2518_s19  ;;  %s2522_s20 = sphi %s2575_s20, %s21_s20   ;;  %s2518_s19 = sphi %s2573_s19, %s4251_s19   ;;  %s2514_s18 = sphi %s2571_s18, %s4250_s18   ;;  %s2510_s17 = sphi %s2569_s17, %s4249_s17   ;;  %s2506_s16 = sphi %s2567_s16, %s4248_s16   ;;  %s2502_s15 = sphi %s2565_s15, %s4247_s15  }
   0xe   : > { %4008 = sst [smem:[#allocation14_spill]] %s2510_s17  ;;  %s42_s22 = sadd.s32 1, %s2510_s17 }
   0xf   : > { %4009 = sst [smem:[#allocation15_spill]] %s2514_s18  ;;  %p35_p0 = scmp.ge.s32.totalorder %s33_s21, 2 }
  0x10   : > { %4010 = sst [smem:[#allocation16_spill]] %s2518_s19  ;;  %p49_p1 = scmp.ne.s32.totalorder %s2510_s17, %s2506_s16 }
  0x11   : > { %4011 = sst [smem:[#allocation17_spill]] %s2522_s20  ;;  %p50_p2 = scmp.eq.s32.totalorder %s2522_s20, 0 }
  0x12   : > { %s4253_s21 = smov (%p35_p0, %s33_s21), 0  ;;  %p2291_p4 = scmp.lt.s32.totalorder %s2522_s20, 2 }
  0x13   : > { %4012 = sst [smem:[#allocation18_spill]] %s4253_s21  ;;  %p51_p3 = por %p50_p2, %p49_p1 }
  0x14   : > { %s37_s23 = ssub.s32 %s2518_s19, %s4253_s21  ;;  %s2606_s24 = sand.u32 1, %s2510_s17  }
  0x15   : > { %p40_p5 = scmp.eq.s32.totalorder %s37_s23, 0  ;;  %p2608_p6 = pnand %p2291_p4, %p51_p3 }
  0x16   : > { %s232_s26 = sand.u32 1, %s2522_s20   ;;  %s2093_s27 = sshll.u32 %s2606_s24, 5 }
  0x17   : > { %s2615_s28 = scalar_select %p40_p5, %s2510_s17, %s42_s22  }
  0x18   : > { %s2261_s29 = sshll.u32 %s2518_s19, 10  ;;  %s4015_s1 = sld [smem:[#allocation71_spill]] }
  0x19   : > { %4014 = sst [smem:[#allocation19_spill]] %s2615_s28  ;;  %s236_s7 = scalar_lea.vmem [#allocation6], %s2093_s27 }
  0x1a   : > { %s248_s8 = sshll.u32 %s236_s7, 4  ;;  %s2629_s9 = scalar_lea.sflag [#allocation7], %s232_s26  ;;  %s2627_s8 = int_to_ptr.vmem [resolvable:$true] %s248_s8 }
  0x1b   : > { %p2635_p8 = pneg %p2608_p6 }
  0x1e   : > { %s2623_s6 = scalar_lea.hbm %s4015_s1, %s2261_s29  ;;  %s2364_s14 = scalar_lea.hbm %s4015_s1, 2048 }
  0x1f   : > { %s2359_s10 = scalar_lea.hbm %s2623_s6, 512  ;;  %p2365_p11 = scmp.lt.u32.totalorder %s2623_s6, %s4015_s1 }
  0x20   : > { %p2360_p7 = scmp.ne.s32.totalorder %s2623_s6, %s2359_s10  ;;  %p2366_p12 = scmp.lt.u32.totalorder %s2364_s14, %s2359_s10 }
  0x21   : > { %p2368_p0 = scmp.lt.u32.totalorder %s2359_s10, %s2623_s6 }
  0x22   : > { %p2362_p9 = pnand %p2635_p8, %p2360_p7  ;;  %p2367_p13 = por %p2366_p12, %p2365_p11 }
  0x24   : > { %p2363_p10 = pneg %p2362_p9  ;;  %p2369_p1 = por %p2368_p0, %p2367_p13 }
  0x26   : > { %p2370_p2 = pnand %p2369_p1, %p2363_p10 }
  0x28   : > { %2373 = shalt.err (!%p2370_p2)
}
  0x29   : > { %s2374_s26 = scalar_lea.vmem %s2627_s8, 512  ;;  %s2524_s30 = smov [#allocation6]  }
  0x2a   : > { %p2375_p3 = scmp.ne.s32.totalorder %s2627_s8, %s2374_s26  ;;  %s2379_s5 = sshll.u32 %s2524_s30, 4  ;;  %s2380_s5 = int_to_ptr.vmem [resolvable:$false] %s2379_s5 }
  0x2b   : > { %s2381_s7 = scalar_lea.vmem %s2380_s5, 1024  ;;  %p2382_p7 = scmp.lt.s32.totalorder %s2627_s8, %s2380_s5 }
  0x2c   : > { %p2377_p4 = pnand %p2375_p3, %p2635_p8  ;;  %p2383_p9 = scmp.lt.s32.totalorder %s2381_s7, %s2374_s26 }
  0x2e   : > { %p2378_p5 = pneg %p2377_p4  ;;  %p2384_p11 = por %p2383_p9, %p2382_p7 }
  0x30   : > { %p2385_p12 = pnand %p2384_p11, %p2378_p5 }
  0x32   : > { %2388 = shalt.err (!%p2385_p12)
}
  0x33   : > { %s3891_s10 = smov 256   ;;  %s3892_s12 = smov 128  }
  0x34   : > { %s3893_s13 = smov 8   ;;  %s2263_s14 = sadd.s32 128, %s2261_s29 }
  0x35   : > { %2286 = dma.hbm_to_vmem [thread:$0]  (!%p2608_p6), %s2623_s6, 512, %s2627_s8, %s2629_s9, %s3891_s10, %s3892_s12, %s3893_s13  }
  0x36   : > { %s4017_s2 = sld [smem:[#allocation72_spill]]  ;;  %s262_s30 = scalar_lea.vmem [#allocation8], %s2093_s27 }
  0x37   : > { %s274_s5 = sshll.u32 %s262_s30, 4  ;;  %s3890_s7 = sadd.s32 4294967295, %s2522_s20   ;;  %s2671_s5 = int_to_ptr.vmem [resolvable:$true] %s274_s5 }
  0x38   : > { %p55_p10 = scmp.ne.s32.totalorder %s2506_s16, %s2502_s15  ;;  %p2678_p13 = scmp.eq.s32.totalorder %s3890_s7, 0 }
  0x39   : > { %p2087_p0 = scmp.ge.s32.totalorder %s2522_s20, 1  ;;  %p187_p1 = scmp.lt.s32.totalorder %s2522_s20, 3 }
  0x3a   : > { %s4018_s1 = scalar_select %p2678_p13, 1, 0 }
  0x3b   : > { %p2686_p2 = por %p2678_p13, %p55_p10  ;;  %p2690_p3 = pnand %p2087_p0, %p187_p1 }
  0x3c   : > { %s2667_s26 = scalar_lea.hbm %s4017_s2, %s2263_s14  ;;  %s4021_s3 = sld [smem:[#allocation73_spill]] }
  0x3d   : > { %s4019_s29 = scalar_select %p2686_p2, 1, 0 }
  0x3e   : > { %s4020_s27 = scalar_select %p2690_p3, 1, 0 }
  0x3f   : > { %p2276_p4 = pneg %p2690_p3  ;;  %s2090_s14 = sshll.u32 %s2606_s24, 3 }
  0x40   : > { %s2260_s22 = sshll.u32 %s2518_s19, 7  ;;  %s4023_s0 = sld [smem:[#allocation70_spill]] }
  0x41   : > { %p2703_p5 = pnand %p2276_p4, %p2678_p13  ;;  %s215_s12 = scalar_lea.vmem [#allocation3], %s2090_s14 }
  0x42   : > { %s200_s8 = sshll.u32 %s4021_s3, 4  ;;  %s225_s6 = sshll.u32 %s215_s12, 4  ;;  %s201_s8 = int_to_ptr.vmem [resolvable:$true] %s200_s8  ;;  %s2712_s6 = int_to_ptr.vmem [resolvable:$true] %s225_s6 }
  0x43   : > { %s2389_s15 = scalar_lea.vmem %s201_s8, 64  ;;  %p2391_p9 = pneg %p2703_p5 }
  0x44   : > { %p2390_p7 = scmp.ne.s32.totalorder %s201_s8, %s2389_s15  ;;  %p2397_p10 = scmp.lt.s32.totalorder %s201_s8, %s201_s8 }
  0x45   : > { %p2398_p0 = scmp.lt.s32.totalorder %s2389_s15, %s2389_s15 }
  0x46   : > { %s2710_s10 = scalar_lea.hbm %s4023_s0, %s2260_s22  ;;  %p2392_p11 = pnand %p2391_p9, %p2390_p7 }
  0x47   : > { %p2399_p1 = por %p2398_p0, %p2397_p10 }
  0x48   : > { %p2393_p12 = pneg %p2392_p11 }
  0x4a   : > { %p2400_p4 = pnand %p2399_p1, %p2393_p12 }
  0x4c   : > { %2403 = shalt.err (!%p2400_p4)
}
  0x4d   : > { %s2528_s13 = smov [#allocation9]   ;;  %s212_s12 = scalar_lea.sflag [#allocation4], %s2606_s24 }
  0x4e   : > { %2279 = dma.vmem_to_smem (!%p2703_p5), %s201_s8, 64, %s2528_s13, [#allocation5]  }
  0x4f   : > { %s2404_s7 = scalar_lea.hbm %s2710_s10, 128  ;;  %s2409_s30 = scalar_lea.hbm %s4023_s0, 256 }
  0x50   : > { %p2405_p13 = scmp.ne.s32.totalorder %s2710_s10, %s2404_s7  ;;  %p2410_p11 = scmp.lt.u32.totalorder %s2710_s10, %s4023_s0 }
  0x51   : > { %p2411_p12 = scmp.lt.u32.totalorder %s2409_s30, %s2404_s7  ;;  %p2413_p0 = scmp.lt.u32.totalorder %s2404_s7, %s2710_s10 }
  0x52   : > { %p2407_p7 = pnand %p2405_p13, %p2635_p8 }
  0x53   : > { %p2412_p10 = por %p2411_p12, %p2410_p11 }
  0x54   : > { %p2408_p9 = pneg %p2407_p7 }
  0x55   : > { %p2414_p1 = por %p2413_p0, %p2412_p10 }
  0x57   : > { %p2415_p4 = pnand %p2414_p1, %p2408_p9 }
  0x59   : > { %2418 = shalt.err (!%p2415_p4)
}
  0x5a   : > { %s2419_s24 = scalar_lea.vmem %s2712_s6, 128  ;;  %s2529_s13 = smov [#allocation3]  }
  0x5b   : > { %p2420_p13 = scmp.ne.s32.totalorder %s2712_s6, %s2419_s24  ;;  %s2424_s8 = sshll.u32 %s2529_s13, 4  ;;  %s2425_s8 = int_to_ptr.vmem [resolvable:$false] %s2424_s8 }
  0x5c   : > { %s2426_s3 = scalar_lea.vmem %s2425_s8, 256  ;;  %p2427_p2 = scmp.lt.s32.totalorder %s2712_s6, %s2425_s8 }
  0x5d   : > { %p2422_p5 = pnand %p2420_p13, %p2635_p8  ;;  %p2428_p3 = scmp.lt.s32.totalorder %s2426_s3, %s2419_s24 }
  0x5f   : > { %p2423_p7 = pneg %p2422_p5  ;;  %p2429_p11 = por %p2428_p3, %p2427_p2 }
  0x61   : > { %p2430_p12 = pnand %p2429_p11, %p2423_p7 }
  0x63   : > { %2433 = shalt.err (!%p2430_p12)
}
  0x64   : > { %2283 = dma.hbm_to_vmem [thread:$0]  (!%p2608_p6), %s2710_s10, 128, %s2712_s6, %s212_s12  }
  0x65   : > { %s2434_s23 = scalar_lea.hbm %s2667_s26, 512  ;;  %s2439_s22 = scalar_lea.hbm %s4017_s2, 2048 }
  0x66   : > { %p2435_p9 = scmp.ne.s32.totalorder %s2667_s26, %s2434_s23  ;;  %p2440_p2 = scmp.lt.u32.totalorder %s2667_s26, %s4017_s2 }
  0x67   : > { %p2441_p3 = scmp.lt.u32.totalorder %s2439_s22, %s2434_s23  ;;  %p2443_p4 = scmp.lt.u32.totalorder %s2434_s23, %s2667_s26 }
  0x68   : > { %p2437_p10 = pnand %p2435_p9, %p2635_p8 }
  0x69   : > { %p2442_p1 = por %p2441_p3, %p2440_p2 }
  0x6a   : > { %p2438_p0 = pneg %p2437_p10 }
  0x6b   : > { %p2444_p13 = por %p2443_p4, %p2442_p1 }
  0x6d   : > { %p2445_p5 = pnand %p2444_p13, %p2438_p0 }
  0x6f   : > { %2448 = shalt.err (!%p2445_p5)
}
  0x70   : > { %s2449_s10 = scalar_lea.vmem %s2671_s5, 512  ;;  %s2530_s6 = smov [#allocation8]  }
  0x71   : > { %p2450_p7 = scmp.ne.s32.totalorder %s2671_s5, %s2449_s10  ;;  %s2454_s12 = sshll.u32 %s2530_s6, 4  ;;  %s2455_s12 = int_to_ptr.vmem [resolvable:$false] %s2454_s12 }
  0x72   : > { %s2456_s24 = scalar_lea.vmem %s2455_s12, 1024  ;;  %p2457_p9 = scmp.lt.s32.totalorder %s2671_s5, %s2455_s12 }
  0x73   : > { %p2452_p11 = pnand %p2450_p7, %p2635_p8  ;;  %p2458_p10 = scmp.lt.s32.totalorder %s2456_s24, %s2449_s10 }
  0x75   : > { %p2453_p12 = pneg %p2452_p11  ;;  %p2459_p2 = por %p2458_p10, %p2457_p9 }
  0x77   : > { %p2460_p3 = pnand %p2459_p2, %p2453_p12 }
  0x79   : > { %2463 = shalt.err (!%p2460_p3)
}
  0x7a   : > { %s4024_s13 = smov 8   ;;  %s4025_s8 = smov 128  }
  0x7b   : > { %s4026_s3 = smov 256   ;;  %p4027_p8 = scmp.ne.s32.totalorder %s4020_s27, 0 }
  0x7c   : > { %2289 = dma.hbm_to_vmem [thread:$0]  (!%p2608_p6), %s2667_s26, 512, %s2671_s5, %s2629_s9, %s4026_s3, %s4025_s8, %s4024_s13  }
  0x7d   : > { %286 = sbr.rel (%p4027_p8) target bundleno = 430 (0x1ae), region = 36 }
  0x84   : > { %s288_s11 = sand.u32 1, %s2506_s16   ;;  %p4028_p0 = scmp.ne.s32.totalorder %s4019_s29, 0 }
  0x85   : > { %s2100_s23 = sshll.u32 %s288_s11, 3  ;;  %s289_s7 = scalar_lea.sflag [#allocation4], %s288_s11 }
  0x86   : > { %s292_s14 = scalar_lea.vmem [#allocation3], %s2100_s23 }
  0x87   : > { %2489 = dma.done.wait (%p4028_p0), %s289_s7, 128  }
  0x88   : > { %2491 = vsyncadd (%p4028_p0), %s289_s7, 4294967168  ;;  %s4029_s25 = sadd.s32 4294967295, %s2522_s20  }
  0x89   : > { %s297_s22 = sand.u32 1, %s4029_s25  }
  0x8a   : > { %s298_s30 = scalar_lea.sflag [#allocation7], %s297_s22 }
  0x8b   : > { %2493 = dma.done.wait (%p4028_p0), %s298_s30, 1024  }
  0x8c   : > { %2495 = vsyncadd (%p4028_p0), %s298_s30, 4294966272  ;;  %p4030_p6 = scmp.ne.s32.totalorder %s4018_s1, 0 }
  0x8e   : > { %2497 = dma.done.wait (%p4030_p6), [#allocation5], 64  }
  0x8f   : > { %2499 = vsyncadd (%p4030_p6), [#allocation5], 4294967232 }
  0x90   : > { %319 = sfence }
  0x91   : > { %v2782_v0 = vld [vmem:[%s292_s14] sm:$0xff]  ;;  %vm411_vm0 = vcmask 1044352   ;;  %vm446_vm1 = vcmask 125952   ;;  %v2531_v1 = vmov 0.0   ;;  %s2128_s9 = sld [smem:[#allocation9 + $0x85]]  ;;  %s2785_s26 = sld [smem:[#allocation9 + $0x84]]  ;;  %v448_v16 = vlaneseq }
  0x92   : > { %374 = vst [vmem:[#allocation2 + $0x4] sm:$0xff] %v2782_v0  ;;  %412 = vst.msk [vmem:[#allocation2] sm:$0xf] %vm411_vm0, %v2531_v1  ;;  %s2787_s5 = sld [smem:[#allocation9 + $0x86]]  ;;  %s2789_s29 = sld [smem:[#allocation9 + $0x87]]  ;;  %v2842_v39 = vcombine.high %v2782_v0, %v2782_v0  ;;  %vm494_vm2 = vcmask 138240  }
  0x93   : > { %447 = vst.msk [vmem:[#allocation2 + $0xc] sm:$0xf] %vm446_vm1, %v2531_v1  ;;  %s2793_s1 = sld [smem:[#allocation9 + $0x105]]  ;;  %s2532_s27 = smov 17   ;;  %v678_v26 = vshrl.u32 %v448_v16, 7  ;;  %vm859_vm5 = vcmask 121856  }
  0x94   : > { %s2799_s15 = sld [smem:[#allocation9 + $0x104]]  ;;  %s2803_s10 = sld [smem:[#allocation9 + $0x106]]  ;;  %vm1003_vm8 = vcmask 7168   ;;  %vm1268_vm9 = vcmask 1039360   ;;  %vm1412_vm10 = vcmask 924672   ;;  %vm695_vm11 = vcmask 130048  }
  0x95   : > { %s2533_s6 = smov 15   ;;  %s2808_s12 = sld [smem:[#allocation9 + $0x5]]  ;;  %v2849_v47 = vsub.s32 0, %v678_v26  ;;  %v2864_v60 = vsub.s32 4, %v678_v26  ;;  %vm1773_vm12 = vcmask 908288   ;;  %vm1613_vm13 = vcmask 916480  }
  0x96   : > { %s2814_s24 = sld [smem:[#allocation9 + $0x107]]  ;;  %s2818_s13 = sld [smem:[#allocation9 + $0x4]]  ;;  %vm1918_vm14 = vcmask 1040384   ;;  %vm1921_vm15 = vcmask 1041408  }
  0x97   : > { %v707_v5 = vstv %s2128_s9  ;;  %v703_v7 = vstv %s2785_s26  ;;  %s2820_s8 = sld [smem:[#allocation9 + $0x6]]  ;;  %s2828_s3 = sld [smem:[#allocation9 + $0x7]] }
  0x98   : > { %v721_v8 = vstv %s2787_s5  ;;  %v735_v14 = vstv %s2789_s29  ;;  %s2534_s11 = smov 1   ;;  %s2837_s23 = sld [smem:[#allocation9 + $0x9d]] }
  0x99   : > { %v480_v2 = vld [vmem:[#allocation2 + $0x8] sm:$0xf]  ;;  %v2791_v3 = vld [vmem:[#allocation2] sm:$0xff]  ;;  %v779_v15 = vstv %s2793_s1  ;;  %s2535_s7 = smov 127   ;;  %s2853_s14 = sld [smem:[#allocation9 + $0x9c]] }
  0x9a   : > { %492 = vrot.lane.b32.xlu1 %v480_v2, %s2532_s27  ;;  %488 = vrot.lane.b32.xlu0 %v2791_v3, %s2532_s27  ;;  %v487_v4 = vcombine.high %v2791_v3, %v2791_v3  ;;  %v708_v6 = vmul.f32 %v707_v5, %v2791_v3  ;;  %v2806_v9 = vld [vmem:[#allocation2 + $0x8] sm:$0xf]  ;;  %v704_v11 = vmul.f32 %v703_v7, %v2791_v3  ;;  %v775_v23 = vstv %s2799_s15  ;;  %v1258_v43 = vld [vmem:[#allocation2 + $0xc] sm:$0xf]  ;;  %s2855_s25 = sld [smem:[#allocation9 + $0x9e]]  ;;  %s2870_s22 = sld [smem:[#allocation9 + $0x9f]] }
  0x9b   : > { %v709_v10 = vmul.f32 %v707_v5, %v2806_v9  ;;  %v722_v13 = vmul.f32 %v721_v8, %v2791_v3  ;;  %v736_v17 = vmul.f32 %v735_v14, %v2791_v3  ;;  %v705_v18 = vmul.f32 %v703_v7, %v2806_v9  ;;  %v993_v29 = vld [vmem:[#allocation2 + $0x8] sm:$0xf]  ;;  %s2874_s30 = sld [smem:[#allocation9 + $0x11d]]  ;;  %s2536_s9 = smov 113  }
  0x9c   : > { %v2129_v12 = vrot.slane %v708_v6, 9  ;;  %v723_v20 = vmul.f32 %v721_v8, %v2806_v9  ;;  %v780_v24 = vmul.f32 %v779_v15, %v2791_v3  ;;  %v793_v25 = vstv %s2803_s10  ;;  %s2887_s26 = sld [smem:[#allocation9 + $0x11c]]  ;;  %s2889_s5 = sld [smem:[#allocation9 + $0x11e]] }
  0x9d   : > { %v2130_v19 = vrot.slane %v709_v10, 9  ;;  %v2132_v22 = vrot.slane %v722_v13, 10  ;;  %v737_v27 = vmul.f32 %v735_v14, %v2806_v9  ;;  %v634_v28 = vstv %s2808_s12  ;;  %s2537_s29 = smov 16   ;;  %s2893_s1 = sld [smem:[#allocation9 + $0x1d]] }
  0x9e   : > { %853 = vrot.lane.b32.xlu1 %v2791_v3, %s2533_s6  ;;  %490 = vrot.lane.b32.xlu0 %v487_v4, %s2532_s27  ;;  %v718_v21 = vadd.f32 %v2129_v12, %v704_v11  ;;  %v2135_v30 = vrot.slane %v736_v17, 11  ;;  %v2133_v32 = vrot.slane %v723_v20, 10  ;;  %v776_v33 = vmul.f32 %v775_v23, %v2791_v3  ;;  %v1402_v12 = vld [vmem:[#allocation2 + $0xc] sm:$0xf]  ;;  %s2902_s27 = sld [smem:[#allocation9 + $0x11f]]  ;;  %s2906_s15 = sld [smem:[#allocation9 + $0x1c]] }
  0x9f   : > { %v719_v31 = vadd.f32 %v2130_v19, %v705_v18  ;;  %v2139_v35 = vrot.slane %v780_v24, 9  ;;  %v794_v36 = vmul.f32 %v793_v25, %v2791_v3  ;;  %v807_v37 = vstv %s2814_s24  ;;  %v2885_v19 = vld [vmem:[#allocation2 + $0xc] sm:$0xf]  ;;  %s2908_s10 = sld [smem:[#allocation9 + $0x1e]]  ;;  %s2538_s12 = smov 111  }
  0xa0   : > { %v732_v34 = vadd.f32 %v2132_v22, %v718_v21  ;;  %v635_v38 = vmul.f32 %v634_v28, %v2791_v3  ;;  %v630_v40 = vstv %s2818_s13  ;;  %v648_v41 = vstv %s2820_s8  ;;  %s2539_s24 = smov 112   ;;  %s2961_s13 = sld [smem:[#allocation9 + $0x80]] }
  0xa1   : > { %v781_v42 = vmul.f32 %v779_v15, %v2806_v9  ;;  %v733_v44 = vadd.f32 %v2133_v32, %v719_v31  ;;  %v2136_v45 = vrot.slane %v737_v27, 11  ;;  %v808_v46 = vmul.f32 %v807_v37, %v2791_v3  ;;  %s2963_s8 = sld [smem:[#allocation9 + $0x81]]  ;;  %s3006_s0 = sld [smem:[#allocation9 + $0x10b]] }
  0xa2   : > { %857 = vrot.lane.b32.xlu1 %v2806_v9, %s2533_s6  ;;  %855 = vrot.lane.b32.xlu0 %v487_v4, %s2533_s6  ;;  %v2851_v48 = vadd.f32 %v2135_v30, %v732_v34  ;;  %v790_v49 = vadd.f32 %v2139_v35, %v776_v33  ;;  %v2142_v50 = vrot.slane %v794_v36, 10  ;;  %v631_v51 = vmul.f32 %v630_v40, %v2791_v3  ;;  %s2916_s6 = sld [smem:[#allocation9 + $0x1f]]  ;;  %s3008_s2 = sld [smem:[#allocation9 + $0x90]] }
  0xa3   : > { %v2119_v52 = vrot.slane %v635_v38, 9  ;;  %v649_v53 = vmul.f32 %v648_v41, %v2791_v3  ;;  %v662_v54 = vstv %s2828_s3  ;;  %v777_v55 = vmul.f32 %v775_v23, %v2806_v9  ;;  %s2965_s3 = sld [smem:[#allocation9 + $0x82]]  ;;  %s3012_s19 = sld [smem:[#allocation9 + $0x10c]] }
  0xa4   : > { %v2140_v56 = vrot.slane %v781_v42, 9  ;;  %v795_v57 = vmul.f32 %v793_v25, %v2806_v9  ;;  %v636_v58 = vmul.f32 %v634_v28, %v2806_v9  ;;  %v747_v59 = vadd.f32 %v2136_v45, %v733_v44  ;;  %s3010_s21 = sld [smem:[#allocation9 + $0x92]]  ;;  %s3014_s28 = sld [smem:[#allocation9 + $0x110]] }
  0xa5   : > { %v2145_v61 = vrot.slane %v808_v46, 11  ;;  %v753_v62 = vrot.slane %v2851_v48, %v2849_v47  ;;  %v804_v63 = vadd.f32 %v2142_v50, %v790_v49  ;;  %v663_v1 = vmul.f32 %v662_v54, %v2791_v3  ;;  %s3019_s17 = sld [smem:[#allocation9 + $0x10d]]  ;;  %s3021_s16 = sld [smem:[#allocation9 + $0x112]] }
  0xa6   : > { %999 = vrot.lane.b32.xlu1 %v487_v4, %s2534_s11  ;;  %997 = vrot.lane.b32.xlu0 %v2791_v3, %s2534_s11  ;;  %v1625_v2 = vstv %s2837_s23  ;;  %v645_v4 = vadd.f32 %v2119_v52, %v631_v51  ;;  %v2122_v5 = vrot.slane %v649_v53, 10  ;;  %v809_v6 = vmul.f32 %v807_v37, %v2806_v9  ;;  %4031 = sst [smem:[#allocation20_spill]] %s2961_s13  ;;  %s2969_s23 = sld [smem:[#allocation9 + $0x88]] }
  0xa7   : > { %v632_v7 = vmul.f32 %v630_v40, %v2806_v9  ;;  %v791_v8 = vadd.f32 %v2140_v56, %v777_v55  ;;  %v2143_v3 = vrot.slane %v795_v57, 10  ;;  %v2120_v10 = vrot.slane %v636_v58, 9  ;;  %4032 = sst [smem:[#allocation21_spill]] %s2963_s8  ;;  %s3023_s20 = sld [smem:[#allocation9 + $0x10e]] }
  0xa8   : > { %v650_v11 = vmul.f32 %v648_v41, %v2806_v9  ;;  %v1626_v13 = vmul.f32 %v1625_v2, %v2782_v0  ;;  %v761_v14 = vrot.slane %v747_v59, %v2849_v47  ;;  %v757_v15 = vrot.slane %v2851_v48, %v2864_v60  ;;  %4050 = sst [smem:[#allocation39_spill]] %s3006_s0  ;;  %s3025_s4 = sld [smem:[#allocation9 + $0x10f]] }
  0xa9   : > { %v1621_v17 = vstv %s2853_s14  ;;  %v1639_v18 = vstv %s2855_s25  ;;  %v818_v20 = vadd.f32 %v2145_v61, %v804_v63  ;;  %v659_v21 = vadd.f32 %v2122_v5, %v645_v4  ;;  %4033 = sst [smem:[#allocation22_spill]] %s2965_s3  ;;  %s2973_s14 = sld [smem:[#allocation9 + $0x8a]] }
  0xaa   : > { %1262 = vrot.lane.b32.xlu1 %v2782_v0, %s2535_s7  ;;  %1001 = vrot.lane.b32.xlu0 %v993_v29, %s2534_s11  ;;  %v2125_v22 = vrot.slane %v663_v1, 11  ;;  %v2146_v23 = vrot.slane %v809_v6, 11  ;;  %v805_v24 = vadd.f32 %v2143_v3, %v791_v8  ;;  %v646_v25 = vadd.f32 %v2120_v10, %v632_v7  ;;  %s2967_s11 = sld [smem:[#allocation9 + $0x83]]  ;;  %s3027_s18 = sld [smem:[#allocation9]] }
  0xab   : > { %v2123_v26 = vrot.slane %v650_v11, 10  ;;  %v664_v27 = vmul.f32 %v662_v54, %v2806_v9  ;;  %v1622_v28 = vmul.f32 %v1621_v17, %v2782_v0  ;;  %v2228_v29 = vrot.slane %v1626_v13, 9  ;;  %s2975_s25 = sld [smem:[#allocation9 + $0x8b]]  ;;  %4052 = sst [smem:[#allocation41_spill]] %s3019_s17 }
  0xac   : > { %v1640_v30 = vmul.f32 %v1639_v18, %v2782_v0  ;;  %v1653_v31 = vstv %s2870_s22  ;;  %v1627_v32 = vmul.f32 %v1625_v2, %v2885_v19  ;;  %v829_v33 = vrot.slane %v818_v20, %v2864_v60  ;;  %4035 = sst [smem:[#allocation24_spill]] %s2969_s23  ;;  %s2977_s22 = sld [smem:[#allocation9 + $0x8c]] }
  0xad   : > { %v825_v34 = vrot.slane %v818_v20, %v2849_v47  ;;  %v1697_v35 = vstv %s2874_s30  ;;  %v673_v9 = vadd.f32 %v2125_v22, %v659_v21  ;;  %v819_v36 = vadd.f32 %v2146_v23, %v805_v24  ;;  %s2979_s30 = sld [smem:[#allocation9 + $0x8d]]  ;;  %4051 = sst [smem:[#allocation40_spill]] %s3012_s19 }
  0xae   : > { %1266 = vrot.lane.b32.xlu1 %v1258_v43, %s2535_s7  ;;  %1264 = vrot.lane.b32.xlu0 %v2842_v39, %s2535_s7  ;;  %v660_v37 = vadd.f32 %v2123_v26, %v646_v25  ;;  %v2126_v38 = vrot.slane %v664_v27, 11  ;;  %v1636_v40 = vadd.f32 %v2228_v29, %v1622_v28  ;;  %v2231_v41 = vrot.slane %v1640_v30, 10  ;;  %s2971_s7 = sld [smem:[#allocation9 + $0x89]]  ;;  %4053 = sst [smem:[#allocation42_spill]] %s3023_s20 }
  0xaf   : > { %v1654_v42 = vmul.f32 %v1653_v31, %v2782_v0  ;;  %v1641_v43 = vmul.f32 %v1639_v18, %v2885_v19  ;;  %v1623_v44 = vmul.f32 %v1621_v17, %v2885_v19  ;;  %v2229_v45 = vrot.slane %v1627_v32, 9  ;;  %4037 = sst [smem:[#allocation26_spill]] %s2973_s14  ;;  %s3032_s19 = sld [smem:[#allocation9 + $0x93]] }
  0xb0   : > { %v1698_v46 = vmul.f32 %v1697_v35, %v2782_v0  ;;  %v1693_v48 = vstv %s2887_s26  ;;  %v1711_v49 = vstv %s2889_s5  ;;  %v680_v50 = vrot.slane %v673_v9, %v2849_v47  ;;  %4034 = sst [smem:[#allocation23_spill]] %s2967_s11  ;;  %s2983_s26 = sld [smem:[#allocation9 + $0x8f]] }
  0xb1   : > { %v833_v51 = vrot.slane %v819_v36, %v2849_v47  ;;  %v674_v52 = vadd.f32 %v2126_v38, %v660_v37  ;;  %v1552_v53 = vstv %s2893_s1  ;;  %v1650_v54 = vadd.f32 %v2231_v41, %v1636_v40  ;;  %4038 = sst [smem:[#allocation27_spill]] %s2975_s25  ;;  %s2985_s5 = sld [smem:[#allocation9 + $0x100]] }
  0xb2   : > { %1408 = vrot.lane.b32.xlu1 %v2842_v39, %s2536_s9  ;;  %1406 = vrot.lane.b32.xlu0 %v2782_v0, %s2536_s9  ;;  %v2234_v55 = vrot.slane %v1654_v42, 11  ;;  %v2232_v56 = vrot.slane %v1641_v43, 10  ;;  %v1655_v57 = vmul.f32 %v1653_v31, %v2885_v19  ;;  %v1637_v58 = vadd.f32 %v2229_v45, %v1623_v44  ;;  %4039 = sst [smem:[#allocation28_spill]] %s2977_s22  ;;  %s2989_s1 = sld [smem:[#allocation9 + $0x102]] }
  0xb3   : > { %v1694_v59 = vmul.f32 %v1693_v48, %v2782_v0  ;;  %v2238_v61 = vrot.slane %v1698_v46, 9  ;;  %v684_v63 = vrot.slane %v673_v9, %v2864_v60  ;;  %v1725_v1 = vstv %s2902_s27  ;;  %4040 = sst [smem:[#allocation29_spill]] %s2979_s30  ;;  %s2991_s27 = sld [smem:[#allocation9 + $0x91]] }
  0xb4   : > { %v1553_v2 = vmul.f32 %v1552_v53, %v2782_v0  ;;  %v688_v4 = vrot.slane %v674_v52, %v2849_v47  ;;  %v1548_v5 = vstv %s2906_s15  ;;  %v1566_v6 = vstv %s2908_s10  ;;  %4036 = sst [smem:[#allocation25_spill]] %s2971_s7  ;;  %s2993_s15 = sld [smem:[#allocation9 + $0x103]] }
  0xb5   : > { %v1699_v7 = vmul.f32 %v1697_v35, %v2885_v19  ;;  %v1664_v8 = vadd.f32 %v2234_v55, %v1650_v54  ;;  %v2235_v3 = vrot.slane %v1655_v57, 11  ;;  %v1651_v10 = vadd.f32 %v2232_v56, %v1637_v58  ;;  %s2995_s10 = sld [smem:[#allocation9 + $0x111]]  ;;  %4054 = sst [smem:[#allocation43_spill]] %s3025_s4  ;;  %v3029_v57 = vld [vmem:[#allocation2 + $0x4] sm:$0xff] }
  0xb6   : > { %762 = vrot.lane.b32.xlu1 %v753_v62, %s2537_s29  ;;  %1410 = vrot.lane.b32.xlu0 %v1402_v12, %s2536_s9  ;;  %v1712_v62 = vmul.f32 %v1711_v49, %v2782_v0  ;;  %v1708_v11 = vadd.f32 %v2238_v61, %v1694_v59  ;;  %v1726_v13 = vmul.f32 %v1725_v1, %v2782_v0  ;;  %v1580_v18 = vstv %s2916_s6  ;;  %s2981_s9 = sld [smem:[#allocation9 + $0x8e]]  ;;  %4042 = sst [smem:[#allocation31_spill]] %s2983_s26 }
  0xb7   : > { %v1567_v17 = vmul.f32 %v1566_v6, %v2782_v0  ;;  %v1695_v20 = vmul.f32 %v1693_v48, %v2885_v19  ;;  %v2239_v21 = vrot.slane %v1699_v7, 9  ;;  %v1713_v22 = vmul.f32 %v1711_v49, %v2885_v19  ;;  %4043 = sst [smem:[#allocation32_spill]] %s2985_s5  ;;  %s3000_s6 = sld [smem:[#allocation9 + $0x108]] }
  0xb8   : > { %v2241_v12 = vrot.slane %v1712_v62, 10  ;;  %v1554_v23 = vmul.f32 %v1552_v53, %v2885_v19  ;;  %v1671_v24 = vrot.slane %v1664_v8, %v2849_v47  ;;  %v1665_v25 = vadd.f32 %v2235_v3, %v1651_v10  ;;  %4045 = sst [smem:[#allocation34_spill]] %s2989_s1  ;;  %s3034_s0 = sld [smem:[#allocation9 + $0x1]] }
  0xb9   : > { %v2244_v27 = vrot.slane %v1726_v13, 11  ;;  %v1581_v28 = vmul.f32 %v1580_v18, %v2782_v0  ;;  %v2221_v30 = vrot.slane %v1567_v17, 10  ;;  %v1727_v31 = vmul.f32 %v1725_v1, %v2885_v19  ;;  %4055 = sst [smem:[#allocation44_spill]] %s3027_s18  ;;  %s3037_s17 = sld [smem:[#allocation9 + $0x11]] }
  0xba   : > { %766 = vrot.lane.b32.xlu1 %v761_v14, %s2537_s29  ;;  %764 = vrot.lane.b32.xlu0 %v757_v15, %s2537_s29  ;;  %v1549_v14 = vmul.f32 %v1548_v5, %v2782_v0  ;;  %v2218_v15 = vrot.slane %v1553_v2, 9  ;;  %v1722_v26 = vadd.f32 %v2241_v12, %v1708_v11  ;;  %v1550_v32 = vmul.f32 %v1548_v5, %v2885_v19  ;;  %4046 = sst [smem:[#allocation35_spill]] %s2993_s15  ;;  %s3041_s18 = sld [smem:[#allocation9 + $0x2]] }
  0xbb   : > { %v2219_v35 = vrot.slane %v1554_v23, 9  ;;  %v1568_v9 = vmul.f32 %v1566_v6, %v2885_v19  ;;  %v1679_v36 = vrot.slane %v1665_v25, %v2849_v47  ;;  %v1675_v37 = vrot.slane %v1664_v8, %v2864_v60  ;;  %s3043_s4 = sld [smem:[#allocation9 + $0x113]] }
  0xbc   : > { %v1563_v29 = vadd.f32 %v2218_v15, %v1549_v14  ;;  %v1736_v38 = vadd.f32 %v2244_v27, %v1722_v26  ;;  %v2224_v41 = vrot.slane %v1581_v28, 11  ;;  %v2245_v42 = vrot.slane %v1727_v31, 11  ;;  %4041 = sst [smem:[#allocation30_spill]] %s2981_s9 }
  0xbd   : > { %v1564_v43 = vadd.f32 %v2219_v35, %v1550_v32  ;;  %v1582_v44 = vmul.f32 %v1580_v18, %v2885_v19  ;;  %v2998_v56 = vand.u32 127, %v448_v16  ;;  %4047 = sst [smem:[#allocation36_spill]] %s3000_s6  ;;  %v1181_v58 = vstv %s2991_s27  ;;  %s3048_s27 = sld [smem:[#allocation9 + $0x3]] }
  0xbe   : > { %836 = vrot.lane.b32.xlu1 %v829_v33, %s2537_s29  ;;  %834 = vrot.lane.b32.xlu0 %v825_v34, %s2537_s29  ;;  %v1709_v33 = vadd.f32 %v2239_v21, %v1695_v20  ;;  %v2242_v34 = vrot.slane %v1713_v22, 10  ;;  %v1577_v40 = vadd.f32 %v2221_v30, %v1563_v29  ;;  %v1747_v45 = vrot.slane %v1736_v38, %v2864_v60  ;;  %4056 = sst [smem:[#allocation45_spill]] %s3034_s0  ;;  %s3054_s0 = sld [smem:[#allocation9 + $0x9]] }
  0xbf   : > { %v1743_v46 = vrot.slane %v1736_v38, %v2849_v47  ;;  %v3017_v16 = vadd.s32 128, %v2998_v56  ;;  %v1221_v59 = vstv %s2995_s10  ;;  %v455_v61 = vand.u32 15, %v2998_v56  ;;  %s3050_s10 = sld [smem:[#allocation9 + $0x8]] }
  0xc0   : > { %v1591_v48 = vadd.f32 %v2224_v41, %v1577_v40  ;;  %4057 = sst [smem:[#allocation46_spill]] %s3041_s18  ;;  %v548_v1 = vstv %s2963_s8  ;;  %v560_v2 = vstv %s2965_s3  ;;  %v572_v5 = vstv %s2967_s11  ;;  %s3056_s18 = sld [smem:[#allocation9 + $0xa]] }
  0xc1   : > { %v462_v62 = vand.u32 15, %v3017_v16  ;;  %v1178_v6 = vstv %s3008_s2  ;;  %v1189_v7 = vstv %s3010_s21  ;;  %v1222_v8 = vmul.f32 %v1221_v59, %v3029_v57  ;;  %s3065_s3 = sld [smem:[#allocation9 + $0x10]]  ;;  %s3072_s11 = sld [smem:[#allocation9 + $0xb]] }
  0xc2   : > { %689 = vrot.lane.b32.xlu1 %v680_v50, %s2537_s29  ;;  %838 = vrot.lane.b32.xlu0 %v833_v51, %s2537_s29  ;;  %v2225_v51 = vrot.slane %v1582_v44, 11  ;;  %v1598_v52 = vrot.slane %v1591_v48, %v2849_v47  ;;  %v1602_v55 = vrot.slane %v1591_v48, %v2864_v60  ;;  %v909_v3 = vstv %s2969_s23  ;;  %s3074_s2 = sld [smem:[#allocation9 + $0xc]]  ;;  %s3078_s21 = sld [smem:[#allocation9 + $0xd]] }
  0xc3   : > { %v913_v10 = vstv %s2971_s7  ;;  %v925_v11 = vstv %s2973_s14  ;;  %v1218_v12 = vstv %s3014_s28  ;;  %v937_v13 = vstv %s2975_s25  ;;  %s3080_s28 = sld [smem:[#allocation9 + $0xe]]  ;;  %s4066_s25 = sld [smem:[#allocation39_spill]] }
  0xc4   : > { %v1053_v14 = vstv %s2977_s22  ;;  %v1057_v15 = vstv %s2979_s30  ;;  %v1229_v17 = vstv %s3021_s16  ;;  %v1069_v18 = vstv %s2981_s9  ;;  %s3085_s22 = sld [smem:[#allocation9 + $0xf]]  ;;  %s3088_s16 = sld [smem:[#allocation9 + $0x94]] }
  0xc5   : > { %4058 = sst [smem:[#allocation47_spill]] %s3050_s10  ;;  %v1179_v20 = vmul.f32 %v1178_v6, %v3029_v57  ;;  %v1190_v22 = vmul.f32 %v1189_v7, %v3029_v57  ;;  %v1081_v23 = vstv %s2983_s26  ;;  %v1219_v25 = vmul.f32 %v1218_v12, %v3029_v57  ;;  %s3093_s9 = sld [smem:[#allocation9 + $0x95]] }
  0xc6   : > { %693 = vrot.lane.b32.xlu1 %v688_v4, %s2537_s29  ;;  %691 = vrot.lane.b32.xlu0 %v684_v63, %s2537_s29  ;;  %s2987_s29 = sld [smem:[#allocation9 + $0x101]]  ;;  %v544_v63 = vstv %s2961_s13  ;;  %v1182_v4 = vmul.f32 %v1181_v58, %v3029_v57  ;;  %4059 = sst [smem:[#allocation48_spill]] %s3056_s18  ;;  %v2187_v26 = vrot.slane %v1222_v8, 9  ;;  %v586_v27 = vstv %s2985_s5 }
  0xc7   : > { %s3067_s13 = sld [smem:[#allocation9 + $0x12]]  ;;  %4060 = sst [smem:[#allocation49_spill]] %s3072_s11  ;;  %v1230_v29 = vmul.f32 %v1229_v17, %v3029_v57  ;;  %v1141_v30 = vstv %s3037_s17  ;;  %v602_v31 = vstv %s2989_s1  ;;  %v614_v32 = vstv %s2993_s15 }
  0xc8   : > { %4061 = sst [smem:[#allocation50_spill]] %s3074_s2  ;;  %v2180_v21 = vrot.slane %v1182_v4, 9  ;;  %s3097_s26 = sld [smem:[#allocation9 + $0x13]]  ;;  %v1227_v41 = vadd.f32 %v2187_v26, %v1219_v25  ;;  %v1111_v48 = vstv %s3023_s20  ;;  %v530_v59 = vstv %s3048_s27 }
  0xc9   : > { %4062 = sst [smem:[#allocation51_spill]] %s3078_s21  ;;  %s3104_s30 = sld [smem:[#allocation9 + $0x97]]  ;;  %v979_v40 = vstv %s4066_s25  ;;  %vm3164_vm3 = vcmp.ne.s32.totalorder %v455_v61, 0  ;;  %vm3170_vm4 = vcmp.ne.s32.totalorder %v462_v62, 0  ;;  %vm3208_vm6 = vcmp.ne.s32.totalorder %v455_v61, 15 }
  0xca   : > { %1769 = vrot.lane.b32.xlu1 %v2842_v39, %s2538_s12  ;;  %1767 = vrot.lane.b32.xlu0 %v2782_v0, %s2538_s12  ;;  %v1723_v39 = vadd.f32 %v2242_v34, %v1709_v33  ;;  %v2222_v0 = vrot.slane %v1568_v9, 10  ;;  %4063 = sst [smem:[#allocation52_spill]] %s3080_s28  ;;  %v951_v33 = vstv %s3000_s6  ;;  %v1237_v34 = vstv %s3043_s4  ;;  %s4067_s5 = sld [smem:[#allocation40_spill]] }
  0xcb   : > { %4064 = sst [smem:[#allocation53_spill]] %s3085_s22  ;;  %v1187_v9 = vadd.f32 %v2180_v21, %v1179_v20  ;;  %s3111_s1 = sld [smem:[#allocation9 + $0x114]]  ;;  %vm3214_vm7 = vcmp.ne.s32.totalorder %v462_v62, 15 }
  0xcc   : > { %v1737_v49 = vadd.f32 %v2245_v42, %v1723_v39  ;;  %v1578_v50 = vadd.f32 %v2222_v0, %v1564_v43  ;;  %4044 = sst [smem:[#allocation33_spill]] %s2987_s29  ;;  %v590_v28 = vstv %s2987_s29  ;;  %s3109_s17 = sld [smem:[#allocation9 + $0x98]]  ;;  %v1142_v42 = vmul.f32 %v1141_v30, %v3029_v57 }
  0xcd   : > { %4065 = sst [smem:[#allocation54_spill]] %s3088_s16  ;;  %s4068_s29 = sld [smem:[#allocation41_spill]]  ;;  %v2189_v39 = vrot.slane %v1230_v29, 10  ;;  %v1238_v43 = vmul.f32 %v1237_v34, %v3029_v57  ;;  %v1138_v0 = vstv %s3065_s3  ;;  %v1149_v44 = vstv %s3067_s13 }
  0xce   : > { %1680 = vrot.lane.b32.xlu1 %v1671_v24, %s2539_s24  ;;  %1771 = vrot.lane.b32.xlu0 %v2885_v19, %s2538_s12  ;;  %v1751_v53 = vrot.slane %v1737_v49, %v2849_v47  ;;  %v1592_v54 = vadd.f32 %v2225_v51, %v1578_v50  ;;  %s3002_s12 = sld [smem:[#allocation9 + $0x109]]  ;;  %v1197_v24 = vstv %s3032_s19  ;;  %s3102_s19 = sld [smem:[#allocation9 + $0x96]]  ;;  %v1150_v58 = vmul.f32 %v1149_v44, %v3029_v57 }
  0xcf   : > { %s4071_s6 = sld [smem:[#allocation43_spill]]  ;;  %s3115_s15 = sld [smem:[#allocation9 + $0x99]]  ;;  %v1235_v4 = vadd.f32 %v2189_v39, %v1227_v41  ;;  %v2191_v6 = vrot.slane %v1238_v43, 11  ;;  %v1157_v7 = vstv %s3097_s26 }
  0xd0   : > { %v1606_v19 = vrot.slane %v1592_v54, %v2849_v47  ;;  %s4073_s4 = sld [smem:[#allocation44_spill]]  ;;  %s4074_s14 = sld [smem:[#allocation45_spill]] }
  0xd1   : > { %4070 = sst [smem:[#allocation41_spill]] %s3111_s1  ;;  %s3120_s23 = sld [smem:[#allocation9 + $0x9b]]  ;;  %v3192_v39 = vadd.f32 %v2191_v6, %v1235_v4 }
  0xd2   : > { %1684 = vrot.lane.b32.xlu1 %v1679_v36, %s2539_s24  ;;  %1682 = vrot.lane.b32.xlu0 %v1675_v37, %s2539_s24  ;;  %v2182_v36 = vrot.slane %v1190_v22, 10  ;;  %v1198_v37 = vmul.f32 %v1197_v24, %v3029_v57  ;;  %4069 = sst [smem:[#allocation40_spill]] %s3109_s17  ;;  %s4076_s7 = sld [smem:[#allocation46_spill]] }
  0xd3   : > { %s3123_s8 = sld [smem:[#allocation9 + $0x115]]  ;;  %s3131_s25 = sld [smem:[#allocation9 + $0x116]] }
  0xd4   : > { %4048 = sst [smem:[#allocation37_spill]] %s3002_s12  ;;  %v955_v35 = vstv %s3002_s12  ;;  %s3117_s12 = sld [smem:[#allocation9 + $0x9a]] }
  0xd5   : > { %4072 = sst [smem:[#allocation55_spill]] %s3115_s15  ;;  %v1123_v49 = vstv %s4071_s6  ;;  %s3139_s3 = sld [smem:[#allocation9 + $0xa1]] }
  0xd6   : > { %1754 = vrot.lane.b32.xlu1 %v1747_v45, %s2539_s24  ;;  %1752 = vrot.lane.b32.xlu0 %v1743_v46, %s2539_s24  ;;  %v1095_v45 = vstv %s4067_s5  ;;  %v1099_v46 = vstv %s4068_s29  ;;  %s3142_s13 = sld [smem:[#allocation9 + $0xa2]]  ;;  %s3144_s6 = sld [smem:[#allocation9 + $0xa3]] }
  0xd7   : > { %4075 = sst [smem:[#allocation56_spill]] %s3120_s23  ;;  %v502_v50 = vstv %s4073_s4  ;;  %v506_v51 = vstv %s4074_s14  ;;  %s3137_s23 = sld [smem:[#allocation9 + $0xa0]] }
  0xd8   : > { %v518_v54 = vstv %s4076_s7  ;;  %s3149_s4 = sld [smem:[#allocation9 + $0x118]]  ;;  %s3151_s14 = sld [smem:[#allocation9 + $0x119]] }
  0xd9   : > { %4077 = sst [smem:[#allocation57_spill]] %s3123_s8  ;;  %s3158_s7 = sld [smem:[#allocation9 + $0x11a]] }
  0xda   : > { %1607 = vrot.lane.b32.xlu1 %v1598_v52, %s2539_s24  ;;  %1756 = vrot.lane.b32.xlu0 %v1751_v53, %s2539_s24  ;;  %4078 = sst [smem:[#allocation58_spill]] %s3131_s25  ;;  %v1195_v52 = vadd.f32 %v2182_v36, %v1187_v9  ;;  %v2184_v53 = vrot.slane %v1198_v37, 11  ;;  %s3160_s20 = sld [smem:[#allocation9 + $0x11b]]  ;;  %v2175_v9 = vrot.slane %v1150_v58, 10  ;;  %v1158_v36 = vmul.f32 %v1157_v7, %v3029_v57 }
  0xdb   : > { %s3179_s26 = sld [smem:[#allocation9 + $0x120]]  ;;  %s3181_s11 = sld [smem:[#allocation9 + $0x14]] }
  0xdc   : > { %v3177_v29 = vadd.f32 %v2184_v53, %v1195_v52  ;;  %s3184_s18 = sld [smem:[#allocation9 + $0x121]]  ;;  %s3186_s10 = sld [smem:[#allocation9 + $0x122]]  ;;  %v2177_v7 = vrot.slane %v1158_v36, 11 }
  0xdd   : > { %4080 = sst [smem:[#allocation60_spill]] %s3137_s23  ;;  %s3194_s2 = sld [smem:[#allocation9 + $0x123]] }
  0xde   : > { %1611 = vrot.lane.b32.xlu1 %v1606_v19, %s2539_s24  ;;  %1609 = vrot.lane.b32.xlu0 %v1602_v55, %s2539_s24  ;;  %s3004_s24 = sld [smem:[#allocation9 + $0x10a]]  ;;  %v1139_v19 = vmul.f32 %v1138_v0, %v3029_v57  ;;  %v2173_v55 = vrot.slane %v1142_v42, 9  ;;  %s3196_s21 = sld [smem:[#allocation9 + $0x15]] }
  0xdf   : > { %s3202_s22 = sld [smem:[#allocation9 + $0x16]]  ;;  %s3204_s16 = sld [smem:[#allocation9 + $0x17]] }
  0xe0   : > { %v1147_v34 = vadd.f32 %v2173_v55, %v1139_v19  ;;  %s3224_s1 = sld [smem:[#allocation9 + $0x18]]  ;;  %s3226_s17 = sld [smem:[#allocation9 + $0x19]] }
  0xe1   : > { %4085 = sst [smem:[#allocation61_spill]] %s3181_s11  ;;  %s3230_s15 = sld [smem:[#allocation9 + $0x1a]] }
  0xe2   : > { %v1155_v6 = vadd.f32 %v2175_v9, %v1147_v34  ;;  %s3232_s28 = sld [smem:[#allocation9 + $0x1b]]  ;;  %s3243_s25 = sld [smem:[#allocation9 + $0x20]] }
  0xe3   : > { %s3245_s8 = sld [smem:[#allocation9 + $0x21]]  ;;  %s3281_s11 = sld [smem:[#allocation9 + $0x23]] }
  0xe4   : > { %4049 = sst [smem:[#allocation38_spill]] %s3004_s24  ;;  %v967_v38 = vstv %s3004_s24  ;;  %s3133_s24 = sld [smem:[#allocation9 + $0x117]]  ;;  %v3257_v44 = vadd.f32 %v2177_v7, %v1155_v6 }
  0xe5   : > { %4087 = sst [smem:[#allocation62_spill]] %s3196_s21  ;;  %s4132_s5 = sld [smem:[#allocation49_spill]] }
  0xe6   : > { %4088 = sst [smem:[#allocation63_spill]] %s3202_s22  ;;  %s4136_s22 = sld [smem:[#allocation52_spill]] }
  0xe7   : > { %4093 = sst [smem:[#allocation64_spill]] %s3226_s17  ;;  %s4140_s21 = sld [smem:[#allocation53_spill]] }
  0xe8   : > { %4094 = sst [smem:[#allocation65_spill]] %s3230_s15  ;;  %s4148_s27 = sld [smem:[#allocation54_spill]] }
  0xe9   : > { %4095 = sst [smem:[#allocation66_spill]] %s3232_s28  ;;  %s4151_s28 = sld [smem:[#allocation55_spill]] }
  0xea   : > { %4079 = sst [smem:[#allocation59_spill]] %s3133_s24  ;;  %s3251_s24 = sld [smem:[#allocation9 + $0x22]] }
  0xeb   : > { %4096 = sst [smem:[#allocation67_spill]] %s3243_s25  ;;  %s4158_s17 = sld [smem:[#allocation56_spill]] }
  0xec   : > { %4097 = sst [smem:[#allocation68_spill]] %s3245_s8  ;;  %s4125_s8 = sld [smem:[#allocation47_spill]] }
  0xed   : > { %4100 = sst [smem:[#allocation69_spill]] %s3281_s11  ;;  %s4126_s11 = sld [smem:[#allocation48_spill]] }
  0xee   : > { %s4245_s29 = sld [smem:[#allocation74_spill]] }
  0xf0   : > { %4099 = sst [smem:[#allocation21_spill]] %s3251_s24  ;;  %s4133_s24 = sld [smem:[#allocation51_spill]] }
 0x10c   : > { %v493_v16 = vpop.permute.xlu1 %492  ;;  %v489_v62 = vpop.permute.xlu0 %488 }
 0x110   : > { %v854_v56 = vpop.permute.xlu1 %853  ;;  %v491_v34 = vpop.permute.xlu0 %490 }
 0x111   : > { %v495_v52 = vsel %vm494_vm2, %v489_v62, %v491_v34  ;;  %v496_v61 = vsel %vm494_vm2, %v491_v34, %v493_v16 }
 0x112   : > { %v3265_v43 = vsel %vm3164_vm3, %v495_v52, 0.0  ;;  %v3269_v58 = vsel %vm3170_vm4, %v496_v61, 0.0 }
 0x113   : > { %v549_v6 = vmul.f32 %v548_v1, %v3265_v43  ;;  %v550_v16 = vmul.f32 %v548_v1, %v3269_v58  ;;  %v573_v9 = vmul.f32 %v572_v5, %v3265_v43 }
 0x114   : > { %v858_v52 = vpop.permute.xlu1 %857  ;;  %v856_v34 = vpop.permute.xlu0 %855 }
 0x115   : > { %v860_v62 = vsel %vm859_vm5, %v854_v56, %v856_v34  ;;  %v861_v7 = vsel %vm859_vm5, %v856_v34, %v858_v52  ;;  %v553_v36 = vrot.slane %v549_v6, 1  ;;  %v554_v0 = vrot.slane %v550_v16, 1 }
 0x116   : > { %v3293_v55 = vsel %vm3208_vm6, %v860_v62, 0.0  ;;  %v3297_v61 = vsel %vm3214_vm7, %v861_v7, 0.0  ;;  %v545_v56 = vmul.f32 %v544_v63, %v3265_v43  ;;  %v546_v6 = vmul.f32 %v544_v63, %v3269_v58 }
 0x117   : > { %v561_v16 = vmul.f32 %v560_v2, %v3265_v43  ;;  %v562_v34 = vmul.f32 %v560_v2, %v3269_v58  ;;  %v914_v1 = vmul.f32 %v913_v10, %v3293_v55  ;;  %v915_v63 = vmul.f32 %v913_v10, %v3297_v61 }
 0x118   : > { %v1000_v52 = vpop.permute.xlu1 %999  ;;  %v998_v7 = vpop.permute.xlu0 %997  ;;  %v557_v62 = vadd.f32 %v553_v36, %v545_v56  ;;  %v558_v19 = vadd.f32 %v554_v0, %v546_v6  ;;  %v910_v37 = vmul.f32 %v909_v3, %v3293_v55  ;;  %v926_v30 = vmul.f32 %v925_v11, %v3293_v55 }
 0x119   : > { %v1004_v4 = vsel %vm1003_vm8, %v998_v7, %v1000_v52  ;;  %v918_v42 = vrot.slane %v914_v1, 1  ;;  %v919_v41 = vrot.slane %v915_v63, 1  ;;  %v565_v26 = vrot.slane %v561_v16, 2 }
 0x11a   : > { %v3329_v2 = vsel %vm3164_vm3, %v1004_v4, 0.0  ;;  %v911_v10 = vmul.f32 %v909_v3, %v3297_v61  ;;  %v927_v0 = vmul.f32 %v925_v11, %v3297_v61  ;;  %v566_v4 = vrot.slane %v562_v34, 2 }
 0x11b   : > { %v574_v1 = vmul.f32 %v572_v5, %v3269_v58  ;;  %v577_v7 = vrot.slane %v573_v9, 3  ;;  %v922_v63 = vadd.f32 %v918_v42, %v910_v37  ;;  %v569_v3 = vadd.f32 %v565_v26, %v557_v62 }
 0x11c   : > { %v1263_v56 = vpop.permute.xlu1 %1262  ;;  %v1002_v6 = vpop.permute.xlu0 %1001  ;;  %v923_v24 = vadd.f32 %v919_v41, %v911_v10  ;;  %v1058_v11 = vmul.f32 %v1057_v15, %v3329_v2  ;;  %v570_v34 = vadd.f32 %v566_v4, %v558_v19  ;;  %v930_v25 = vrot.slane %v926_v30, 2 }
 0x11d   : > { %v1005_v16 = vsel %vm1003_vm8, %v1000_v52, %v1002_v6  ;;  %v938_v5 = vmul.f32 %v937_v13, %v3293_v55  ;;  %v931_v37 = vrot.slane %v927_v0, 2  ;;  %v939_v26 = vmul.f32 %v937_v13, %v3297_v61 }
 0x11e   : > { %v3350_v36 = vsel %vm3170_vm4, %v1005_v16, 0.0  ;;  %v1062_v42 = vrot.slane %v1058_v11, 1  ;;  %v578_v52 = vrot.slane %v574_v1, 3  ;;  %v934_v10 = vadd.f32 %v930_v25, %v922_v63 }
 0x11f   : > { %v1059_v41 = vmul.f32 %v1057_v15, %v3350_v36  ;;  %v1054_v19 = vmul.f32 %v1053_v14, %v3329_v2  ;;  %v1070_v30 = vmul.f32 %v1069_v18, %v3329_v2  ;;  %v935_v6 = vadd.f32 %v931_v37, %v923_v24 }
 0x120   : > { %v1267_v9 = vpop.permute.xlu1 %1266  ;;  %v1265_v62 = vpop.permute.xlu0 %1264  ;;  %v1055_v0 = vmul.f32 %v1053_v14, %v3350_v36  ;;  %v1071_v15 = vmul.f32 %v1069_v18, %v3350_v36  ;;  %v581_v25 = vadd.f32 %v577_v7, %v569_v3  ;;  %v582_v1 = vadd.f32 %v578_v52, %v570_v34 }
 0x121   : > { %v1063_v13 = vrot.slane %v1059_v41, 1  ;;  %v1269_v4 = vsel %vm1268_vm9, %v1263_v56, %v1265_v62  ;;  %v1066_v63 = vadd.f32 %v1062_v42, %v1054_v19  ;;  %v1270_v16 = vsel %vm1268_vm9, %v1265_v62, %v1267_v9 }
 0x122   : > { %v942_v24 = vrot.slane %v938_v5, 3  ;;  %v943_v11 = vrot.slane %v939_v26, 3  ;;  %v1074_v41 = vrot.slane %v1070_v30, 2  ;;  %v1082_v18 = vmul.f32 %v1081_v23, %v3329_v2 }
 0x123   : > { %v1067_v37 = vadd.f32 %v1063_v13, %v1055_v0  ;;  %v1083_v56 = vmul.f32 %v1081_v23, %v3350_v36  ;;  %v591_v7 = vmul.f32 %v590_v28, %v3265_v43  ;;  %v3386_v3 = vsel %vm3208_vm6, %v1269_v4, 0.0 }
 0x124   : > { %v1409_v20 = vpop.permute.xlu1 %1408  ;;  %v1407_v14 = vpop.permute.xlu0 %1406  ;;  %v946_v34 = vadd.f32 %v942_v24, %v934_v10  ;;  %v3388_v5 = vadd.f32 %v943_v11, %v935_v6  ;;  %v1075_v26 = vrot.slane %v1071_v15, 2  ;;  %v3392_v42 = vsel %vm3214_vm7, %v1270_v16, 0.0 }
 0x125   : > { %v1078_v9 = vadd.f32 %v1074_v41, %v1066_v63  ;;  %v587_v23 = vmul.f32 %v586_v27, %v3265_v43  ;;  %v595_v62 = vrot.slane %v591_v7, 1  ;;  %v1413_v52 = vsel %vm1412_vm10, %v1407_v14, %v1409_v20 }
 0x126   : > { %v1079_v19 = vadd.f32 %v1075_v26, %v1067_v37  ;;  %v603_v10 = vmul.f32 %v602_v31, %v3265_v43  ;;  %v956_v30 = vmul.f32 %v955_v35, %v3293_v55  ;;  %v1086_v13 = vrot.slane %v1082_v18, 3 }
 0x127   : > { %v1087_v15 = vrot.slane %v1083_v56, 3  ;;  %v615_v4 = vmul.f32 %v614_v32, %v3265_v43  ;;  %v1100_v63 = vmul.f32 %v1099_v46, %v3329_v2  ;;  %v599_v16 = vadd.f32 %v595_v62, %v587_v23 }
 0x128   : > { %v763_v6 = vpop.permute.xlu1 %762  ;;  %v1411_v0 = vpop.permute.xlu0 %1410  ;;  %v952_v24 = vmul.f32 %v951_v33, %v3293_v55  ;;  %v960_v11 = vrot.slane %v956_v30, 1  ;;  %v968_v37 = vmul.f32 %v967_v38, %v3293_v55  ;;  %v3418_v14 = vsel %vm3164_vm3, %v1413_v52, 0.0 }
 0x129   : > { %v1096_v41 = vmul.f32 %v1095_v45, %v3329_v2  ;;  %v1104_v18 = vrot.slane %v1100_v63, 1  ;;  %v1112_v56 = vmul.f32 %v1111_v48, %v3329_v2  ;;  %v1090_v7 = vadd.f32 %v1086_v13, %v1078_v9 }
 0x12a   : > { %v1091_v26 = vadd.f32 %v1087_v15, %v1079_v19  ;;  %v607_v23 = vrot.slane %v603_v10, 2  ;;  %v980_v62 = vmul.f32 %v979_v40, %v3293_v55  ;;  %v1414_v30 = vsel %vm1412_vm10, %v1409_v20, %v1411_v0 }
 0x12b   : > { %v964_v17 = vadd.f32 %v960_v11, %v952_v24  ;;  %v1108_v8 = vadd.f32 %v1104_v18, %v1096_v41  ;;  %v592_v63 = vmul.f32 %v590_v28, %v3269_v58  ;;  %v972_v13 = vrot.slane %v968_v37, 2 }
 0x12c   : > { %v767_v21 = vpop.permute.xlu1 %766  ;;  %v765_v52 = vpop.permute.xlu0 %764  ;;  %v611_v19 = vadd.f32 %v607_v23, %v599_v16  ;;  %v1116_v10 = vrot.slane %v1112_v56, 2  ;;  %v1124_v15 = vmul.f32 %v1123_v49, %v3329_v2  ;;  %v604_v0 = vmul.f32 %v602_v31, %v3269_v58 }
 0x12d   : > { %v768_v12 = vsel %vm695_vm11, %v763_v6, %v765_v52  ;;  %v769_v9 = vsel %vm695_vm11, %v765_v52, %v767_v21  ;;  %v596_v20 = vrot.slane %v592_v63, 1  ;;  %v3443_v24 = vsel %vm3170_vm4, %v1414_v30, 0.0 }
 0x12e   : > { %v772_v28 = vadd.f32 %v768_v12, %v581_v25  ;;  %v619_v6 = vrot.slane %v615_v4, 3  ;;  %v588_v16 = vmul.f32 %v586_v27, %v3269_v58  ;;  %v773_v11 = vadd.f32 %v769_v9, %v582_v1 }
 0x12f   : > { %v976_v41 = vadd.f32 %v972_v13, %v964_v17  ;;  %v984_v18 = vrot.slane %v980_v62, 3  ;;  %v1120_v56 = vadd.f32 %v1116_v10, %v1108_v8  ;;  %v957_v12 = vmul.f32 %v955_v35, %v3297_v61 }
 0x130   : > { %v837_v37 = vpop.permute.xlu1 %836  ;;  %v835_v23 = vpop.permute.xlu0 %834  ;;  %v623_v31 = vadd.f32 %v619_v6, %v611_v19  ;;  %v600_v30 = vadd.f32 %v596_v20, %v588_v16  ;;  %v1128_v25 = vrot.slane %v1124_v15, 3  ;;  %v608_v4 = vrot.slane %v604_v0, 2 }
 0x131   : > { %v840_v22 = vsel %vm695_vm11, %v835_v23, %v837_v37  ;;  %v616_v27 = vmul.f32 %v614_v32, %v3269_v58  ;;  %v969_v17 = vmul.f32 %v967_v38, %v3297_v61  ;;  %v948_v8 = vadd.f32 %v946_v34, %v772_v28 }
 0x132   : > { %v844_v1 = vadd.f32 %v840_v22, %v623_v31  ;;  %v953_v62 = vmul.f32 %v951_v33, %v3297_v61  ;;  %v961_v21 = vrot.slane %v957_v12, 1  ;;  %v949_v35 = vadd.f32 %v3388_v5, %v773_v11 }
 0x133   : > { %v988_v52 = vadd.f32 %v984_v18, %v976_v41  ;;  %v1132_v63 = vadd.f32 %v1128_v25, %v1120_v56  ;;  %v1101_v9 = vmul.f32 %v1099_v46, %v3350_v36  ;;  %v612_v19 = vadd.f32 %v608_v4, %v600_v30 }
 0x134   : > { %v839_v32 = vpop.permute.xlu0 %838  ;;  %v965_v38 = vadd.f32 %v961_v21, %v953_v62  ;;  %v981_v34 = vmul.f32 %v979_v40, %v3297_v61  ;;  %v1113_v33 = vmul.f32 %v1111_v48, %v3350_v36  ;;  %v620_v13 = vrot.slane %v616_v27, 3  ;;  %v3488_v18 = vpop.permute.xlu1 %689 }
 0x135   : > { %v973_v10 = vrot.slane %v969_v17, 2  ;;  %v1097_v5 = vmul.f32 %v1095_v45, %v3350_v36  ;;  %v1105_v15 = vrot.slane %v1101_v9, 1  ;;  %v3474_v20 = vadd.f32 %v1090_v7, %v948_v8 }
 0x136   : > { %v990_v46 = vadd.f32 %v988_v52, %v844_v1  ;;  %v1125_v0 = vmul.f32 %v1123_v49, %v3350_v36  ;;  %v841_v28 = vsel %vm695_vm11, %v837_v37, %v839_v32  ;;  %v507_v48 = vmul.f32 %v506_v51, %v3265_v43 }
 0x137   : > { %v977_v40 = vadd.f32 %v973_v10, %v965_v38  ;;  %v1109_v6 = vadd.f32 %v1105_v15, %v1097_v5  ;;  %v508_v45 = vmul.f32 %v506_v51, %v3269_v58  ;;  %v3486_v16 = vadd.f32 %v1091_v26, %v949_v35 }
 0x138   : > { %v624_v7 = vadd.f32 %v620_v13, %v612_v19  ;;  %v985_v11 = vrot.slane %v981_v34, 3  ;;  %v1117_v41 = vrot.slane %v1113_v33, 2  ;;  %v511_v49 = vrot.slane %v507_v48, 1  ;;  %v692_v51 = vpop.permute.xlu0 %691  ;;  %v694_v15 = vpop.permute.xlu1 %693 }
 0x139   : > { %v512_v37 = vrot.slane %v508_v45, 1  ;;  %v519_v56 = vmul.f32 %v518_v54, %v3265_v43  ;;  %v520_v23 = vmul.f32 %v518_v54, %v3269_v58  ;;  %v3496_v26 = vadd.f32 %v1132_v63, %v990_v46 }
 0x13a   : > { %v845_v31 = vadd.f32 %v841_v28, %v624_v7  ;;  %v503_v22 = vmul.f32 %v502_v50, %v3265_v43  ;;  %v504_v30 = vmul.f32 %v502_v50, %v3269_v58  ;;  %v989_v12 = vadd.f32 %v985_v11, %v977_v40 }
 0x13b   : > { %v1121_v25 = vadd.f32 %v1117_v41, %v1109_v6  ;;  %v1129_v4 = vrot.slane %v1125_v0, 3  ;;  %v531_v54 = vmul.f32 %v530_v59, %v3265_v43  ;;  %v4127_v8 = vstv %s3054_s0  ;;  %s4135_s0 = sld [smem:[#allocation50_spill]] }
 0x13c   : > { %v515_v27 = vadd.f32 %v511_v49, %v503_v22  ;;  %v516_v17 = vadd.f32 %v512_v37, %v504_v30  ;;  %v872_v1 = vmul.f32 %v4127_v8, %v3293_v55  ;;  %v4128_v62 = vmov %v4127_v8  ;;  %v1768_v28 = vpop.permute.xlu0 %1767 }
 0x13d   : > { %v873_v21 = vmul.f32 %v4128_v62, %v3297_v61  ;;  %v523_v35 = vrot.slane %v519_v56, 2  ;;  %v524_v52 = vrot.slane %v520_v23, 2  ;;  %v4129_v50 = vstv %s4125_s8 }
 0x13e   : > { %v868_v63 = vmul.f32 %v4129_v50, %v3293_v55  ;;  %v4130_v9 = vstv %s4126_s11  ;;  %v4131_v43 = vmov %v4129_v50  ;;  %v876_v38 = vrot.slane %v872_v1, 1 }
 0x13f   : > { %v884_v32 = vmul.f32 %v4130_v9, %v3293_v55  ;;  %v869_v19 = vmul.f32 %v4131_v43, %v3297_v61  ;;  %v877_v34 = vrot.slane %v873_v21, 1  ;;  %v4134_v33 = vmov %v4130_v9  ;;  %v1770_v43 = vpop.permute.xlu1 %1769 }
 0x140   : > { %v885_v13 = vmul.f32 %v4134_v33, %v3297_v61  ;;  %v1133_v10 = vadd.f32 %v1129_v4, %v1121_v25  ;;  %v991_v5 = vadd.f32 %v989_v12, %v845_v31  ;;  %v532_v46 = vmul.f32 %v530_v59, %v3269_v58 }
 0x141   : > { %v535_v0 = vrot.slane %v531_v54, 3  ;;  %v527_v40 = vadd.f32 %v523_v35, %v515_v27  ;;  %v528_v6 = vadd.f32 %v524_v52, %v516_v17  ;;  %v880_v48 = vadd.f32 %v876_v38, %v868_v63 }
 0x142   : > { %v881_v45 = vadd.f32 %v877_v34, %v869_v19  ;;  %v888_v7 = vrot.slane %v884_v32, 2  ;;  %v4137_v11 = vstv %s4132_s5  ;;  %v4138_v49 = vstv %s4133_s24  ;;  %v1772_v19 = vpop.permute.xlu0 %1771 }
 0x143   : > { %v896_v41 = vmul.f32 %v4137_v11, %v3293_v55  ;;  %v1016_v37 = vmul.f32 %v4138_v49, %v3329_v2  ;;  %v4139_v56 = vmov %v4138_v49  ;;  %v889_v59 = vrot.slane %v885_v13, 2 }
 0x144   : > { %v1017_v23 = vmul.f32 %v4139_v56, %v3350_v36  ;;  %v4141_v58 = vmov %v4137_v11  ;;  %v4142_v22 = vstv %s4135_s0  ;;  %v4144_v54 = vstv %s4136_s22 }
 0x145   : > { %v897_v31 = vmul.f32 %v4141_v58, %v3297_v61  ;;  %v1012_v30 = vmul.f32 %v4142_v22, %v3329_v2  ;;  %v4143_v12 = vmov %v4142_v22  ;;  %v1020_v4 = vrot.slane %v1016_v37, 1 }
 0x146   : > { %v1013_v25 = vmul.f32 %v4143_v12, %v3350_v36  ;;  %v1021_v55 = vrot.slane %v1017_v23, 1  ;;  %v1028_v27 = vmul.f32 %v4144_v54, %v3329_v2  ;;  %v4145_v17 = vmov %v4144_v54 }
 0x147   : > { %v1029_v8 = vmul.f32 %v4145_v17, %v3350_v36  ;;  %v3552_v1 = vadd.f32 %v1133_v10, %v991_v5  ;;  %v536_v62 = vrot.slane %v532_v46, 3  ;;  %v892_v21 = vadd.f32 %v888_v7, %v880_v48 }
 0x148   : > { %v893_v35 = vadd.f32 %v889_v59, %v881_v45  ;;  %v1024_v61 = vadd.f32 %v1020_v4, %v1012_v30  ;;  %v1025_v52 = vadd.f32 %v1021_v55, %v1013_v25  ;;  %v4146_v50 = vstv %s4140_s21 }
 0x149   : > { %v1040_v63 = vmul.f32 %v4146_v50, %v3329_v2  ;;  %v4147_v9 = vmov %v4146_v50  ;;  %v539_v38 = vadd.f32 %v535_v0, %v527_v40  ;;  %v540_v34 = vadd.f32 %v536_v62, %v528_v6 }
 0x14a   : > { %v3560_v32 = vmul.f32 %v4147_v9, %v3350_v36  ;;  %v900_v33 = vrot.slane %v896_v41, 3  ;;  %v901_v13 = vrot.slane %v897_v31, 3  ;;  %v1032_v10 = vrot.slane %v1028_v27, 2 }
 0x14b   : > { %v1033_v5 = vrot.slane %v1029_v8, 2  ;;  %v696_v46 = vsel %vm695_vm11, %v3488_v18, %v692_v51  ;;  %v697_v2 = vsel %vm695_vm11, %v692_v51, %v694_v15  ;;  %v1774_v0 = vsel %vm1773_vm12, %v1768_v28, %v1770_v43 }
 0x14c   : > { %v3565_v48 = vadd.f32 %v900_v33, %v892_v21  ;;  %v3567_v36 = vadd.f32 %v901_v13, %v893_v35  ;;  %v1775_v40 = vsel %vm1773_vm12, %v1770_v43, %v1772_v19  ;;  %v1036_v6 = vadd.f32 %v1032_v10, %v1024_v61 }
 0x14d   : > { %v3571_v45 = vadd.f32 %v1033_v5, %v1025_v52  ;;  %v1044_v7 = vrot.slane %v1040_v63, 3  ;;  %v1045_v18 = vrot.slane %v3560_v32, 3  ;;  %v3574_v51 = vadd.f32 %v696_v46, %v539_v38 }
 0x14e   : > { %v3576_v15 = vadd.f32 %v697_v2, %v540_v34  ;;  %v4149_v11 = vstv %s3093_s9  ;;  %v3586_v37 = vsel %vm3208_vm6, %v1774_v0, 0.0  ;;  %v3590_v56 = vsel %vm3214_vm7, %v1775_v40, 0.0  ;;  %s4156_s9 = sld [smem:[#allocation40_spill]] }
 0x14f   : > { %v1323_v41 = vmul.f32 %v4149_v11, %v3386_v3  ;;  %v4150_v49 = vmov %v4149_v11  ;;  %v4152_v23 = vstv %s3102_s19  ;;  %v4154_v22 = vstv %s4148_s27  ;;  %s4180_s19 = sld [smem:[#allocation58_spill]] }
 0x150   : > { %v1324_v28 = vmul.f32 %v4150_v49, %v3392_v42  ;;  %v1335_v59 = vmul.f32 %v4152_v23, %v3386_v3  ;;  %v4153_v58 = vmov %v4152_v23  ;;  %v1319_v30 = vmul.f32 %v4154_v22, %v3386_v3 }
 0x151   : > { %v1336_v31 = vmul.f32 %v4153_v58, %v3392_v42  ;;  %v4155_v57 = vmov %v4154_v22  ;;  %v1327_v25 = vrot.slane %v1323_v41, 1  ;;  %v4157_v4 = vrot.slane %v3177_v29, %v2849_v47 }
 0x152   : > { %v1320_v12 = vmul.f32 %v4155_v57, %v3392_v42  ;;  %v1328_v53 = vrot.slane %v1324_v28, 1  ;;  %v4159_v54 = vrot.slane %v3177_v29, %v2864_v60  ;;  %v4160_v17 = vstv %s3104_s30  ;;  %s4169_s30 = sld [smem:[#allocation60_spill]] }
 0x153   : > { %v1215_v55 = vadd.f32 %v4157_v4, %v3474_v20  ;;  %v1347_v8 = vmul.f32 %v4160_v17, %v3386_v3  ;;  %v4161_v62 = vmov %v4160_v17  ;;  %v1331_v35 = vadd.f32 %v1327_v25, %v1319_v30 }
 0x154   : > { %v1216_v27 = vadd.f32 %v4159_v54, %v3486_v16  ;;  %v1348_v21 = vmul.f32 %v4161_v62, %v3392_v42  ;;  %v1332_v61 = vadd.f32 %v1328_v53, %v1320_v12  ;;  %v1339_v52 = vrot.slane %v1335_v59, 2 }
 0x155   : > { %v1340_v50 = vrot.slane %v1336_v31, 2  ;;  %v4162_v63 = vstv %s4151_s28  ;;  %v4164_v29 = vstv %s3117_s12  ;;  %v4166_v13 = vstv %s4156_s9  ;;  %v1681_v31 = vpop.permute.xlu1 %1680  ;;  %s4179_s12 = sld [smem:[#allocation57_spill]] }
 0x156   : > { %v1467_v9 = vmul.f32 %v4162_v63, %v3418_v14  ;;  %v4163_v20 = vmov %v4162_v63  ;;  %v1479_v16 = vmul.f32 %v4164_v29, %v3418_v14  ;;  %v4165_v19 = vmov %v4164_v29 }
 0x157   : > { %v1468_v43 = vmul.f32 %v4163_v20, %v3443_v24  ;;  %v1480_v38 = vmul.f32 %v4165_v19, %v3443_v24  ;;  %v1343_v34 = vadd.f32 %v1339_v52, %v1331_v35  ;;  %v1344_v33 = vadd.f32 %v1340_v50, %v1332_v61 }
 0x158   : > { %v1463_v10 = vmul.f32 %v4166_v13, %v3418_v14  ;;  %v4167_v5 = vstv %s4158_s17  ;;  %v1351_v2 = vrot.slane %v1347_v8, 3  ;;  %v4168_v0 = vmov %v4166_v13 }
 0x159   : > { %v1491_v46 = vmul.f32 %v4167_v5, %v3418_v14  ;;  %v1464_v40 = vmul.f32 %v4168_v0, %v3443_v24  ;;  %v1471_v11 = vrot.slane %v1467_v9, 1  ;;  %v1472_v41 = vrot.slane %v1468_v43, 1 }
 0x15a   : > { %v3639_v49 = vadd.f32 %v1044_v7, %v1036_v6  ;;  %v1352_v28 = vrot.slane %v1348_v21, 3  ;;  %v1483_v23 = vrot.slane %v1479_v16, 2  ;;  %v4170_v59 = vmov %v4167_v5 }
 0x15b   : > { %v1492_v58 = vmul.f32 %v4170_v59, %v3443_v24  ;;  %v1355_v22 = vadd.f32 %v1351_v2, %v1343_v34  ;;  %v1475_v30 = vadd.f32 %v1471_v11, %v1463_v10  ;;  %v1476_v57 = vadd.f32 %v1472_v41, %v1464_v40  ;;  %v1683_v2 = vpop.permute.xlu0 %1682  ;;  %v1685_v11 = vpop.permute.xlu1 %1684 }
 0x15c   : > { %v1484_v12 = vrot.slane %v1480_v38, 2  ;;  %v1356_v25 = vadd.f32 %v1352_v28, %v1344_v33  ;;  %v1495_v53 = vrot.slane %v1491_v46, 3  ;;  %v4171_v4 = vstv %s3139_s3  ;;  %s4181_s3 = sld [smem:[#allocation41_spill]] }
 0x15d   : > { %v1828_v54 = vmul.f32 %v4171_v4, %v3586_v37  ;;  %v4172_v6 = vmov %v4171_v4  ;;  %v4173_v17 = vstv %s4169_s30  ;;  %v4175_v35 = vstv %s3142_s13  ;;  %s4235_s13 = sld [smem:[#allocation67_spill]] }
 0x15e   : > { %v1829_v7 = vmul.f32 %v4172_v6, %v3590_v56  ;;  %v1824_v8 = vmul.f32 %v4173_v17, %v3586_v37  ;;  %v4174_v62 = vmov %v4173_v17  ;;  %v1840_v61 = vmul.f32 %v4175_v35, %v3586_v37 }
 0x15f   : > { %v1825_v21 = vmul.f32 %v4174_v62, %v3590_v56  ;;  %v4176_v52 = vmov %v4175_v35  ;;  %v1487_v63 = vadd.f32 %v1483_v23, %v1475_v30  ;;  %v1488_v9 = vadd.f32 %v1484_v12, %v1476_v57 }
 0x160   : > { %v1841_v50 = vmul.f32 %v4176_v52, %v3590_v56  ;;  %v1832_v20 = vrot.slane %v1828_v54, 1  ;;  %v1833_v43 = vrot.slane %v1829_v7, 1  ;;  %v1357_v29 = vadd.f32 %v1355_v22, %v1215_v55 }
 0x161   : > { %v1496_v16 = vrot.slane %v1492_v58, 3  ;;  %v4177_v19 = vstv %s3144_s6  ;;  %v1844_v5 = vrot.slane %v1840_v61, 2  ;;  %v1049_v0 = vadd.f32 %v1045_v18, %v3571_v45  ;;  %s4182_s6 = sld [smem:[#allocation59_spill]] }
 0x162   : > { %v1852_v38 = vmul.f32 %v4177_v19, %v3586_v37  ;;  %v4178_v34 = vmov %v4177_v19  ;;  %v1836_v13 = vadd.f32 %v1832_v20, %v1824_v8  ;;  %v1837_v10 = vadd.f32 %v1833_v43, %v1825_v21 }
 0x163   : > { %v1853_v33 = vmul.f32 %v4178_v34, %v3590_v56  ;;  %v1845_v46 = vrot.slane %v1841_v50, 2  ;;  %v906_v55 = vadd.f32 %v3565_v48, %v3574_v51  ;;  %v907_v40 = vadd.f32 %v3567_v36, %v3576_v15 }
 0x164   : > { %v1358_v41 = vadd.f32 %v1356_v25, %v1216_v27  ;;  %v1499_v28 = vadd.f32 %v1495_v53, %v1487_v63  ;;  %v1500_v23 = vadd.f32 %v1496_v16, %v1488_v9  ;;  %v1848_v59 = vadd.f32 %v1844_v5, %v1836_v13 }
 0x165   : > { %v1849_v58 = vadd.f32 %v1845_v46, %v1837_v10  ;;  %v1856_v22 = vrot.slane %v1852_v38, 3  ;;  %v1686_v32 = vsel %vm1613_vm13, %v1681_v31, %v1683_v2  ;;  %v4183_v45 = vstv %s4179_s12  ;;  %v1755_v46 = vpop.permute.xlu1 %1754 }
 0x166   : > { %v1365_v18 = vmul.f32 %v4183_v45, %v3386_v3  ;;  %v4184_v48 = vstv %s4180_s19  ;;  %v1501_v36 = vadd.f32 %v1499_v28, %v1357_v29  ;;  %v1857_v15 = vrot.slane %v1853_v33, 3 }
 0x167   : > { %v1377_v51 = vmul.f32 %v4184_v48, %v3386_v3  ;;  %v1687_v30 = vsel %vm1613_vm13, %v1683_v2, %v1685_v11  ;;  %v4185_v27 = vstv %s4181_s3  ;;  %v4186_v25 = vstv %s4182_s6  ;;  %v1753_v11 = vpop.permute.xlu0 %1752 }
 0x168   : > { %v1361_v57 = vmul.f32 %v4185_v27, %v3386_v3  ;;  %v1369_v12 = vrot.slane %v1365_v18, 1  ;;  %v1389_v31 = vmul.f32 %v4186_v25, %v3386_v3  ;;  %v4187_v53 = vstv %s3151_s14  ;;  %s4217_s14 = sld [smem:[#allocation64_spill]] }
 0x169   : > { %v1509_v4 = vmul.f32 %v4187_v53, %v3418_v14  ;;  %v4188_v54 = vstv %s3158_s7  ;;  %v1502_v7 = vadd.f32 %v1500_v23, %v1358_v41  ;;  %v1860_v17 = vadd.f32 %v1856_v22, %v1848_v59 }
 0x16a   : > { %v1521_v6 = vmul.f32 %v4188_v54, %v3418_v14  ;;  %v1861_v8 = vadd.f32 %v1857_v15, %v1849_v58  ;;  %v1690_v62 = vadd.f32 %v1686_v32, %v1501_v36  ;;  %v1373_v21 = vadd.f32 %v1369_v12, %v1361_v57 }
 0x16b   : > { %v1381_v35 = vrot.slane %v1377_v51, 2  ;;  %v4189_v61 = vstv %s3149_s4  ;;  %v1513_v50 = vrot.slane %v1509_v4, 1  ;;  %v1691_v63 = vadd.f32 %v1687_v30, %v1502_v7  ;;  %s4234_s4 = sld [smem:[#allocation69_spill]] }
 0x16c   : > { %v1505_v52 = vmul.f32 %v4189_v61, %v3418_v14  ;;  %v4190_v9 = vrot.slane %v3192_v39, %v2849_v47  ;;  %v4191_v43 = vstv %s3160_s20  ;;  %v4192_v16 = vstv %s3184_s18  ;;  %s4208_s18 = sld [smem:[#allocation62_spill]]  ;;  %s4209_s20 = sld [smem:[#allocation63_spill]] }
 0x16d   : > { %v1533_v29 = vmul.f32 %v4191_v43, %v3418_v14  ;;  %v1870_v19 = vmul.f32 %v4192_v16, %v3586_v37  ;;  %v1385_v38 = vadd.f32 %v1381_v35, %v1373_v21  ;;  %v1393_v34 = vrot.slane %v1389_v31, 3 }
 0x16e   : > { %v1255_v20 = vadd.f32 %v4190_v9, %v3496_v26  ;;  %v1517_v33 = vadd.f32 %v1513_v50, %v1505_v52  ;;  %v1525_v13 = vrot.slane %v1521_v6, 2  ;;  %v1050_v10 = vadd.f32 %v3639_v49, %v906_v55 }
 0x16f   : > { %v1051_v5 = vadd.f32 %v1049_v0, %v907_v40  ;;  %v3709_v26 = vadd.f32 %v1860_v17, %v1690_v62  ;;  %v1874_v2 = vrot.slane %v1870_v19, 1  ;;  %v3711_v41 = vadd.f32 %v1861_v8, %v1691_v63 }
 0x170   : > { %v1397_v28 = vadd.f32 %v1393_v34, %v1385_v38  ;;  %v1529_v23 = vadd.f32 %v1525_v13, %v1517_v33  ;;  %v4193_v59 = vstv %s3179_s26  ;;  %v1537_v22 = vrot.slane %v1533_v29, 3  ;;  %v1757_v13 = vpop.permute.xlu0 %1756  ;;  %s4244_s26 = sld [smem:[#allocation15_spill]] }
 0x171   : > { %v1866_v58 = vmul.f32 %v4193_v59, %v3586_v37  ;;  %v4194_v49 = vstv %s3186_s10  ;;  %v4195_v55 = vmov %v4183_v45  ;;  %v4196_v32 = vmov %v4184_v48  ;;  %s4221_s10 = sld [smem:[#allocation65_spill]] }
 0x172   : > { %v1882_v0 = vmul.f32 %v4194_v49, %v3586_v37  ;;  %v1366_v40 = vmul.f32 %v4195_v55, %v3392_v42  ;;  %v1378_v45 = vmul.f32 %v4196_v32, %v3392_v42  ;;  %v1399_v18 = vadd.f32 %v1397_v28, %v1255_v20 }
 0x173   : > { %v4197_v48 = vstv %s3194_s2  ;;  %v1758_v36 = vsel %vm1613_vm13, %v1753_v11, %v1755_v46  ;;  %v4198_v15 = vmov %v4187_v53  ;;  %v1878_v27 = vadd.f32 %v1874_v2, %v1866_v58  ;;  %s4223_s2 = sld [smem:[#allocation66_spill]] }
 0x174   : > { %v3728_v51 = vmul.f32 %v4197_v48, %v3586_v37  ;;  %v1510_v30 = vmul.f32 %v4198_v15, %v3443_v24  ;;  %v4199_v57 = vstv %s4181_s3  ;;  %v1370_v25 = vrot.slane %v1366_v40, 1 }
 0x175   : > { %v1362_v12 = vmul.f32 %v4199_v57, %v3392_v42  ;;  %v4200_v31 = vstv %s4182_s6  ;;  %v1541_v4 = vadd.f32 %v1537_v22, %v1529_v23  ;;  %v4201_v54 = vmov %v4189_v61 }
 0x176   : > { %v1390_v53 = vmul.f32 %v4200_v31, %v3392_v42  ;;  %v1506_v6 = vmul.f32 %v4201_v54, %v3443_v24  ;;  %v1514_v7 = vrot.slane %v1510_v30, 1  ;;  %v4202_v17 = vstv %s3158_s7  ;;  %s4210_s7 = sld [smem:[#allocation61_spill]]  ;;  %p364_p1 = scmp.lt.s32.totalorder %s4244_s26, 1 }
 0x177   : > { %v1522_v8 = vmul.f32 %v4202_v17, %v3443_v24  ;;  %v1374_v62 = vadd.f32 %v1370_v25, %v1362_v12  ;;  %v1382_v21 = vrot.slane %v1378_v45, 2  ;;  %v4203_v35 = vmov %v4191_v43 }
 0x178   : > { %v1534_v61 = vmul.f32 %v4203_v35, %v3443_v24  ;;  %v4204_v52 = vmov %v4192_v16  ;;  %v1543_v63 = vadd.f32 %v1541_v4, %v1399_v18  ;;  %v1886_v9 = vrot.slane %v1882_v0, 2  ;;  %s4255_s26 = smov (!%p364_p1, %s4244_s26), 1 }
 0x179   : > { %v1871_v50 = vmul.f32 %v4204_v52, %v3590_v56  ;;  %v1518_v20 = vadd.f32 %v1514_v7, %v1506_v6  ;;  %v1526_v43 = vrot.slane %v1522_v8, 2  ;;  %v1386_v29 = vadd.f32 %v1382_v21, %v1374_v62  ;;  %s2264_s15 = sshll.u32 %s4255_s26, 3 }
 0x17a   : > { %v4205_v19 = vmov %v4194_v49  ;;  %v4206_v34 = vmov %v4197_v48  ;;  %v4207_v2 = vrot.slane %v3192_v39, %v2864_v60  ;;  %v1394_v28 = vrot.slane %v1390_v53, 3  ;;  %s371_s8 = scalar_lea.vmem %s4245_s29, %s2264_s15 }
 0x17b   : > { %v1875_v16 = vrot.slane %v1871_v50, 1  ;;  %v1883_v38 = vmul.f32 %v4205_v19, %v3590_v56  ;;  %v3758_v33 = vmul.f32 %v4206_v34, %v3590_v56  ;;  %v1530_v23 = vadd.f32 %v1526_v43, %v1518_v20 }
 0x17c   : > { %v1256_v11 = vadd.f32 %v4207_v2, %v3552_v1  ;;  %v1867_v58 = vmul.f32 %v4193_v59, %v3590_v56  ;;  %v3767_v22 = vadd.f32 %v1886_v9, %v1878_v27  ;;  %v1898_v49 = vrot.slane %v3728_v51, 3 }
 0x17d   : > { %v3770_v0 = vadd.f32 %v1758_v36, %v1543_v63  ;;  %v1538_v55 = vrot.slane %v1534_v61, 3  ;;  %v1398_v39 = vadd.f32 %v1394_v28, %v1386_v29  ;;  %v1759_v40 = vsel %vm1613_vm13, %v1755_v46, %v1757_v13  ;;  %v1608_v28 = vpop.permute.xlu1 %1607 }
 0x17e   : > { %v1879_v1 = vadd.f32 %v1875_v16, %v1867_v58  ;;  %v4211_v32 = vrot.slane %v3257_v44, %v2849_v47  ;;  %v1887_v48 = vrot.slane %v1883_v38, 2  ;;  %v1899_v15 = vrot.slane %v3758_v33, 3 }
 0x17f   : > { %v1542_v18 = vadd.f32 %v1538_v55, %v1530_v23  ;;  %v4212_v30 = vstv %s4208_s18  ;;  %v4214_v12 = vstv %s4209_s20  ;;  %v4216_v47 = vstv %s3204_s16  ;;  %s4231_s16 = sld [smem:[#allocation68_spill]] }
 0x180   : > { %v1175_v45 = vadd.f32 %v4211_v32, %v1050_v10  ;;  %v1281_v27 = vmul.f32 %v4212_v30, %v3386_v3  ;;  %v4213_v36 = vmov %v4212_v30  ;;  %v1293_v25 = vmul.f32 %v4214_v12, %v3386_v3 }
 0x181   : > { %v1282_v57 = vmul.f32 %v4213_v36, %v3392_v42  ;;  %v4215_v31 = vmov %v4214_v12  ;;  %v1305_v10 = vmul.f32 %v4216_v47, %v3386_v3  ;;  %v4218_v53 = vrot.slane %v3257_v44, %v2864_v60 }
 0x182   : > { %v1294_v46 = vmul.f32 %v4215_v31, %v3392_v42  ;;  %v4219_v54 = vstv %s4210_s7  ;;  %v1285_v7 = vrot.slane %v1281_v27, 1  ;;  %v4220_v17 = vmov %v4216_v47 }
 0x183   : > { %v1176_v4 = vadd.f32 %v4218_v53, %v1051_v5  ;;  %v1277_v6 = vmul.f32 %v4219_v54, %v3386_v3  ;;  %v1306_v8 = vmul.f32 %v4220_v17, %v3392_v42  ;;  %v1400_v62 = vadd.f32 %v1398_v39, %v1256_v11 }
 0x184   : > { %v4222_v21 = vmov %v4219_v54  ;;  %v1286_v61 = vrot.slane %v1282_v57, 1  ;;  %v1297_v52 = vrot.slane %v1293_v25, 2  ;;  %v1298_v60 = vrot.slane %v1294_v46, 2 }
 0x185   : > { %v1278_v35 = vmul.f32 %v4222_v21, %v3392_v42  ;;  %v1289_v50 = vadd.f32 %v1285_v7, %v1277_v6  ;;  %v1309_v44 = vrot.slane %v1305_v10, 3  ;;  %v1310_v5 = vrot.slane %v1306_v8, 3 }
 0x186   : > { %v4224_v3 = vstv %s3224_s1  ;;  %v4225_v20 = vstv %s4217_s14  ;;  %v4228_v34 = vstv %s4221_s10  ;;  %v4230_v55 = vstv %s4223_s2  ;;  %s4232_s1 = sld [smem:[#allocation21_spill]] }
 0x187   : > { %v1290_v63 = vadd.f32 %v1286_v61, %v1278_v35  ;;  %v1421_v9 = vmul.f32 %v4224_v3, %v3418_v14  ;;  %v1425_v43 = vmul.f32 %v4225_v20, %v3418_v14  ;;  %v4226_v29 = vmov %v4225_v20 }
 0x188   : > { %v1426_v16 = vmul.f32 %v4226_v29, %v3443_v24  ;;  %v1301_v19 = vadd.f32 %v1297_v52, %v1289_v50  ;;  %v4227_v42 = vmov %v4224_v3  ;;  %v1437_v13 = vmul.f32 %v4228_v34, %v3418_v14 }
 0x189   : > { %v1422_v38 = vmul.f32 %v4227_v42, %v3443_v24  ;;  %v4229_v2 = vmov %v4228_v34  ;;  %v1302_v23 = vadd.f32 %v1298_v60, %v1290_v63  ;;  %v1429_v59 = vrot.slane %v1425_v43, 1 }
 0x18a   : > { %v1438_v11 = vmul.f32 %v4229_v2, %v3443_v24  ;;  %v1430_v58 = vrot.slane %v1426_v16, 1  ;;  %v1449_v39 = vmul.f32 %v4230_v55, %v3418_v14  ;;  %v1544_v32 = vadd.f32 %v1542_v18, %v1400_v62 }
 0x18b   : > { %v1313_v30 = vadd.f32 %v1309_v44, %v1301_v19  ;;  %v1441_v27 = vrot.slane %v1437_v13, 2  ;;  %v1314_v57 = vadd.f32 %v1310_v5, %v1302_v23  ;;  %v1433_v12 = vadd.f32 %v1429_v59, %v1421_v9  ;;  %v1610_v44 = vpop.permute.xlu0 %1609 }
 0x18c   : > { %v1442_v36 = vrot.slane %v1438_v11, 2  ;;  %v1434_v25 = vadd.f32 %v1430_v58, %v1422_v38  ;;  %v4233_v31 = vmov %v4230_v55  ;;  %v1891_v47 = vadd.f32 %v1887_v48, %v1879_v1 }
 0x18d   : > { %v1450_v46 = vmul.f32 %v4233_v31, %v3443_v24  ;;  %v1763_v10 = vadd.f32 %v1759_v40, %v1544_v32  ;;  %v1315_v53 = vadd.f32 %v1313_v30, %v1175_v45  ;;  %v1453_v14 = vrot.slane %v1449_v39, 3  ;;  %v1612_v45 = vpop.permute.xlu1 %1611 }
 0x18e   : > { %v1316_v18 = vadd.f32 %v1314_v57, %v1176_v4  ;;  %v1445_v54 = vadd.f32 %v1441_v27, %v1433_v12  ;;  %v1446_v6 = vadd.f32 %v1442_v36, %v1434_v25  ;;  %v4236_v17 = vstv %s4231_s16 }
 0x18f   : > { %v1454_v7 = vrot.slane %v1450_v46, 3  ;;  %v1786_v8 = vmul.f32 %v4236_v17, %v3586_v37  ;;  %v4237_v62 = vmov %v4236_v17  ;;  %v4238_v24 = vstv %s4232_s1 }
 0x190   : > { %v1787_v21 = vmul.f32 %v4237_v62, %v3590_v56  ;;  %v1798_v35 = vmul.f32 %v4238_v24, %v3586_v37  ;;  %v4239_v1 = vmov %v4238_v24  ;;  %v1457_v48 = vadd.f32 %v1453_v14, %v1445_v54 }
 0x191   : > { %v1799_v40 = vmul.f32 %v4239_v1, %v3590_v56  ;;  %v1458_v61 = vadd.f32 %v1454_v7, %v1446_v6  ;;  %v4240_v4 = vstv %s4234_s4  ;;  %v4242_v5 = vstv %s4235_s13 }
 0x192   : > { %v1810_v52 = vmul.f32 %v4240_v4, %v3586_v37  ;;  %v4241_v50 = vmov %v4240_v4  ;;  %v1782_v63 = vmul.f32 %v4242_v5, %v3586_v37  ;;  %v4243_v3 = vmov %v4242_v5 }
 0x193   : > { %v1811_v60 = vmul.f32 %v4241_v50, %v3590_v56  ;;  %v1783_v9 = vmul.f32 %v4243_v3, %v3590_v56  ;;  %v1790_v20 = vrot.slane %v1786_v8, 1  ;;  %v1791_v43 = vrot.slane %v1787_v21, 1 }
 0x194   : > { %v1459_v29 = vadd.f32 %v1457_v48, %v1315_v53  ;;  %v1460_v16 = vadd.f32 %v1458_v61, %v1316_v18  ;;  %v1802_v19 = vrot.slane %v1798_v35, 2  ;;  %v1803_v42 = vrot.slane %v1799_v40, 2 }
 0x195   : > { %v1794_v38 = vadd.f32 %v1790_v20, %v1782_v63  ;;  %v1795_v34 = vadd.f32 %v1791_v43, %v1783_v9  ;;  %v1614_v13 = vsel %vm1613_vm13, %v1608_v28, %v1610_v44  ;;  %v1615_v2 = vsel %vm1613_vm13, %v1610_v44, %v1612_v45 }
 0x196   : > { %v1902_v11 = vadd.f32 %v1898_v49, %v3767_v22  ;;  %v1903_v37 = vadd.f32 %v1899_v15, %v1891_v47  ;;  %v1814_v56 = vrot.slane %v1810_v52, 3  ;;  %v1815_v23 = vrot.slane %v1811_v60, 3 }
 0x197   : > { %v1806_v59 = vadd.f32 %v1802_v19, %v1794_v38  ;;  %v1807_v58 = vadd.f32 %v1803_v42, %v1795_v34  ;;  %v1618_v55 = vadd.f32 %v1614_v13, %v1459_v29  ;;  %v1619_v39 = vadd.f32 %v1615_v2, %v1460_v16 }
 0x198   : > { %v1904_v32 = vadd.f32 %v1902_v11, %v3770_v0  ;;  %v1905_v30 = vadd.f32 %v1903_v37, %v1763_v10  ;;  %v1908_v51 = vrot.slane %v3709_v26, 7  ;;  %v1909_v33 = vrot.slane %v3711_v41, 7 }
 0x199   : > { %v1818_v28 = vadd.f32 %v1814_v56, %v1806_v59  ;;  %v1819_v27 = vadd.f32 %v1815_v23, %v1807_v58 }
 0x19a   : > { %v1914_v15 = vrot.slane %v1904_v32, 6  ;;  %v1915_v36 = vrot.slane %v1905_v30, 6 }
 0x19b   : > { %v1820_v22 = vadd.f32 %v1818_v28, %v1618_v55  ;;  %v1821_v49 = vadd.f32 %v1819_v27, %v1619_v39 }
 0x19d   : > { %v1919_v57 = vsel %vm1918_vm14, %v1820_v22, %v1908_v51  ;;  %v1920_v12 = vsel %vm1918_vm14, %v1821_v49, %v1909_v33 }
 0x19e   : > { %v1922_v25 = vsel %vm1921_vm15, %v1919_v57, %v1914_v15  ;;  %v1923_v31 = vsel %vm1921_vm15, %v1920_v12, %v1915_v36 }
 0x19f   : > { %2355 = vtanh.f32 %v1922_v25 }
 0x1a0   : > { %2357 = vtanh.f32 %v1923_v31 }
 0x1a9   : > { %v2356_v0 = vpop.eup %2355 }
 0x1aa   : > { %v2358_v46 = vpop.eup %2357 }
 0x1ab   : > { %v1928_v26 = vcombine.low %v2356_v0, %v2358_v46 }
 0x1ad   : > { %1930 = vst [vmem:[%s371_s8] sm:$0x77] %v1928_v26 }
 0x1ae PF: > { %s4246_s11 = sld [smem:[#allocation17_spill]]  ;;  %s4247_s15 = sld [smem:[#allocation13_spill]] }
 0x1af   : > { %s4248_s16 = sld [smem:[#allocation14_spill]]  ;;  %s4249_s17 = sld [smem:[#allocation19_spill]] }
 0x1b0   : > { %s4250_s18 = sld [smem:[#allocation16_spill]]  ;;  %s4251_s19 = sld [smem:[#allocation18_spill]] }
 0x1b4   : > { %s21_s20 = sadd.s32 1, %s4246_s11  }
 0x1b5   : > { %p18_p4 = scmp.ge.s32.totalorder %s21_s20, 4  }
 0x1b7   :  { %20 = sbr.rel (!%p18_p4) target bundleno = 13 (0xd), region = 121 }
 0x1be   :  { %1961 = vsyncpa [#allocation4], 1 }
 0x1bf   :  { %1963 = vsyncpa [#allocation4 + $0x1], 1 }
 0x1c0   :  { %1964 = vsyncpa [#allocation7], 1 }
 0x1c1   :  { %1966 = vsyncpa [#allocation7 + $0x1], 1 }
 0x1c2   :  { %1967 = vsyncpa [#allocation5], 1 }
 0x1c3   :  { %1969 = vsyncpa [#allocation5 + $0x1], 1 }

</bundles_post_ra>
